<compile_context>
chip_gen: v6e
topology: v6e:2x2x1
jax: 0.10.0
libtpu: 0.0.40
codegen_flags: <defaults>
</compile_context>

<pallas_src>
import jax
import jax.numpy as jnp
from jax.experimental import pallas as pl
from jax.experimental.pallas import tpu as pltpu


# ---------------------------------------------------------------------------
# Fused kernel: binding-site masking -> graph sum-pool -> attentive pooling
#               -> MLP head.  No intermediate ever touches HBM.
# Weights arrive bf16 and go straight to the MXU (bf16 x bf16 -> f32 acc).
# ---------------------------------------------------------------------------
def _fused_kernel(prot_ref, mask_ref, nodes_ref,
                  param_ref, paramT_ref,
                  w1c_ref, w1p_ref, s1_ref, t1_ref,
                  w2_ref, s2_ref, t2_ref,
                  w3_ref, s3_ref, t3_ref,
                  w4_ref, b4_ref,
                  out_ref):
    f32 = jnp.float32
    bf16 = jnp.bfloat16

    # ---- binding-site masking (threshold applied in the wrapper; int8 mask,
    #      direct select instead of building a float tensor and multiplying) --
    prot = jnp.where(mask_ref[...] != 0, prot_ref[...], 0.0)          # (bt,P)

    # ---- graph sum-pool; to_dense_batch already zero-pads invalid nodes ----
    chem = jnp.sum(nodes_ref[...], axis=1)                            # (bt,E)

    # ---- AttentivePooling; relu(param) and its transpose are precomputed
    #      bf16 constants.  Dropout = identity (eval mode). -------------------
    wm_chem = jnp.maximum(
        jnp.dot(prot.astype(bf16), paramT_ref[...],
                preferred_element_type=f32), 0.0)                     # (bt,E)
    wm_prot = jnp.maximum(
        jnp.dot(chem.astype(bf16), param_ref[...],
                preferred_element_type=f32), 0.0)                     # (bt,P)

    def _softmax(x):                                  # exact (no approx recip)
        x = x - jnp.max(x, axis=-1, keepdims=True)
        e = jnp.exp(x)
        return e / jnp.sum(e, axis=-1, keepdims=True)

    rep_chem = (chem * _softmax(wm_chem)).astype(bf16)                # (bt,E)
    rep_prot = (prot * _softmax(wm_prot)).astype(bf16)                # (bt,P)

    # ---- MLP head.  torch.cat((rep_chem, rep_prot)) folded by splitting w1
    #      into chem / prot row blocks.  BatchNorm folded to scale/shift. -----
    h = (jnp.dot(rep_chem, w1c_ref[...], preferred_element_type=f32) +
         jnp.dot(rep_prot, w1p_ref[...], preferred_element_type=f32))
    h = jnp.maximum(h * s1_ref[...] + t1_ref[...], 0.0)
    h = jnp.dot(h.astype(bf16), w2_ref[...], preferred_element_type=f32)
    h = jnp.maximum(h * s2_ref[...] + t2_ref[...], 0.0)
    h = jnp.dot(h.astype(bf16), w3_ref[...], preferred_element_type=f32)
    h = jnp.maximum(h * s3_ref[...] + t3_ref[...], 0.0)

    # Final 128 -> 1 layer on the VPU (lane reduce), stored lane-dense as a
    # single (1, 1, bt) row instead of a masked (bt, 1) column.
    res = jnp.sum(h * w4_ref[...], axis=-1)                           # (bt,)
    out_ref[...] = (res + b4_ref[...]).reshape(1, 1, -1)              # (1,1,bt)


# ---------------------------------------------------------------------------
# Batch-tile heuristic: fill the MXU (up to 128 rows) but keep >=2 grid steps
# for large batches so v7x can shard the parallel axis over its 2 TensorCores.
# ---------------------------------------------------------------------------
def _pick_bt(B):
    if B <= 8:
        return B
    bt = min(128, -(-B // 2))          # ceil(B/2), capped at 128
    bt = max(8, (bt // 8) * 8)         # multiple of 8 (sublane tiling)
    return bt


# ---------------------------------------------------------------------------
# pallas_call wrapper: one fused call, batch tiled on a "parallel" grid axis.
# ---------------------------------------------------------------------------
def _fused_call(prot_flat, big_mask, node_feats, param_bf, paramT_bf, p):
    B, P = prot_flat.shape
    _, N, E = node_feats.shape

    bt = _pick_bt(B)
    n_tiles = -(-B // bt)
    Bp = n_tiles * bt
    if Bp != B:                        # pad batch to a multiple of the tile
        pad = Bp - B
        prot_flat = jnp.pad(prot_flat, ((0, pad), (0, 0)))
        big_mask = jnp.pad(big_mask, ((0, pad), (0, 0)))
        node_feats = jnp.pad(node_feats, ((0, pad), (0, 0), (0, 0)))

    grid = (n_tiles,)
    row2 = lambda i: (i, 0)
    row3 = lambda i: (i, 0, 0)
    rep2 = lambda i: (0, 0)            # weights: same block every step

    weights = (param_bf, paramT_bf,
               p["w1c"], p["w1p"], p["s1"], p["t1"],
               p["w2"], p["s2"], p["t2"],
               p["w3"], p["s3"], p["t3"],
               p["w4"], p["b4"])

    in_specs = ([pl.BlockSpec((bt, P), row2),            # prot (flattened NCHW)
                 pl.BlockSpec((bt, P), row2),            # binary mask (int8)
                 pl.BlockSpec((bt, N, E), row3)] +       # dense node features
                [pl.BlockSpec(w.shape, rep2, pipeline_mode=pl.Buffered(1))
                 for w in weights])                      # resident, 1 buffer

    # Scoped-VMEM budget: weights (single buffer) + double-buffered activation
    # tiles + slack; important on v5e where the default limit is 16 MiB.
    w_bytes = sum(int(w.nbytes) for w in weights)
    act_bytes = bt * (P * 4 + P * 1 + N * E * 4 + 4)
    vmem_limit = int(min(64 << 20,
                         max(16 << 20, w_bytes + 3 * act_bytes + (8 << 20))))

    out = pl.pallas_call(
        _fused_kernel,
        out_shape=jax.ShapeDtypeStruct((n_tiles, 1, bt), jnp.float32),
        grid=grid,
        in_specs=in_specs,
        out_specs=pl.BlockSpec((1, 1, bt), lambda i: (i, 0, 0)),
        compiler_params=pltpu.CompilerParams(
            dimension_semantics=("parallel",),
            vmem_limit_bytes=vmem_limit),
    )(prot_flat, big_mask, node_feats, *weights)

    return out.reshape(Bp)[:B]                            # (B,)


# ---------------------------------------------------------------------------
# Full forward (tiny glue in plain JAX, everything heavy inside the kernel)
# ---------------------------------------------------------------------------
def binding_model2_forward(prot_feature_map, batch_masks, node_feats, params):
    B, C, H, W = prot_feature_map.shape

    # F.interpolate(batch_masks.unsqueeze(1), (H, W)) -- default mode='nearest':
    # out[i] = in[floor(i * in_size / out_size)]
    Hin, Win = batch_masks.shape[1], batch_masks.shape[2]
    idx_h = (jnp.arange(H) * Hin) // H
    idx_w = (jnp.arange(W) * Win) // W
    mask_rs = batch_masks[:, idx_h][:, :, idx_w]                  # (B, H, W)

    # Threshold + broadcast over channels, flattened in NCHW order so it lines
    # up with prot_feature_map.reshape(B, C*H*W).  Stored int8 (half the DMA
    # bytes of bf16).
    binary = (mask_rs >= 0.5)
    big_mask = jnp.broadcast_to(binary[:, None, :, :], (B, C, H, W))
    big_mask = big_mask.reshape(B, C * H * W).astype(jnp.int8)

    prot_flat = prot_feature_map.reshape(B, C * H * W)            # (B, P)

    # relu(attention.param) and its transpose hoisted out of the kernel
    # (constants at inference); dropout on param = identity in eval mode.
    param_relu = jnp.maximum(params["attn_param"], 0.0)
    param_bf = param_relu.astype(jnp.bfloat16)                    # (E, P)
    paramT_bf = param_relu.T.astype(jnp.bfloat16)                 # (P, E)

    return _fused_call(prot_flat, big_mask, node_feats, param_bf, paramT_bf,
                       params)                                    # (B,)


# ---------------------------------------------------------------------------
# Deterministic parameter init (eval-mode BatchNorm folded into scale/shift)
# ---------------------------------------------------------------------------
def init_params(key, emb_dim, prot_hidden):
    keys = jax.random.split(key, 9)
    eps = 1e-5
    scale = 1.0 / jnp.sqrt(1.0 + eps)      # gamma=1, beta=0, mean=0, var=1
    p = {}

    # AttentivePooling param is nn.Parameter(torch.zeros(E, P)) in the real
    # model; small random values here give a non-degenerate numerical check.
    p["attn_param"] = 0.05 * jax.random.normal(
        keys[0], (emb_dim, prot_hidden), jnp.float32)

    # Linear1 split into chem / prot row blocks (folds the torch.cat).
    w1 = 0.02 * jax.random.normal(keys[1], (emb_dim + prot_hidden, 1024),
                                  jnp.float32)
    b1 = 0.01 * jax.random.normal(keys[2], (1024,), jnp.float32)
    p["w1c"] = w1[:emb_dim].astype(jnp.bfloat16)
    p["w1p"] = w1[emb_dim:].astype(jnp.bfloat16)
    p["s1"] = jnp.full((1, 1024), scale, jnp.float32)
    p["t1"] = b1[None, :] * scale

    w2 = 0.02 * jax.random.normal(keys[3], (1024, 512), jnp.float32)
    b2 = 0.01 * jax.random.normal(keys[4], (512,), jnp.float32)
    p["w2"] = w2.astype(jnp.bfloat16)
    p["s2"] = jnp.full((1, 512), scale, jnp.float32)
    p["t2"] = b2[None, :] * scale

    w3 = 0.02 * jax.random.normal(keys[5], (512, 128), jnp.float32)
    b3 = 0.01 * jax.random.normal(keys[6], (128,), jnp.float32)
    p["w3"] = w3.astype(jnp.bfloat16)
    p["s3"] = jnp.full((1, 128), scale, jnp.float32)
    p["t3"] = b3[None, :] * scale

    w4 = 0.02 * jax.random.normal(keys[7], (128, 1), jnp.float32)
    b4 = 0.01 * jax.random.normal(keys[8], (1,), jnp.float32)
    p["w4"] = w4.T                          # (1, 128) f32, used on the VPU
    p["b4"] = b4[None, :]                   # (1, 1)
    return p


# ---------------------------------------------------------------------------
# Plain-JAX reference (identical bf16 weight/activation quantisation, f32 acc)
# ---------------------------------------------------------------------------
def reference_forward(prot_feature_map, batch_masks, node_feats, p):
    f32, bf16 = jnp.float32, jnp.bfloat16
    B, C, H, W = prot_feature_map.shape
    Hin, Win = batch_masks.shape[1], batch_masks.shape[2]
    idx_h = (jnp.arange(H) * Hin) // H
    idx_w = (jnp.arange(W) * Win) // W
    mask_rs = batch_masks[:, idx_h][:, :, idx_w]
    binary = mask_rs >= 0.5
    prot = jnp.where(binary[:, None, :, :], prot_feature_map, 0.0).reshape(B, -1)
    chem = jnp.sum(node_feats, axis=1)

    param_relu = jnp.maximum(p["attn_param"], 0.0)
    param_bf = param_relu.astype(bf16)
    paramT_bf = param_relu.T.astype(bf16)

    def softmax(x):
        x = x - jnp.max(x, axis=-1, keepdims=True)
        e = jnp.exp(x)
        return e / jnp.sum(e, axis=-1, keepdims=True)

    wm_chem = jnp.maximum(
        jnp.dot(prot.astype(bf16), paramT_bf, preferred_element_type=f32), 0.0)
    wm_prot = jnp.maximum(
        jnp.dot(chem.astype(bf16), param_bf, preferred_element_type=f32), 0.0)
    rep_chem = (chem * softmax(wm_chem)).astype(bf16)
    rep_prot = (prot * softmax(wm_prot)).astype(bf16)

    h = (jnp.dot(rep_chem, p["w1c"], preferred_element_type=f32) +
         jnp.dot(rep_prot, p["w1p"], preferred_element_type=f32))
    h = jnp.maximum(h * p["s1"] + p["t1"], 0.0)
    h = jnp.dot(h.astype(bf16), p["w2"], preferred_element_type=f32)
    h = jnp.maximum(h * p["s2"] + p["t2"], 0.0)
    h = jnp.dot(h.astype(bf16), p["w3"], preferred_element_type=f32)
    h = jnp.maximum(h * p["s3"] + p["t3"], 0.0)
    return jnp.sum(h * p["w4"], axis=-1) + p["b4"][:, 0]


# ---------------------------------------------------------------------------
if __name__ == "__main__":
    B = 2
    C, H, W = 16, 4, 8            # stand-in resnet output -> prot_hidden = 512
    E = 32                        # emb_dim
    N = 8                         # max nodes per graph (dense batch)
    prot_hidden = C * H * W

    key = jax.random.PRNGKey(0)
    k1, k2, k3, k4 = jax.random.split(key, 4)

    # Stand-in ResnetEncoderModel output (see TODO above).
    prot_feature_map = jax.random.normal(k1, (B, C, H, W), jnp.float32)
    # Raw binding-site masks, nearest-interpolated to (H, W) in the wrapper.
    batch_masks = jax.random.uniform(k2, (B, 16, 16), jnp.float32)
    # Stand-in GNN node representations in dense-batch form, zero-padded like
    # torch_geometric.utils.to_dense_batch produces them.
    node_mask = jnp.array([[1.0] * 6 + [0.0] * 2, [1.0] * 8], jnp.float32)
    node_feats = (jax.random.normal(k3, (B, N, E), jnp.float32)
                  * node_mask[:, :, None])

    params = init_params(k4, E, prot_hidden)

    out = jax.block_until_ready(
        binding_model2_forward(prot_feature_map, batch_masks, node_feats,
                               params))
    ref = reference_forward(prot_feature_map, batch_masks, node_feats, params)

    assert out.shape == (B,)
    assert jnp.allclose(out, ref, atol=2e-3, rtol=2e-3), (out, ref)
    print("KERNEL_OK")
</pallas_src>

<mosaic_0001>
module attributes {stable_mosaic.version = 11 : i64} {
  func.func @_fused_kernel(%arg0: i32, %arg1: memref<2x512xf32, #tpu.memory_space<vmem>>, %arg2: memref<2x512xi8, #tpu.memory_space<vmem>>, %arg3: memref<2x8x32xf32, #tpu.memory_space<vmem>>, %arg4: memref<32x512xbf16, #tpu.memory_space<vmem>>, %arg5: memref<512x32xbf16, #tpu.memory_space<vmem>>, %arg6: memref<32x1024xbf16, #tpu.memory_space<vmem>>, %arg7: memref<512x1024xbf16, #tpu.memory_space<vmem>>, %arg8: memref<1x1024xf32, #tpu.memory_space<vmem>>, %arg9: memref<1x1024xf32, #tpu.memory_space<vmem>>, %arg10: memref<1024x512xbf16, #tpu.memory_space<vmem>>, %arg11: memref<1x512xf32, #tpu.memory_space<vmem>>, %arg12: memref<1x512xf32, #tpu.memory_space<vmem>>, %arg13: memref<512x128xbf16, #tpu.memory_space<vmem>>, %arg14: memref<1x128xf32, #tpu.memory_space<vmem>>, %arg15: memref<1x128xf32, #tpu.memory_space<vmem>>, %arg16: memref<1x128xf32, #tpu.memory_space<vmem>>, %arg17: memref<1x1xf32, #tpu.memory_space<vmem>>, %arg18: memref<1x1x2xf32, #tpu.memory_space<vmem>>) attributes {dimension_semantics = [#tpu.dimension_semantics<parallel>], iteration_bounds = array<i64: 1>, scalar_prefetch = 0 : i64, scratch_operands = 0 : i64, tpu.core_type = #tpu.core_type<tc>, window_params = [{transform_indices = @transform_0, window_bounds = array<i64: 2, 512>}, {transform_indices = @transform_1, window_bounds = array<i64: 2, 512>}, {transform_indices = @transform_2, window_bounds = array<i64: 2, 8, 32>}, {pipeline_mode = #tpu.pipeline_mode<synchronous>, transform_indices = @transform_3, window_bounds = array<i64: 32, 512>}, {pipeline_mode = #tpu.pipeline_mode<synchronous>, transform_indices = @transform_4, window_bounds = array<i64: 512, 32>}, {pipeline_mode = #tpu.pipeline_mode<synchronous>, transform_indices = @transform_5, window_bounds = array<i64: 32, 1024>}, {pipeline_mode = #tpu.pipeline_mode<synchronous>, transform_indices = @transform_6, window_bounds = array<i64: 512, 1024>}, {pipeline_mode = #tpu.pipeline_mode<synchronous>, transform_indices = @transform_7, window_bounds = array<i64: 1, 1024>}, {pipeline_mode = #tpu.pipeline_mode<synchronous>, transform_indices = @transform_8, window_bounds = array<i64: 1, 1024>}, {pipeline_mode = #tpu.pipeline_mode<synchronous>, transform_indices = @transform_9, window_bounds = array<i64: 1024, 512>}, {pipeline_mode = #tpu.pipeline_mode<synchronous>, transform_indices = @transform_10, window_bounds = array<i64: 1, 512>}, {pipeline_mode = #tpu.pipeline_mode<synchronous>, transform_indices = @transform_11, window_bounds = array<i64: 1, 512>}, {pipeline_mode = #tpu.pipeline_mode<synchronous>, transform_indices = @transform_12, window_bounds = array<i64: 512, 128>}, {pipeline_mode = #tpu.pipeline_mode<synchronous>, transform_indices = @transform_13, window_bounds = array<i64: 1, 128>}, {pipeline_mode = #tpu.pipeline_mode<synchronous>, transform_indices = @transform_14, window_bounds = array<i64: 1, 128>}, {pipeline_mode = #tpu.pipeline_mode<synchronous>, transform_indices = @transform_15, window_bounds = array<i64: 1, 128>}, {pipeline_mode = #tpu.pipeline_mode<synchronous>, transform_indices = @transform_16, window_bounds = array<i64: 1, 1>}, {transform_indices = @transform_17, window_bounds = array<i64: 1, 1, 2>}]} {
    %c0 = arith.constant 0 : index
    %c0_0 = arith.constant 0 : index
    %0 = vector.load %arg2[%c0, %c0_0] : memref<2x512xi8, #tpu.memory_space<vmem>>, vector<2x512xi8>
    %c0_i8 = arith.constant 0 : i8
    %1 = vector.broadcast %c0_i8 : i8 to vector<2x512xi8>
    %2 = arith.cmpi ne, %0, %1 : vector<2x512xi8>
    %c0_1 = arith.constant 0 : index
    %c0_2 = arith.constant 0 : index
    %3 = vector.load %arg1[%c0_1, %c0_2] : memref<2x512xf32, #tpu.memory_space<vmem>>, vector<2x512xf32>
    %cst = arith.constant 0.000000e+00 : f32
    %4 = vector.broadcast %cst : f32 to vector<2x512xf32>
    %5 = arith.select %2, %3, %4 : vector<2x512xi1>, vector<2x512xf32>
    %c0_3 = arith.constant 0 : index
    %c0_4 = arith.constant 0 : index
    %c0_5 = arith.constant 0 : index
    %6 = vector.load %arg3[%c0_3, %c0_4, %c0_5] : memref<2x8x32xf32, #tpu.memory_space<vmem>>, vector<2x8x32xf32>
    %cst_6 = arith.constant dense<0.000000e+00> : vector<2x32xf32>
    %7 = vector.multi_reduction <add>, %6, %cst_6 [1] : vector<2x8x32xf32> to vector<2x32xf32>
    %8 = arith.truncf %5 : vector<2x512xf32> to vector<2x512xbf16>
    %c0_7 = arith.constant 0 : index
    %c0_8 = arith.constant 0 : index
    %9 = vector.load %arg5[%c0_7, %c0_8] : memref<512x32xbf16, #tpu.memory_space<vmem>>, vector<512x32xbf16>
    %cst_9 = arith.constant dense<0.000000e+00> : vector<2x32xf32>
    %10 = tpu.matmul %8, %9, %cst_9 {dimension_numbers = #tpu.dot_dimension_numbers<[1], [0], [0], [1], [0, 0, 1, 1], [], []>} : vector<2x512xbf16>, vector<512x32xbf16>, vector<2x32xf32> -> vector<2x32xf32>
    %cst_10 = arith.constant 0.000000e+00 : f32
    %11 = vector.broadcast %cst_10 : f32 to vector<2x32xf32>
    %12 = arith.maximumf %10, %11 : vector<2x32xf32>
    %13 = arith.truncf %7 : vector<2x32xf32> to vector<2x32xbf16>
    %c0_11 = arith.constant 0 : index
    %c0_12 = arith.constant 0 : index
    %14 = vector.load %arg4[%c0_11, %c0_12] : memref<32x512xbf16, #tpu.memory_space<vmem>>, vector<32x512xbf16>
    %cst_13 = arith.constant dense<0.000000e+00> : vector<2x512xf32>
    %15 = tpu.matmul %13, %14, %cst_13 {dimension_numbers = #tpu.dot_dimension_numbers<[1], [0], [0], [1], [0, 0, 1, 1], [], []>} : vector<2x32xbf16>, vector<32x512xbf16>, vector<2x512xf32> -> vector<2x512xf32>
    %cst_14 = arith.constant 0.000000e+00 : f32
    %16 = vector.broadcast %cst_14 : f32 to vector<2x512xf32>
    %17 = arith.maximumf %15, %16 : vector<2x512xf32>
    %cst_15 = arith.constant dense<0xFF800000> : vector<2xf32>
    %18 = vector.multi_reduction <maximumf>, %12, %cst_15 [1] : vector<2x32xf32> to vector<2xf32>
    %19 = vector.shape_cast %18 : vector<2xf32> to vector<2x1xf32>
    %20 = vector.broadcast %19 : vector<2x1xf32> to vector<2x32xf32>
    %21 = arith.subf %12, %20 : vector<2x32xf32>
    %22 = math.exp %21 : vector<2x32xf32>
    %cst_16 = arith.constant dense<0.000000e+00> : vector<2xf32>
    %23 = vector.multi_reduction <add>, %22, %cst_16 [1] : vector<2x32xf32> to vector<2xf32>
    %24 = vector.shape_cast %23 : vector<2xf32> to vector<2x1xf32>
    %25 = vector.broadcast %24 : vector<2x1xf32> to vector<2x32xf32>
    %26 = arith.divf %22, %25 : vector<2x32xf32>
    %27 = arith.mulf %7, %26 : vector<2x32xf32>
    %28 = arith.truncf %27 : vector<2x32xf32> to vector<2x32xbf16>
    %cst_17 = arith.constant dense<0xFF800000> : vector<2xf32>
    %29 = vector.multi_reduction <maximumf>, %17, %cst_17 [1] : vector<2x512xf32> to vector<2xf32>
    %30 = vector.shape_cast %29 : vector<2xf32> to vector<2x1xf32>
    %31 = vector.broadcast %30 : vector<2x1xf32> to vector<2x512xf32>
    %32 = arith.subf %17, %31 : vector<2x512xf32>
    %33 = math.exp %32 : vector<2x512xf32>
    %cst_18 = arith.constant dense<0.000000e+00> : vector<2xf32>
    %34 = vector.multi_reduction <add>, %33, %cst_18 [1] : vector<2x512xf32> to vector<2xf32>
    %35 = vector.shape_cast %34 : vector<2xf32> to vector<2x1xf32>
    %36 = vector.broadcast %35 : vector<2x1xf32> to vector<2x512xf32>
    %37 = arith.divf %33, %36 : vector<2x512xf32>
    %38 = arith.mulf %5, %37 : vector<2x512xf32>
    %39 = arith.truncf %38 : vector<2x512xf32> to vector<2x512xbf16>
    %c0_19 = arith.constant 0 : index
    %c0_20 = arith.constant 0 : index
    %40 = vector.load %arg6[%c0_19, %c0_20] : memref<32x1024xbf16, #tpu.memory_space<vmem>>, vector<32x1024xbf16>
    %cst_21 = arith.constant dense<0.000000e+00> : vector<2x1024xf32>
    %41 = tpu.matmul %28, %40, %cst_21 {dimension_numbers = #tpu.dot_dimension_numbers<[1], [0], [0], [1], [0, 0, 1, 1], [], []>} : vector<2x32xbf16>, vector<32x1024xbf16>, vector<2x1024xf32> -> vector<2x1024xf32>
    %c0_22 = arith.constant 0 : index
    %c0_23 = arith.constant 0 : index
    %42 = vector.load %arg7[%c0_22, %c0_23] : memref<512x1024xbf16, #tpu.memory_space<vmem>>, vector<512x1024xbf16>
    %cst_24 = arith.constant dense<0.000000e+00> : vector<2x1024xf32>
    %43 = tpu.matmul %39, %42, %cst_24 {dimension_numbers = #tpu.dot_dimension_numbers<[1], [0], [0], [1], [0, 0, 1, 1], [], []>} : vector<2x512xbf16>, vector<512x1024xbf16>, vector<2x1024xf32> -> vector<2x1024xf32>
    %44 = arith.addf %41, %43 : vector<2x1024xf32>
    %c0_25 = arith.constant 0 : index
    %c0_26 = arith.constant 0 : index
    %45 = vector.load %arg8[%c0_25, %c0_26] : memref<1x1024xf32, #tpu.memory_space<vmem>>, vector<1x1024xf32>
    %46 = vector.broadcast %45 : vector<1x1024xf32> to vector<2x1024xf32>
    %47 = arith.mulf %44, %46 : vector<2x1024xf32>
    %c0_27 = arith.constant 0 : index
    %c0_28 = arith.constant 0 : index
    %48 = vector.load %arg9[%c0_27, %c0_28] : memref<1x1024xf32, #tpu.memory_space<vmem>>, vector<1x1024xf32>
    %49 = vector.broadcast %48 : vector<1x1024xf32> to vector<2x1024xf32>
    %50 = arith.addf %47, %49 : vector<2x1024xf32>
    %cst_29 = arith.constant 0.000000e+00 : f32
    %51 = vector.broadcast %cst_29 : f32 to vector<2x1024xf32>
    %52 = arith.maximumf %50, %51 : vector<2x1024xf32>
    %53 = arith.truncf %52 : vector<2x1024xf32> to vector<2x1024xbf16>
    %c0_30 = arith.constant 0 : index
    %c0_31 = arith.constant 0 : index
    %54 = vector.load %arg10[%c0_30, %c0_31] : memref<1024x512xbf16, #tpu.memory_space<vmem>>, vector<1024x512xbf16>
    %cst_32 = arith.constant dense<0.000000e+00> : vector<2x512xf32>
    %55 = tpu.matmul %53, %54, %cst_32 {dimension_numbers = #tpu.dot_dimension_numbers<[1], [0], [0], [1], [0, 0, 1, 1], [], []>} : vector<2x1024xbf16>, vector<1024x512xbf16>, vector<2x512xf32> -> vector<2x512xf32>
    %c0_33 = arith.constant 0 : index
    %c0_34 = arith.constant 0 : index
    %56 = vector.load %arg11[%c0_33, %c0_34] : memref<1x512xf32, #tpu.memory_space<vmem>>, vector<1x512xf32>
    %57 = vector.broadcast %56 : vector<1x512xf32> to vector<2x512xf32>
    %58 = arith.mulf %55, %57 : vector<2x512xf32>
    %c0_35 = arith.constant 0 : index
    %c0_36 = arith.constant 0 : index
    %59 = vector.load %arg12[%c0_35, %c0_36] : memref<1x512xf32, #tpu.memory_space<vmem>>, vector<1x512xf32>
    %60 = vector.broadcast %59 : vector<1x512xf32> to vector<2x512xf32>
    %61 = arith.addf %58, %60 : vector<2x512xf32>
    %cst_37 = arith.constant 0.000000e+00 : f32
    %62 = vector.broadcast %cst_37 : f32 to vector<2x512xf32>
    %63 = arith.maximumf %61, %62 : vector<2x512xf32>
    %64 = arith.truncf %63 : vector<2x512xf32> to vector<2x512xbf16>
    %c0_38 = arith.constant 0 : index
    %c0_39 = arith.constant 0 : index
    %65 = vector.load %arg13[%c0_38, %c0_39] : memref<512x128xbf16, #tpu.memory_space<vmem>>, vector<512x128xbf16>
    %cst_40 = arith.constant dense<0.000000e+00> : vector<2x128xf32>
    %66 = tpu.matmul %64, %65, %cst_40 {dimension_numbers = #tpu.dot_dimension_numbers<[1], [0], [0], [1], [0, 0, 1, 1], [], []>} : vector<2x512xbf16>, vector<512x128xbf16>, vector<2x128xf32> -> vector<2x128xf32>
    %c0_41 = arith.constant 0 : index
    %c0_42 = arith.constant 0 : index
    %67 = vector.load %arg14[%c0_41, %c0_42] : memref<1x128xf32, #tpu.memory_space<vmem>>, vector<1x128xf32>
    %68 = vector.broadcast %67 : vector<1x128xf32> to vector<2x128xf32>
    %69 = arith.mulf %66, %68 : vector<2x128xf32>
    %c0_43 = arith.constant 0 : index
    %c0_44 = arith.constant 0 : index
    %70 = vector.load %arg15[%c0_43, %c0_44] : memref<1x128xf32, #tpu.memory_space<vmem>>, vector<1x128xf32>
    %71 = vector.broadcast %70 : vector<1x128xf32> to vector<2x128xf32>
    %72 = arith.addf %69, %71 : vector<2x128xf32>
    %cst_45 = arith.constant 0.000000e+00 : f32
    %73 = vector.broadcast %cst_45 : f32 to vector<2x128xf32>
    %74 = arith.maximumf %72, %73 : vector<2x128xf32>
    %c0_46 = arith.constant 0 : index
    %c0_47 = arith.constant 0 : index
    %75 = vector.load %arg16[%c0_46, %c0_47] : memref<1x128xf32, #tpu.memory_space<vmem>>, vector<1x128xf32>
    %76 = vector.broadcast %75 : vector<1x128xf32> to vector<2x128xf32>
    %77 = arith.mulf %74, %76 : vector<2x128xf32>
    %cst_48 = arith.constant dense<0.000000e+00> : vector<2xf32>
    %78 = vector.multi_reduction <add>, %77, %cst_48 [1] : vector<2x128xf32> to vector<2xf32>
    %c0_49 = arith.constant 0 : index
    %c0_50 = arith.constant 0 : index
    %79 = vector.load %arg17[%c0_49, %c0_50] : memref<1x1xf32, #tpu.memory_space<vmem>>, vector<1x1xf32>
    %80 = vector.shape_cast %78 : vector<2xf32> to vector<1x2xf32>
    %81 = vector.broadcast %79 : vector<1x1xf32> to vector<1x2xf32>
    %82 = arith.addf %80, %81 : vector<1x2xf32>
    %83 = vector.shape_cast %82 : vector<1x2xf32> to vector<1x1x2xf32>
    %c0_51 = arith.constant 0 : index
    %c0_52 = arith.constant 0 : index
    %c0_53 = arith.constant 0 : index
    %84 = vector.load %arg18[%c0_51, %c0_52, %c0_53] : memref<1x1x2xf32, #tpu.memory_space<vmem>>, vector<1x1x2xf32>
    tpu.vector_store %arg18[%c0_51, %c0_52, %c0_53], %83 {strides = array<i32>} : memref<1x1x2xf32, #tpu.memory_space<vmem>>, vector<1x1x2xf32>,
    return
  }
  func.func @transform_0(%arg0: i32) -> (i32, i32) {
    %c0_i32 = arith.constant 0 : i32
    %c0_i32_0 = arith.constant 0 : i32
    return %arg0, %c0_i32 : i32, i32
  }
  func.func @transform_1(%arg0: i32) -> (i32, i32) {
    %c0_i32 = arith.constant 0 : i32
    %c0_i32_0 = arith.constant 0 : i32
    return %arg0, %c0_i32 : i32, i32
  }
  func.func @transform_2(%arg0: i32) -> (i32, i32, i32) {
    %c0_i32 = arith.constant 0 : i32
    %c0_i32_0 = arith.constant 0 : i32
    %c0_i32_1 = arith.constant 0 : i32
    return %arg0, %c0_i32, %c0_i32_0 : i32, i32, i32
  }
  func.func @transform_3(%arg0: i32) -> (i32, i32) {
    %c0_i32 = arith.constant 0 : i32
    %c0_i32_0 = arith.constant 0 : i32
    %c0_i32_1 = arith.constant 0 : i32
    return %c0_i32, %c0_i32_0 : i32, i32
  }
  func.func @transform_4(%arg0: i32) -> (i32, i32) {
    %c0_i32 = arith.constant 0 : i32
    %c0_i32_0 = arith.constant 0 : i32
    %c0_i32_1 = arith.constant 0 : i32
    return %c0_i32, %c0_i32_0 : i32, i32
  }
  func.func @transform_5(%arg0: i32) -> (i32, i32) {
    %c0_i32 = arith.constant 0 : i32
    %c0_i32_0 = arith.constant 0 : i32
    %c0_i32_1 = arith.constant 0 : i32
    return %c0_i32, %c0_i32_0 : i32, i32
  }
  func.func @transform_6(%arg0: i32) -> (i32, i32) {
    %c0_i32 = arith.constant 0 : i32
    %c0_i32_0 = arith.constant 0 : i32
    %c0_i32_1 = arith.constant 0 : i32
    return %c0_i32, %c0_i32_0 : i32, i32
  }
  func.func @transform_7(%arg0: i32) -> (i32, i32) {
    %c0_i32 = arith.constant 0 : i32
    %c0_i32_0 = arith.constant 0 : i32
    %c0_i32_1 = arith.constant 0 : i32
    return %c0_i32, %c0_i32_0 : i32, i32
  }
  func.func @transform_8(%arg0: i32) -> (i32, i32) {
    %c0_i32 = arith.constant 0 : i32
    %c0_i32_0 = arith.constant 0 : i32
    %c0_i32_1 = arith.constant 0 : i32
    return %c0_i32, %c0_i32_0 : i32, i32
  }
  func.func @transform_9(%arg0: i32) -> (i32, i32) {
    %c0_i32 = arith.constant 0 : i32
    %c0_i32_0 = arith.constant 0 : i32
    %c0_i32_1 = arith.constant 0 : i32
    return %c0_i32, %c0_i32_0 : i32, i32
  }
  func.func @transform_10(%arg0: i32) -> (i32, i32) {
    %c0_i32 = arith.constant 0 : i32
    %c0_i32_0 = arith.constant 0 : i32
    %c0_i32_1 = arith.constant 0 : i32
    return %c0_i32, %c0_i32_0 : i32, i32
  }
  func.func @transform_11(%arg0: i32) -> (i32, i32) {
    %c0_i32 = arith.constant 0 : i32
    %c0_i32_0 = arith.constant 0 : i32
    %c0_i32_1 = arith.constant 0 : i32
    return %c0_i32, %c0_i32_0 : i32, i32
  }
  func.func @transform_12(%arg0: i32) -> (i32, i32) {
    %c0_i32 = arith.constant 0 : i32
    %c0_i32_0 = arith.constant 0 : i32
    %c0_i32_1 = arith.constant 0 : i32
    return %c0_i32, %c0_i32_0 : i32, i32
  }
  func.func @transform_13(%arg0: i32) -> (i32, i32) {
    %c0_i32 = arith.constant 0 : i32
    %c0_i32_0 = arith.constant 0 : i32
    %c0_i32_1 = arith.constant 0 : i32
    return %c0_i32, %c0_i32_0 : i32, i32
  }
  func.func @transform_14(%arg0: i32) -> (i32, i32) {
    %c0_i32 = arith.constant 0 : i32
    %c0_i32_0 = arith.constant 0 : i32
    %c0_i32_1 = arith.constant 0 : i32
    return %c0_i32, %c0_i32_0 : i32, i32
  }
  func.func @transform_15(%arg0: i32) -> (i32, i32) {
    %c0_i32 = arith.constant 0 : i32
    %c0_i32_0 = arith.constant 0 : i32
    %c0_i32_1 = arith.constant 0 : i32
    return %c0_i32, %c0_i32_0 : i32, i32
  }
  func.func @transform_16(%arg0: i32) -> (i32, i32) {
    %c0_i32 = arith.constant 0 : i32
    %c0_i32_0 = arith.constant 0 : i32
    %c0_i32_1 = arith.constant 0 : i32
    return %c0_i32, %c0_i32_0 : i32, i32
  }
  func.func @transform_17(%arg0: i32) -> (i32, i32, i32) {
    %c0_i32 = arith.constant 0 : i32
    %c0_i32_0 = arith.constant 0 : i32
    %c0_i32_1 = arith.constant 0 : i32
    return %arg0, %c0_i32, %c0_i32_0 : i32, i32, i32
  }
}

</mosaic_0001>

<bundles_post_ra>
// kernel: tpu_custom_call.1
= control target key start
LH: loop header
LB: loop body
LE: loop exit
PB: predicated region body
PF: predicated region fallthrough
CT: control target
= control target key end

     0   :  { %s7393_s0 = inlined_call_operand.hbm [shape: f32[2,512], index: 0, kind: input, shape index: {}]   ;;  %s7394_s1 = inlined_call_operand.vmem [shape: s8[2,512], index: 1, kind: input, shape index: {}]   ;;  %s7395_s2 = inlined_call_operand.vmem [shape: f32[2,8,32], index: 2, kind: input, shape index: {}]   ;;  %s7396_s3 = inlined_call_operand.vmem [shape: bf16[32,512], index: 3, kind: input, shape index: {}]   ;;  %s7397_s4 = inlined_call_operand.vmem [shape: bf16[512,32], index: 4, kind: input, shape index: {}]   ;;  %s7398_s5 = inlined_call_operand.hbm [shape: bf16[32,1024], index: 5, kind: input, shape index: {}]   ;;  %s7399_s6 = inlined_call_operand.hbm [shape: bf16[512,1024], index: 6, kind: input, shape index: {}]   ;;  %s7400_s7 = inlined_call_operand.hbm [shape: f32[1,1024], index: 7, kind: input, shape index: {}]   ;;  %s7401_s8 = inlined_call_operand.hbm [shape: f32[1,1024], index: 8, kind: input, shape index: {}]   ;;  %s7402_s9 = inlined_call_operand.hbm [shape: bf16[1024,512], index: 9, kind: input, shape index: {}]   ;;  %s7403_s10 = inlined_call_operand.hbm [shape: f32[1,512], index: 10, kind: input, shape index: {}]   ;;  %s7404_s11 = inlined_call_operand.hbm [shape: f32[1,512], index: 11, kind: input, shape index: {}]   ;;  %s7405_s12 = inlined_call_operand.vmem [shape: bf16[512,128], index: 12, kind: input, shape index: {}]   ;;  %s7406_s13 = inlined_call_operand.vmem [shape: f32[1,128], index: 13, kind: input, shape index: {}]   ;;  %s7407_s14 = inlined_call_operand.vmem [shape: f32[1,128], index: 14, kind: input, shape index: {}]   ;;  %s7408_s15 = inlined_call_operand.vmem [shape: f32[1,128], index: 15, kind: input, shape index: {}]   ;;  %s7409_s16 = inlined_call_operand.<no memory space> [shape: f32[1,1], index: 16, kind: input, shape index: {}]   ;;  %s7410_s17 = inlined_call_operand.hbm [shape: f32[1,1,2], index: 17, kind: output, shape index: {}]  }
   0x1   :  { %7411 = sst [smem:[#allocation24_spill]] %s7393_s0  ;;  %v22_v0 = vstv %s7409_s16 }
   0x2   :  { %7412 = sst [smem:[#allocation25_spill]] %s7394_s1  ;;  %23 = vst [vmem:[#allocation2] sm:$0x1] %v22_v0 }
   0x3   :  { %24 = vsyncpa [#allocation4], 0 }
   0x4   :  { %25 = vsyncpa [#allocation7], 0 }
   0x5   :  { %26 = vsyncpa [#allocation10], 0 }
   0x6   :  { %27 = vsyncpa [#allocation13], 0 }
   0x7   :  { %28 = vsyncpa [#allocation16], 0 }
   0x8   :  { %29 = vsyncpa [#allocation5], 0  ;;  %s6777_s26 = smov [#allocation6]  }
   0x9   :  { %s53_s27 = sshll.u32 %s6777_s26, 4  ;;  %s54_s27 = int_to_ptr.vmem [resolvable:$true] %s53_s27 }
   0xa   :  { %s6593_s28 = scalar_lea.vmem %s54_s27, 2048  ;;  %p6598_p1 = scmp.lt.s32.totalorder %s54_s27, %s54_s27 }
   0xb   :  { %p6594_p0 = scmp.ne.s32.totalorder %s54_s27, %s6593_s28  ;;  %p6599_p2 = scmp.lt.s32.totalorder %s6593_s28, %s6593_s28 }
   0xd   :  { %p6600_p3 = por %p6599_p2, %p6598_p1 }
   0xf   :  { %p6601_p4 = pnand %p6600_p3, %p6594_p0 }
  0x11   :  { %6604 = shalt.err (!%p6601_p4)
}
  0x12   :  { %s6778_s29 = smov 512   ;;  %s6779_s0 = smov 32  }
  0x13   :  { %59 = dma.hbm_to_vmem [thread:$0]  %s7398_s5, 2048, %s54_s27, [#allocation7], %s6778_s29, %s6778_s29, %s6779_s0  }
  0x14   :  { %s6780_s18 = smov [#allocation9]   ;;  %s6781_s1 = smov [#allocation12]  }
  0x15   :  { %s78_s19 = sshll.u32 %s6780_s18, 4  ;;  %s97_s20 = sshll.u32 %s6781_s1, 4  ;;  %s79_s19 = int_to_ptr.vmem [resolvable:$true] %s78_s19  ;;  %s98_s20 = int_to_ptr.vmem [resolvable:$true] %s97_s20 }
  0x16   :  { %s6613_s21 = scalar_lea.vmem %s79_s19, 128  ;;  %p6618_p6 = scmp.lt.s32.totalorder %s79_s19, %s79_s19 }
  0x17   :  { %p6614_p5 = scmp.ne.s32.totalorder %s79_s19, %s6613_s21  ;;  %p6619_p7 = scmp.lt.s32.totalorder %s6613_s21, %s6613_s21 }
  0x19   :  { %p6620_p8 = por %p6619_p7, %p6618_p6 }
  0x1b   :  { %p6621_p9 = pnand %p6620_p8, %p6614_p5 }
  0x1d   :  { %6624 = shalt.err (!%p6621_p9)
}
  0x1e   :  { %81 = dma.hbm_to_vmem [thread:$0]  %s7400_s7, 128, %s79_s19, [#allocation10]  }
  0x1f   :  { %s6633_s24 = scalar_lea.vmem %s98_s20, 32768  ;;  %p6638_p11 = scmp.lt.s32.totalorder %s98_s20, %s98_s20 }
  0x20   :  { %p6634_p10 = scmp.ne.s32.totalorder %s98_s20, %s6633_s24  ;;  %p6639_p12 = scmp.lt.s32.totalorder %s6633_s24, %s6633_s24 }
  0x22   :  { %p6640_p13 = por %p6639_p12, %p6638_p11 }
  0x24   :  { %p6641_p0 = pnand %p6640_p13, %p6634_p10 }
  0x26   :  { %6644 = shalt.err (!%p6641_p0)
}
  0x27   :  { %s6782_s5 = smov 256   ;;  %s6783_s25 = smov 16  }
  0x28   :  { %103 = dma.hbm_to_vmem [thread:$0]  %s7402_s9, 32768, %s98_s20, [#allocation13], %s6782_s5, %s6782_s5, %s6783_s25  }
  0x29   :  { %s6784_s28 = smov [#allocation3]   ;;  %s6785_s30 = smov [#allocation8]  }
  0x2a   :  { %s36_s16 = sshll.u32 %s6784_s28, 4  ;;  %s65_s18 = sshll.u32 %s6785_s30, 4  ;;  %s37_s16 = int_to_ptr.vmem [resolvable:$true] %s36_s16  ;;  %s66_s18 = int_to_ptr.vmem [resolvable:$true] %s65_s18 }
  0x2b   :  { %s6653_s7 = scalar_lea.vmem %s37_s16, 128  ;;  %p6658_p2 = scmp.lt.s32.totalorder %s37_s16, %s37_s16 }
  0x2c   :  { %p6654_p1 = scmp.ne.s32.totalorder %s37_s16, %s6653_s7  ;;  %p6659_p3 = scmp.lt.s32.totalorder %s6653_s7, %s6653_s7 }
  0x2e   :  { %p6660_p4 = por %p6659_p3, %p6658_p2 }
  0x30   :  { %p6661_p5 = pnand %p6660_p4, %p6654_p1 }
  0x32   :  { %6664 = shalt.err (!%p6661_p5)
}
  0x33   :  { %s7413_s21 = sld [smem:[#allocation24_spill]]  ;;  %s6673_s22 = scalar_lea.vmem %s66_s18, 32768 }
  0x34   :  { %p6674_p6 = scmp.ne.s32.totalorder %s66_s18, %s6673_s22  ;;  %p6678_p7 = scmp.lt.s32.totalorder %s66_s18, %s66_s18 }
  0x35   :  { %p6679_p8 = scmp.lt.s32.totalorder %s6673_s22, %s6673_s22 }
  0x37   :  { %p6680_p9 = por %p6679_p8, %p6678_p7 }
  0x39   :  { %39 = dma.hbm_to_vmem [thread:$0]  %s7413_s21, 128, %s37_s16, [#allocation4]  }
  0x3a   :  { %p6681_p10 = pnand %p6680_p9, %p6674_p6 }
  0x3c   :  { %6684 = shalt.err (!%p6681_p10)
}
  0x3d   :  { %71 = dma.hbm_to_vmem [thread:$0]  %s7399_s6, 32768, %s66_s18, [#allocation7], %s6778_s29, %s6778_s29, %s6779_s0  }
  0x3e   :  { %s6786_s23 = smov [#allocation11]   ;;  %s6787_s5 = smov [#allocation14]  }
  0x3f   :  { %s88_s24 = sshll.u32 %s6786_s23, 4  ;;  %s110_s25 = sshll.u32 %s6787_s5, 4  ;;  %s89_s24 = int_to_ptr.vmem [resolvable:$true] %s88_s24  ;;  %s111_s25 = int_to_ptr.vmem [resolvable:$true] %s110_s25 }
  0x40   :  { %s6693_s26 = scalar_lea.vmem %s89_s24, 128  ;;  %p6698_p12 = scmp.lt.s32.totalorder %s89_s24, %s89_s24 }
  0x41   :  { %p6694_p11 = scmp.ne.s32.totalorder %s89_s24, %s6693_s26  ;;  %p6699_p13 = scmp.lt.s32.totalorder %s6693_s26, %s6693_s26 }
  0x43   :  { %p6700_p0 = por %p6699_p13, %p6698_p12 }
  0x45   :  { %p6701_p1 = pnand %p6700_p0, %p6694_p11 }
  0x47   :  { %6704 = shalt.err (!%p6701_p1)
}
  0x48   :  { %91 = dma.hbm_to_vmem [thread:$0]  %s7401_s8, 128, %s89_s24, [#allocation10]  }
  0x49   :  { %s6713_s16 = scalar_lea.vmem %s111_s25, 64  ;;  %p6718_p3 = scmp.lt.s32.totalorder %s111_s25, %s111_s25 }
  0x4a   :  { %p6714_p2 = scmp.ne.s32.totalorder %s111_s25, %s6713_s16  ;;  %p6719_p4 = scmp.lt.s32.totalorder %s6713_s16, %s6713_s16 }
  0x4c   :  { %p6720_p5 = por %p6719_p4, %p6718_p3 }
  0x4e   :  { %p6721_p6 = pnand %p6720_p5, %p6714_p2 }
  0x50   :  { %6724 = shalt.err (!%p6721_p6)
}
  0x51   :  { %113 = dma.hbm_to_vmem [thread:$0]  %s7403_s10, 64, %s111_s25, [#allocation13]  }
  0x52   :  { %s6788_s0 = smov [#allocation15]  }
  0x53   :  { %s120_s30 = sshll.u32 %s6788_s0, 4  ;;  %s121_s30 = int_to_ptr.vmem [resolvable:$true] %s120_s30 }
  0x54   :  { %s6733_s18 = scalar_lea.vmem %s121_s30, 64  ;;  %p6738_p8 = scmp.lt.s32.totalorder %s121_s30, %s121_s30 }
  0x55   :  { %p6734_p7 = scmp.ne.s32.totalorder %s121_s30, %s6733_s18  ;;  %p6739_p9 = scmp.lt.s32.totalorder %s6733_s18, %s6733_s18 }
  0x57   :  { %p6740_p10 = por %p6739_p9, %p6738_p8 }
  0x59   :  { %p6741_p11 = pnand %p6740_p10, %p6734_p7 }
  0x5b   :  { %6744 = shalt.err (!%p6741_p11)
}
  0x5c   :  { %123 = dma.hbm_to_vmem [thread:$0]  %s7404_s11, 64, %s121_s30, [#allocation16]  }
  0x5d   :  { %6765 = dma.done.wait [#allocation4], 128  }
  0x5e   :  { %6766 = vsyncadd [#allocation4], 4294967168 }
  0x5f   :  { %6767 = dma.done.wait [#allocation7], 34816  }
  0x60   :  { %6768 = vsyncadd [#allocation7], 4294932480 }
  0x61   :  { %6769 = dma.done.wait [#allocation10], 256  }
  0x62   :  { %6770 = vsyncadd [#allocation10], 4294967040 }
  0x63   :  { %6771 = dma.done.wait [#allocation13], 32832  }
  0x64   :  { %6772 = vsyncadd [#allocation13], 4294934464 }
  0x65   :  { %6773 = dma.done.wait [#allocation16], 64  }
  0x66   :  { %6774 = vsyncadd [#allocation16], 4294967232  ;;  %v6789_v1 = vmov 0   ;;  %v6111_v2 = vld [vmem:[%s7397_s4 + $0x78] sm:$0xff]   ;;  %v6115_v6 = vld [vmem:[%s7397_s4 + $0x70] sm:$0xff]   ;;  %v174_v32 = vlaneseq  ;;  %s7414_s18 = sld [smem:[#allocation25_spill]] }
  0x67   :  { %6109 = vset.pattern.permute.xlu1 %v6789_v1  ;;  %6110 = vset.pattern.permute.xlu0 %v6789_v1  ;;  %v6112_v3 = vld [vmem:[%s7397_s4 + $0xf8] sm:$0xff]   ;;  %v6116_v7 = vld [vmem:[%s7397_s4 + $0xf0] sm:$0xff]   ;;  %v6119_v10 = vld [vmem:[%s7397_s4 + $0x68] sm:$0xff]   ;;  %v6790_v30 = vmov 1983009808   ;;  %vm190_vm1 = vcmask 261120  }
  0x68   :  { %6006 = vmatprep.subr.bf16.mxu0 %v6111_v2  ;;  %v6113_v4 = vld [vmem:[%s7397_s4 + $0x38] sm:$0xff]   ;;  %6028 = vmatprep.subr.bf16.mxu1 %v6112_v3  ;;  %v6117_v8 = vld [vmem:[%s7397_s4 + $0x30] sm:$0xff]   ;;  %v6120_v11 = vld [vmem:[%s7397_s4 + $0xe8] sm:$0xff]   ;;  %v172_v31 = vunpack.c.l.s4 %v6790_v30  ;;  %v7014_v38 = vshrl.u32 %v174_v32, 7  ;;  %vm582_vm5 = vcmask 1041409   ;;  %vm714_vm6 = vcmask 254976  }
  0x69   :  { %v6114_v5 = vld [vmem:[%s7397_s4 + $0xb8] sm:$0xff]   ;;  %6007 = vmatpush3.bf16.msra.mxu0 %v6113_v4  ;;  %v6118_v9 = vld [vmem:[%s7397_s4 + $0xb0] sm:$0xff]   ;;  %v6121_v12 = vld [vmem:[%s7397_s4 + $0x28] sm:$0xff]   ;;  %vm734_vm7 = vcmask 1041408   ;;  %vm5376_vm8 = vcmask 8192  }
  0x6a   :  { %6029 = vmatpush3.bf16.msra.mxu1 %v6114_v5  ;;  %6008 = vmatprep.subr.bf16.mxu0 %v6115_v6  ;;  %v6122_v13 = vld [vmem:[%s7397_s4 + $0xa8] sm:$0xff]   ;;  %v6123_v14 = vld [vmem:[%s7397_s4 + $0x60] sm:$0xff]   ;;  %v6127_v18 = vld [vmem:[%s7397_s4 + $0x58] sm:$0xff]   ;;  %v173_v37 = vunpack.c.0.s8 %v172_v31 }
  0x6b   :  { %6030 = vmatprep.subr.bf16.mxu1 %v6116_v7  ;;  %v6124_v15 = vld [vmem:[%s7397_s4 + $0xe0] sm:$0xff]   ;;  %v6128_v19 = vld [vmem:[%s7397_s4 + $0xd8] sm:$0xff]   ;;  %v6131_v22 = vld [vmem:[%s7397_s4 + $0x50] sm:$0xff]  }
  0x6c   :  { %v6125_v16 = vld [vmem:[%s7397_s4 + $0x20] sm:$0xff]   ;;  %v6129_v20 = vld [vmem:[%s7397_s4 + $0x18] sm:$0xff]   ;;  %v6132_v23 = vld [vmem:[%s7397_s4 + $0xd0] sm:$0xff]   ;;  %v7024_v44 = vsub.s32 %v173_v37, %v7014_v38 }
  0x6d   :  { %6009 = vmatpush3.bf16.msra.mxu0 %v6117_v8  ;;  %v6126_v17 = vld [vmem:[%s7397_s4 + $0xa0] sm:$0xff]   ;;  %v6130_v21 = vld [vmem:[%s7397_s4 + $0x98] sm:$0xff]   ;;  %v6133_v24 = vld [vmem:[%s7397_s4 + $0x10] sm:$0xff]  }
  0x6e   :  { %6031 = vmatpush3.bf16.msra.mxu1 %v6118_v9  ;;  %6010 = vmatprep.subr.bf16.mxu0 %v6119_v10  ;;  %v6134_v25 = vld [vmem:[%s7397_s4 + $0x90] sm:$0xff]   ;;  %v6135_v26 = vld [vmem:[%s7397_s4 + $0x48] sm:$0xff]   ;;  %v6139_v33 = vld [vmem:[%s7397_s4 + $0x40] sm:$0xff]  }
  0x6f   :  { %6032 = vmatprep.subr.bf16.mxu1 %v6120_v11  ;;  %v6136_v27 = vld [vmem:[%s7397_s4 + $0xc8] sm:$0xff]   ;;  %v6140_v34 = vld [vmem:[%s7397_s4 + $0xc0] sm:$0xff]  }
  0x70   :  { %v6137_v28 = vld [vmem:[%s7397_s4 + $0x8] sm:$0xff]   ;;  %v6141_v35 = vld [vmem:[%s7397_s4] sm:$0xff]  }
  0x71   :  { %6011 = vmatpush3.bf16.msra.mxu0 %v6121_v12  ;;  %v6138_v29 = vld [vmem:[%s7397_s4 + $0x88] sm:$0xff]   ;;  %v6142_v36 = vld [vmem:[%s7397_s4 + $0x80] sm:$0xff]  }
  0x72   :  { %6033 = vmatpush3.bf16.msra.mxu1 %v6122_v13  ;;  %6012 = vmatprep.subr.bf16.mxu0 %v6123_v14  ;;  %v161_v39 = vld [vmem:[%s7414_s18] sm:$0xf]  ;;  %v6145_v40 = vld [vmem:[%s7396_s3 + $0x24] ss:$16 sps:$4 sm:$0xff]   ;;  %v6148_v45 = vld [vmem:[%s7396_s3 + $0x2c] ss:$16 sps:$4 sm:$0xff]  }
  0x73   :  { %6034 = vmatprep.subr.bf16.mxu1 %v6124_v15  ;;  %vm162_vm0 = vnez %v161_v39  ;;  %v188_v46 = vld [vmem:[%s7395_s2] sm:$0xff]  ;;  %v189_v49 = vld [vmem:[%s7395_s2 + $0x8] sm:$0xff] }
  0x74   :  { %v164_v41 = vsel %vm162_vm0, 16843009, %v6789_v1  ;;  %v191_v50 = vsel %vm190_vm1, %v188_v46, 0.0  ;;  %v163_v51 = vld [vmem:[#allocation3] sm:$0xff]  ;;  %v198_v55 = vsel %vm190_vm1, %v189_v49, 0.0 }
  0x75   :  { %6013 = vmatpush3.bf16.msra.mxu0 %v6125_v16  ;;  %v165_v42 = vunpack.c.0.s8 %v164_v41  ;;  %v166_v43 = vunpack.c.1.s8 %v164_v41  ;;  %v192_v54 = vrot.slane %v191_v50, 4  ;;  %v199_v56 = vrot.slane %v198_v55, 4  ;;  %v6143_v6 = vld [vmem:[%s7396_s3 + $0x20] ss:$16 sps:$4 sm:$0xff]   ;;  %v6151_v9 = vld [vmem:[%s7396_s3 + $0x4] ss:$16 sps:$4 sm:$0xff]  }
  0x76   :  { %6035 = vmatpush3.bf16.msra.mxu1 %v6126_v17  ;;  %6014 = vmatprep.subr.bf16.mxu0 %v6127_v18  ;;  %v6146_v13 = vld [vmem:[%s7396_s3 + $0x28] ss:$16 sps:$4 sm:$0xff]   ;;  %v6154_v16 = vld [vmem:[%s7396_s3 + $0xc] ss:$16 sps:$4 sm:$0xff]  }
  0x77   :  { %6036 = vmatprep.subr.bf16.mxu1 %v6128_v19  ;;  %vm167_vm2 = vcmp.ne.s32.totalorder %v165_v42, 0  ;;  %vm168_vm3 = vcmp.ne.s32.totalorder %v166_v43, 0  ;;  %v193_v58 = vadd.f32 %v192_v54, %v191_v50  ;;  %v200_v59 = vadd.f32 %v199_v56, %v198_v55  ;;  %v6149_v19 = vld [vmem:[%s7396_s3] ss:$16 sps:$4 sm:$0xff]  }
  0x78   :  { %v169_v47 = vsel %vm167_vm2, 1, %v6789_v1  ;;  %v170_v48 = vsel %vm168_vm3, 1, %v6789_v1 }
  0x79   :  { %6015 = vmatpush3.bf16.msra.mxu0 %v6129_v20  ;;  %v177_v52 = vrot.slane %v169_v47, %v7024_v44  ;;  %v184_v53 = vrot.slane %v170_v48, %v7024_v44  ;;  %v194_v60 = vrot.slane %v193_v58, 2  ;;  %v201_v62 = vrot.slane %v200_v59, 2 }
  0x7a   :  { %6037 = vmatpush3.bf16.msra.mxu1 %v6130_v21  ;;  %6016 = vmatprep.subr.bf16.mxu0 %v6131_v22  ;;  %v6152_v22 = vld [vmem:[%s7396_s3 + $0x8] ss:$16 sps:$4 sm:$0xff]  }
  0x7b   :  { %6038 = vmatprep.subr.bf16.mxu1 %v6132_v23  ;;  %v185_v57 = vcombine.low %v177_v52, %v184_v53  ;;  %v195_v2 = vadd.f32 %v194_v60, %v193_v58  ;;  %v202_v3 = vadd.f32 %v201_v62, %v200_v59 }
  0x7d   :  { %6017 = vmatpush3.bf16.msra.mxu0 %v6133_v24  ;;  %vm186_vm4 = vcmp.ne.s32.totalorder %v185_v57, 0  ;;  %v196_v7 = vrot.slane %v195_v2, 1  ;;  %v203_v10 = vrot.slane %v202_v3, 1 }
  0x7e   :  { %6039 = vmatpush3.bf16.msra.mxu1 %v6134_v25  ;;  %6018 = vmatprep.subr.bf16.mxu0 %v6135_v26  ;;  %v7041_v61 = vsel %vm186_vm4, %v163_v51, 0.0 }
  0x7f   :  { %6040 = vmatprep.subr.bf16.mxu1 %v6136_v27  ;;  %v213_v63 = vrot.slane %v7041_v61, %v7024_v44  ;;  %v206_v0 = vcombine.high %v7041_v61, %v7041_v61  ;;  %v7057_v14 = vadd.f32 %v196_v7, %v195_v2  ;;  %v7062_v17 = vadd.f32 %v203_v10, %v202_v3  ;;  %v1019_v2 = vld [vmem:[#allocation8 + $0x5c0] sm:$0xff] }
  0x80   :  { %v887_v7 = vld [vmem:[#allocation8 + $0x1a0] sm:$0xff] }
  0x81   :  { %6019 = vmatpush3.bf16.msra.mxu0 %v6137_v28  ;;  %v221_v4 = vcombine.high %v213_v63, %v213_v63  ;;  %v220_v5 = vrot.slane %v206_v0, %v7024_v44  ;;  %v227_v8 = vpack.c.bf16 %v213_v63, %v213_v63  ;;  %v568_v20 = vpack.c.bf16 %v7057_v14, %v7057_v14  ;;  %v891_v63 = vld [vmem:[#allocation8 + $0x1c0] sm:$0xff] }
  0x82   :  { %6041 = vmatpush3.bf16.msra.mxu1 %v6138_v29  ;;  %6020 = vmatprep.subr.bf16.mxu0 %v6139_v33  ;;  %v569_v21 = vpack.c.bf16 %v7062_v17, %v7062_v17  ;;  %v895_v0 = vld [vmem:[#allocation8 + $0x1e0] sm:$0xff] }
  0x83   :  { %6042 = vmatprep.subr.bf16.mxu1 %v6140_v34  ;;  %v228_v11 = vpack.c.bf16 %v221_v4, %v221_v4  ;;  %v222_v12 = vcombine.high %v220_v5, %v220_v5  ;;  %v229_v15 = vpack.c.bf16 %v220_v5, %v220_v5  ;;  %v580_v23 = vunpack.c.l.b16 %v568_v20  ;;  %v1023_v5 = vld [vmem:[#allocation8 + $0x5e0] sm:$0xff] }
  0x84   :  { %v581_v24 = vunpack.c.l.b16 %v569_v21  ;;  %v5495_v3 = vcombine.low %v891_v63, %v895_v0  ;;  %v5496_v4 = vcombine.high %v891_v63, %v895_v0 }
  0x85   :  { %6021 = vmatpush3.bf16.msra.mxu0 %v6141_v35  ;;  %519 = vmatprep.mubr.bf16.mxu0 %v228_v11  ;;  %v230_v18 = vpack.c.bf16 %v222_v12, %v222_v12  ;;  %v1011_v11 = vld [vmem:[#allocation8 + $0x580] sm:$0xff] }
  0x86   :  { %6043 = vmatpush3.bf16.msra.mxu1 %v6142_v36  ;;  %640 = vmatprep.subr.bf16.mxu0 %v6145_v40  ;;  %v583_v25 = vsel %vm582_vm5, %v581_v24, %v580_v23  ;;  %v1015_v12 = vld [vmem:[#allocation8 + $0x5a0] sm:$0xff] }
  0x87   :  { %681 = vmatprep.subr.bf16.mxu1 %v6148_v45  ;;  %559 = vmatprep.mubr.bf16.mxu1 %v230_v18  ;;  %v584_v26 = vpack.c.b16 %v583_v25, %v583_v25  ;;  %v1003_v18 = vld [vmem:[#allocation8 + $0x540] sm:$0xff]  ;;  %v5615_v21 = vcombine.low %v1011_v11, %v1015_v12 }
  0x88   :  { %520 = vmatmul.mubr.bf16.vlgmr.msra.gmra.mxu0 %v227_v8  ;;  %v5623_v8 = vcombine.low %v1019_v2, %v1023_v5  ;;  %v867_v24 = vld [vmem:[#allocation8 + $0x100] sm:$0xff] }
  0x89   :  { %641 = vmatpush1.bf16.msra.mxu0 %v6143_v6  ;;  %560 = vmatmul.mubr.bf16.vlgmr.msra.gmra.mxu1 %v229_v15  ;;  %v883_v6 = vld [vmem:[#allocation8 + $0x180] sm:$0xff]  ;;  %v5616_v15 = vcombine.high %v1011_v11, %v1015_v12 }
  0x8a   :  { %642 = vmatprep.subr.bf16.mxu0 %v6151_v9  ;;  %682 = vmatpush1.bf16.msra.mxu1 %v6146_v13  ;;  %v5624_v9 = vcombine.high %v1019_v2, %v1023_v5  ;;  %v5488_v10 = vcombine.high %v883_v6, %v887_v7  ;;  %v875_v13 = vld [vmem:[#allocation8 + $0x140] sm:$0xff]  ;;  %v5487_v20 = vcombine.low %v883_v6, %v887_v7 }
  0x8b   :  { %660 = vmatprep.mubr.bf16.mxu0 %v6789_v1  ;;  %683 = vmatprep.subr.bf16.mxu1 %v6154_v16  ;;  %v879_v16 = vld [vmem:[#allocation8 + $0x160] sm:$0xff] }
  0x8c   :  { %701 = vmatprep.mubr.bf16.mxu1 %v6789_v1  ;;  %v871_v25 = vld [vmem:[#allocation8 + $0x120] sm:$0xff] }
  0x8d   :  { %643 = vmatpush1.bf16.msra.mxu0 %v6149_v19  ;;  %v1007_v19 = vld [vmem:[#allocation8 + $0x560] sm:$0xff] }
  0x8e   :  { %684 = vmatpush1.bf16.msra.mxu1 %v6152_v22  ;;  %2371 = vmatprep.subr.bf16.mxu0 %v5496_v4  ;;  %v5480_v22 = vcombine.high %v875_v13, %v879_v16  ;;  %v5608_v23 = vcombine.high %v1003_v18, %v1007_v19  ;;  %v851_v5 = vld [vmem:[#allocation8 + $0x80] sm:$0xff] }
  0x8f   :  { %2412 = vmatprep.subr.bf16.mxu1 %v5624_v9  ;;  %v855_v6 = vld [vmem:[#allocation8 + $0xa0] sm:$0xff] }
  0x90   :  { %5437 = vmatmul.mubr.msk.bf16.vlgmr.msra.gmra.mxu0 %vm190_vm1, %v584_v26  ;;  %v979_v11 = vld [vmem:[#allocation8 + $0x480] sm:$0xff] }
  0x91   :  { %5438 = vmatmul.mubr.msk.bf16.vlgmr.msra.gmra.mxu1 %vm190_vm1, %v584_v26  ;;  %2372 = vmatpush1.bf16.msra.mxu0 %v5495_v3  ;;  %v995_v26 = vld [vmem:[#allocation8 + $0x500] sm:$0xff] }
  0x92   :  { %2413 = vmatpush1.bf16.msra.mxu1 %v5623_v8  ;;  %2373 = vmatprep.subr.bf16.mxu0 %v5488_v10  ;;  %v5456_v8 = vcombine.high %v851_v5, %v855_v6  ;;  %v5455_v10 = vcombine.low %v851_v5, %v855_v6  ;;  %v983_v12 = vld [vmem:[#allocation8 + $0x4a0] sm:$0xff] }
  0x93   :  { %2414 = vmatprep.subr.bf16.mxu1 %v5616_v15  ;;  %v5584_v15 = vcombine.high %v979_v11, %v983_v12  ;;  %v1059_v5 = vld [vmem:[#allocation8 + $0x700] sm:$0xff] }
  0x95   :  { %2374 = vmatpush1.bf16.msra.mxu0 %v5487_v20 }
  0x96   :  { %2415 = vmatpush1.bf16.msra.mxu1 %v5615_v21  ;;  %2375 = vmatprep.subr.bf16.mxu0 %v5480_v22  ;;  %v971_v22 = vld [vmem:[#allocation8 + $0x440] sm:$0xff] }
  0x97   :  { %2416 = vmatprep.subr.bf16.mxu1 %v5608_v23  ;;  %v975_v23 = vld [vmem:[#allocation8 + $0x460] sm:$0xff] }
 0x148   :  { %v6022_v27 = vpop.f32.mrf.mxu0 }
 0x149   :  { %v6044_v28 = vpop.f32.mrf.mxu1 }
 0x14a   :  { %v6023_v29 = vpop.f32.mrf.mxu0 }
 0x14b   :  { %v6024_v30 = vadd.f32 %v6023_v29, %v6022_v27  ;;  %v6045_v31 = vpop.f32.mrf.mxu1  ;;  %v999_v27 = vld [vmem:[#allocation8 + $0x520] sm:$0xff]  ;;  %v5607_v29 = vcombine.low %v1003_v18, %v1007_v19 }
 0x14c   :  { %v6025_v33 = vpop.f32.mrf.mxu0  ;;  %v6046_v34 = vadd.f32 %v6045_v31, %v6044_v28  ;;  %v5479_v28 = vcombine.low %v875_v13, %v879_v16  ;;  %v5600_v31 = vcombine.high %v995_v26, %v999_v27  ;;  %v5583_v16 = vcombine.low %v979_v11, %v983_v12  ;;  %v843_v18 = vld [vmem:[#allocation8 + $0x40] sm:$0xff] }
 0x14d   :  { %v6047_v35 = vpop.f32.mrf.mxu1  ;;  %v859_v33 = vld [vmem:[#allocation8 + $0xc0] sm:$0xff]  ;;  %2417 = vmatpush1.bf16.msra.mxu1 %v5607_v29 }
 0x14e   :  { %v6026_v36 = vpop.f32.mrf.mxu0  ;;  %v7079_v37 = vadd.f32 %v6046_v34, %v6024_v30  ;;  %v5472_v30 = vcombine.high %v867_v24, %v871_v25  ;;  %v863_v34 = vld [vmem:[#allocation8 + $0xe0] sm:$0xff]  ;;  %2376 = vmatpush1.bf16.msra.mxu0 %v5479_v28  ;;  %2418 = vmatprep.subr.bf16.mxu1 %v5600_v31 }
 0x14f   :  { %v6048_v39 = vpop.f32.mrf.mxu1  ;;  %v987_v35 = vld [vmem:[#allocation8 + $0x4c0] sm:$0xff] }
 0x150   :  { %v7081_v40 = vpop.f32.mrf.mxu0  ;;  %v567_v42 = vmax.f32 %v7079_v37, 0.0  ;;  %v991_v36 = vld [vmem:[#allocation8 + $0x4e0] sm:$0xff]  ;;  %v5471_v39 = vcombine.low %v867_v24, %v871_v25  ;;  %2377 = vmatprep.subr.bf16.mxu0 %v5472_v30  ;;  %v5576_v24 = vcombine.high %v971_v22, %v975_v23  ;;  %v5575_v25 = vcombine.low %v971_v22, %v975_v23 }
 0x151   :  { %v710_v41 = vmax.f32 %v7081_v40, 0.0  ;;  %v7085_v43 = vpop.f32.mrf.mxu1  ;;  %v847_v19 = vld [vmem:[#allocation8 + $0x60] sm:$0xff] }
 0x152   :  { %v7087_v45 = vpop.f32.mrf.mxu0  ;;  %v712_v46 = vmax.f32 %v7085_v43, 0.0  ;;  %v715_v48 = vsel %vm714_vm6, %v567_v42, -inf  ;;  %2378 = vmatpush1.bf16.msra.mxu0 %v5471_v39  ;;  %v5448_v20 = vcombine.high %v843_v18, %v847_v19  ;;  %v5447_v21 = vcombine.low %v843_v18, %v847_v19  ;;  %v963_v30 = vld [vmem:[#allocation8 + $0x400] sm:$0xff] }
 0x153   :  { %v711_v47 = vmax.f32 %v7087_v45, 0.0  ;;  %v7094_v49 = vpop.f32.mrf.mxu1  ;;  %716 = vmax.xlane.f32.xlu1 %v715_v48  ;;  %v735_v51 = vsel %vm734_vm7, %v710_v41, -inf  ;;  %v5599_v48 = vcombine.low %v995_v26, %v999_v27  ;;  %v835_v26 = vld [vmem:[#allocation8] sm:$0xff] }
 0x154   :  { %v666_v50 = vpop.f32.mrf.mxu0  ;;  %v713_v53 = vmax.f32 %v7094_v49, 0.0  ;;  %v737_v57 = vsel %vm734_vm7, %v712_v46, -inf  ;;  %v839_v27 = vld [vmem:[#allocation8 + $0x20] sm:$0xff] }
 0x155   :  { %v736_v52 = vsel %vm734_vm7, %v711_v47, -inf  ;;  %v707_v54 = vpop.f32.mrf.mxu1  ;;  %v5464_v50 = vcombine.high %v859_v33, %v863_v34  ;;  %2419 = vmatpush1.bf16.msra.mxu1 %v5599_v48  ;;  %v5440_v28 = vcombine.high %v835_v26, %v839_v27  ;;  %v5439_v29 = vcombine.low %v835_v26, %v839_v27  ;;  %v967_v31 = vld [vmem:[#allocation8 + $0x420] sm:$0xff] }
 0x156   :  { %v667_v55 = vpop.f32.mrf.mxu0  ;;  %v739_v56 = vmax.f32 %v735_v51, %v736_v52  ;;  %v738_v58 = vsel %vm734_vm7, %v713_v53, -inf  ;;  %v5592_v51 = vcombine.high %v987_v35, %v991_v36  ;;  %v5463_v52 = vcombine.low %v859_v33, %v863_v34  ;;  %v915_v19 = vld [vmem:[#allocation8 + $0x280] sm:$0xff] }
 0x157   :  { %v708_v59 = vpop.f32.mrf.mxu1  ;;  %v740_v60 = vmax.f32 %v737_v57, %v738_v58  ;;  %2379 = vmatprep.subr.bf16.mxu0 %v5464_v50  ;;  %v5591_v54 = vcombine.low %v987_v35, %v991_v36  ;;  %v5568_v33 = vcombine.high %v963_v30, %v967_v31  ;;  %v5567_v34 = vcombine.low %v963_v30, %v967_v31  ;;  %v955_v35 = vld [vmem:[#allocation8 + $0x3c0] sm:$0xff] }
 0x158   :  { %2420 = vmatprep.subr.bf16.mxu1 %v5592_v51  ;;  %2380 = vmatpush1.bf16.msra.mxu0 %v5463_v52  ;;  %v959_v36 = vld [vmem:[#allocation8 + $0x3e0] sm:$0xff] }
 0x159   :  { %v741_v62 = vmax.f32 %v739_v56, %v740_v60  ;;  %2421 = vmatpush1.bf16.msra.mxu1 %v5591_v54  ;;  %2381 = vmatprep.subr.bf16.mxu0 %v5456_v8  ;;  %v5560_v39 = vcombine.high %v955_v35, %v959_v36  ;;  %v5559_v48 = vcombine.low %v955_v35, %v959_v36  ;;  %v1083_v50 = vld [vmem:[#allocation8 + $0x7c0] sm:$0xff] }
 0x15a   :  { %2422 = vmatprep.subr.bf16.mxu1 %v5584_v15  ;;  %v1087_v51 = vld [vmem:[#allocation8 + $0x7e0] sm:$0xff] }
 0x15b   :  { %742 = vmax.xlane.f32.xlu0 %v741_v62  ;;  %v5688_v52 = vcombine.high %v1083_v50, %v1087_v51  ;;  %v5687_v54 = vcombine.low %v1083_v50, %v1087_v51  ;;  %v1055_v15 = vld [vmem:[#allocation8 + $0x6e0] sm:$0xff] }
 0x15c   :  { %2382 = vmatpush1.bf16.msra.mxu0 %v5455_v10  ;;  %v927_v10 = vld [vmem:[#allocation8 + $0x2e0] sm:$0xff] }
 0x15d   :  { %2423 = vmatpush1.bf16.msra.mxu1 %v5583_v16  ;;  %2383 = vmatprep.subr.bf16.mxu0 %v5448_v20  ;;  %v919_v20 = vld [vmem:[#allocation8 + $0x2a0] sm:$0xff] }
 0x15e   :  { %2424 = vmatprep.subr.bf16.mxu1 %v5576_v24  ;;  %v1043_v23 = vld [vmem:[#allocation8 + $0x680] sm:$0xff]  ;;  %v5519_v30 = vcombine.low %v915_v19, %v919_v20 }
 0x15f   :  { %v1047_v24 = vld [vmem:[#allocation8 + $0x6a0] sm:$0xff] }
 0x160   :  { %2384 = vmatpush1.bf16.msra.mxu0 %v5447_v21  ;;  %v907_v27 = vld [vmem:[#allocation8 + $0x240] sm:$0xff]  ;;  %v5647_v35 = vcombine.low %v1043_v23, %v1047_v24 }
 0x161   :  { %2425 = vmatpush1.bf16.msra.mxu1 %v5575_v25  ;;  %2385 = vmatprep.subr.bf16.mxu0 %v5440_v28  ;;  %v5520_v25 = vcombine.high %v915_v19, %v919_v20  ;;  %v911_v28 = vld [vmem:[#allocation8 + $0x260] sm:$0xff]  ;;  %v1016_v19 = vld [vmem:[#allocation8 + $0x5a8] sm:$0xff] }
 0x162   :  { %2426 = vmatprep.subr.bf16.mxu1 %v5568_v33  ;;  %v1035_v31 = vld [vmem:[#allocation8 + $0x640] sm:$0xff]  ;;  %v5511_v50 = vcombine.low %v907_v27, %v911_v28 }
 0x163   :  { %v1039_v33 = vld [vmem:[#allocation8 + $0x660] sm:$0xff] }
 0x164   :  { %2386 = vmatpush1.bf16.msra.mxu0 %v5439_v29  ;;  %v5648_v29 = vcombine.high %v1043_v23, %v1047_v24  ;;  %v899_v36 = vld [vmem:[#allocation8 + $0x200] sm:$0xff]  ;;  %v880_v23 = vld [vmem:[#allocation8 + $0x168] sm:$0xff] }
 0x165   :  { %2427 = vmatpush1.bf16.msra.mxu1 %v5567_v34  ;;  %2387 = vmatprep.subr.bf16.mxu0 %v5560_v39  ;;  %v5512_v34 = vcombine.high %v907_v27, %v911_v28  ;;  %v903_v39 = vld [vmem:[#allocation8 + $0x220] sm:$0xff]  ;;  %v1008_v27 = vld [vmem:[#allocation8 + $0x568] sm:$0xff] }
 0x166   :  { %2428 = vmatprep.subr.bf16.mxu1 %v5688_v52  ;;  %v1027_v51 = vld [vmem:[#allocation8 + $0x600] sm:$0xff] }
 0x167   :  { %v1031_v52 = vld [vmem:[#allocation8 + $0x620] sm:$0xff] }
 0x168   :  { %2388 = vmatpush2.bf16.msra.mxu0 %v5559_v48  ;;  %v5640_v48 = vcombine.high %v1035_v31, %v1039_v33 }
 0x169   :  { %2429 = vmatpush2.bf16.msra.mxu1 %v5687_v54  ;;  %v5504_v54 = vcombine.high %v899_v36, %v903_v39 }
 0x1dc   :  { %v717_v55 = vpop.xlane.xlu1 %716 }
 0x1dd   :  { %v718_v56 = vsub.f32 %v567_v42, %v717_v55  ;;  %v947_v55 = vld [vmem:[#allocation8 + $0x380] sm:$0xff] }
 0x1df   :  { %v719_v57 = vmul.f32 1.442695, %v718_v56  ;;  %v951_v56 = vld [vmem:[#allocation8 + $0x3a0] sm:$0xff] }
 0x1e1   :  { %6571 = vpow2.f32 %v719_v57  ;;  %v5552_v57 = vcombine.high %v947_v55, %v951_v56 }
 0x1e3   :  { %2389 = vmatprep.subr.bf16.mxu0 %v5552_v57  ;;  %v5503_v57 = vcombine.low %v899_v36, %v903_v39  ;;  %v1000_v36 = vld [vmem:[#allocation8 + $0x528] sm:$0xff] }
 0x1e4   :  { %v743_v58 = vpop.xlane.xlu0 %742 }
 0x1e5   :  { %v744_v59 = vsub.f32 %v710_v41, %v743_v58  ;;  %v745_v60 = vsub.f32 %v711_v47, %v743_v58  ;;  %v746_v62 = vsub.f32 %v712_v46, %v743_v58  ;;  %v747_v63 = vsub.f32 %v713_v53, %v743_v58 }
 0x1e6   :  { %v5551_v58 = vcombine.low %v947_v55, %v951_v56  ;;  %v5639_v55 = vcombine.low %v1035_v31, %v1039_v33  ;;  %v5632_v56 = vcombine.high %v1027_v51, %v1031_v52  ;;  %v872_v31 = vld [vmem:[#allocation8 + $0x128] sm:$0xff] }
 0x1e7   :  { %v748_v0 = vmul.f32 1.442695, %v744_v59  ;;  %v750_v2 = vmul.f32 1.442695, %v745_v60  ;;  %v752_v3 = vmul.f32 1.442695, %v746_v62 }
 0x1e8   :  { %v754_v37 = vmul.f32 1.442695, %v747_v63  ;;  %v1075_v59 = vld [vmem:[#allocation8 + $0x780] sm:$0xff]  ;;  %2390 = vmatpush2.bf16.msra.mxu0 %v5551_v58  ;;  %v5631_v58 = vcombine.low %v1027_v51, %v1031_v52  ;;  %v864_v51 = vld [vmem:[#allocation8 + $0xe8] sm:$0xff] }
 0x1e9   :  { %6573 = vpow2.f32 %v748_v0  ;;  %v1079_v60 = vld [vmem:[#allocation8 + $0x7a0] sm:$0xff] }
 0x1ea   :  { %6575 = vpow2.f32 %v750_v2  ;;  %v939_v62 = vld [vmem:[#allocation8 + $0x340] sm:$0xff]  ;;  %v5679_v63 = vcombine.low %v1075_v59, %v1079_v60  ;;  %v5680_v0 = vcombine.high %v1075_v59, %v1079_v60  ;;  %v892_v59 = vld [vmem:[#allocation8 + $0x1c8] sm:$0xff] }
 0x1eb   :  { %6577 = vpow2.f32 %v752_v3  ;;  %v943_v2 = vld [vmem:[#allocation8 + $0x360] sm:$0xff]  ;;  %v896_v60 = vld [vmem:[#allocation8 + $0x1e8] sm:$0xff] }
 0x1ec   :  { %6579 = vpow2.f32 %v754_v37  ;;  %v1067_v3 = vld [vmem:[#allocation8 + $0x740] sm:$0xff]  ;;  %2430 = vmatprep.subr.bf16.mxu1 %v5680_v0  ;;  %v1020_v0 = vld [vmem:[#allocation8 + $0x5c8] sm:$0xff] }
 0x1ed   :  { %v1071_v37 = vld [vmem:[#allocation8 + $0x760] sm:$0xff]  ;;  %2431 = vmatpush2.bf16.msra.mxu1 %v5679_v63  ;;  %v5498_v63 = vcombine.high %v892_v59, %v896_v60 }
 0x1ee   :  { %v7119_v42 = vpop.eup %6571  ;;  %v5671_v8 = vcombine.low %v1067_v3, %v1071_v37 }
 0x1ef   :  { %v721_v40 = vsel %vm714_vm6, %v7119_v42, 0.0 }
 0x1f0   :  { %722 = vadd.xlane.f32.xlu1 %v721_v40  ;;  %v5543_v40 = vcombine.low %v939_v62, %v943_v2 }
 0x1f6   :  { %v7123_v41 = vpop.eup %6573 }
 0x1f7   :  { %v7125_v43 = vpop.eup %6575  ;;  %v756_v45 = vsel %vm734_vm7, %v7123_v41, 0.0 }
 0x1f8   :  { %v7129_v46 = vpop.eup %6577  ;;  %v757_v47 = vsel %vm734_vm7, %v7125_v43, 0.0 }
 0x1f9   :  { %v7133_v49 = vpop.eup %6579  ;;  %v758_v53 = vadd.f32 %v757_v47, %v756_v45  ;;  %v759_v4 = vsel %vm734_vm7, %v7129_v46, 0.0  ;;  %v5544_v45 = vcombine.high %v939_v62, %v943_v2  ;;  %v5672_v47 = vcombine.high %v1067_v3, %v1071_v37  ;;  %v1024_v2 = vld [vmem:[#allocation8 + $0x5e8] sm:$0xff] }
 0x1fa   :  { %v761_v9 = vsel %vm734_vm7, %v7133_v49, 0.0  ;;  %v5497_v62 = vcombine.low %v892_v59, %v896_v60  ;;  %v5626_v3 = vcombine.high %v1020_v0, %v1024_v2  ;;  %v5625_v37 = vcombine.low %v1020_v0, %v1024_v2  ;;  %v852_v59 = vld [vmem:[#allocation8 + $0x88] sm:$0xff] }
 0x1fb   :  { %v760_v7 = vadd.f32 %v759_v4, %v758_v53  ;;  %v931_v53 = vld [vmem:[#allocation8 + $0x300] sm:$0xff]  ;;  %2391 = vmatprep.subr.bf16.mxu0 %v5544_v45  ;;  %2432 = vmatprep.subr.bf16.mxu1 %v5672_v47  ;;  %v856_v60 = vld [vmem:[#allocation8 + $0xa8] sm:$0xff] }
 0x1fc   :  { %v935_v4 = vld [vmem:[#allocation8 + $0x320] sm:$0xff]  ;;  %2392 = vmatpush2.bf16.msra.mxu0 %v5543_v40  ;;  %2433 = vmatpush2.bf16.msra.mxu1 %v5671_v8  ;;  %v980_v0 = vld [vmem:[#allocation8 + $0x488] sm:$0xff] }
 0x1fd   :  { %v762_v13 = vadd.f32 %v761_v9, %v760_v7  ;;  %v5536_v6 = vcombine.high %v931_v53, %v935_v4  ;;  %v1063_v7 = vld [vmem:[#allocation8 + $0x720] sm:$0xff]  ;;  %v5535_v12 = vcombine.low %v931_v53, %v935_v4  ;;  %v984_v2 = vld [vmem:[#allocation8 + $0x4a8] sm:$0xff] }
 0x1fe   :  { %v923_v9 = vld [vmem:[#allocation8 + $0x2c0] sm:$0xff]  ;;  %v5664_v11 = vcombine.high %v1059_v5, %v1063_v7  ;;  %v5663_v18 = vcombine.low %v1059_v5, %v1063_v7 }
 0x1ff   :  { %763 = vadd.xlane.f32.xlu0 %v762_v13  ;;  %v1051_v13 = vld [vmem:[#allocation8 + $0x6c0] sm:$0xff]  ;;  %2393 = vmatprep.subr.bf16.mxu0 %v5536_v6  ;;  %v5528_v16 = vcombine.high %v923_v9, %v927_v10  ;;  %v5527_v22 = vcombine.low %v923_v9, %v927_v10 }
 0x200   :  { %2434 = vmatprep.subr.bf16.mxu1 %v5664_v11  ;;  %v5656_v21 = vcombine.high %v1051_v13, %v1055_v15  ;;  %2394 = vmatpush2.bf16.msra.mxu0 %v5535_v12  ;;  %v5655_v26 = vcombine.low %v1051_v13, %v1055_v15 }
 0x201   :  { %2395 = vmatprep.subr.bf16.mxu0 %v5528_v16  ;;  %2435 = vmatpush2.bf16.msra.mxu1 %v5663_v18  ;;  %v888_v16 = vld [vmem:[#allocation8 + $0x1a8] sm:$0xff] }
 0x202   :  { %2436 = vmatprep.subr.bf16.mxu1 %v5656_v21  ;;  %v1012_v18 = vld [vmem:[#allocation8 + $0x588] sm:$0xff] }
 0x204   :  { %2396 = vmatpush2.bf16.msra.mxu0 %v5527_v22  ;;  %v876_v22 = vld [vmem:[#allocation8 + $0x148] sm:$0xff] }
 0x205   :  { %2397 = vmatprep.subr.bf16.mxu0 %v5520_v25  ;;  %2437 = vmatpush2.bf16.msra.mxu1 %v5655_v26  ;;  %v1004_v26 = vld [vmem:[#allocation8 + $0x548] sm:$0xff]  ;;  %v5482_v28 = vcombine.high %v876_v22, %v880_v23 }
 0x206   :  { %2438 = vmatprep.subr.bf16.mxu1 %v5648_v29  ;;  %v5617_v29 = vcombine.low %v1012_v18, %v1016_v19  ;;  %v5610_v33 = vcombine.high %v1004_v26, %v1008_v27 }
 0x208   :  { %2398 = vmatpush2.bf16.msra.mxu0 %v5519_v30  ;;  %v868_v30 = vld [vmem:[#allocation8 + $0x108] sm:$0xff] }
 0x209   :  { %2399 = vmatprep.subr.bf16.mxu0 %v5512_v34  ;;  %2439 = vmatpush2.bf16.msra.mxu1 %v5647_v35  ;;  %v5481_v34 = vcombine.low %v876_v22, %v880_v23  ;;  %v996_v35 = vld [vmem:[#allocation8 + $0x508] sm:$0xff]  ;;  %v5474_v39 = vcombine.high %v868_v30, %v872_v31 }
 0x20a   :  { %2440 = vmatprep.subr.bf16.mxu1 %v5640_v48  ;;  %v5609_v48 = vcombine.low %v1004_v26, %v1008_v27  ;;  %v5602_v52 = vcombine.high %v996_v35, %v1000_v36 }
 0x20c   :  { %2400 = vmatpush2.bf16.msra.mxu0 %v5511_v50  ;;  %v860_v50 = vld [vmem:[#allocation8 + $0xc8] sm:$0xff] }
 0x20d   :  { %2401 = vmatprep.subr.bf16.mxu0 %v5504_v54  ;;  %2441 = vmatpush2.bf16.msra.mxu1 %v5639_v55  ;;  %v5473_v54 = vcombine.low %v868_v30, %v872_v31  ;;  %v988_v55 = vld [vmem:[#allocation8 + $0x4c8] sm:$0xff] }
 0x20e   :  { %2442 = vmatprep.subr.bf16.mxu1 %v5632_v56  ;;  %v992_v56 = vld [vmem:[#allocation8 + $0x4e8] sm:$0xff] }
 0x210   :  { %2402 = vmatpush2.bf16.msra.mxu0 %v5503_v57  ;;  %v5466_v57 = vcombine.high %v860_v50, %v864_v51 }
 0x211   :  { %2443 = vmatpush2.bf16.msra.mxu1 %v5631_v58  ;;  %2453 = vmatprep.subr.bf16.mxu0 %v5498_v63  ;;  %v5601_v58 = vcombine.low %v996_v35, %v1000_v36  ;;  %v5465_v63 = vcombine.low %v860_v50, %v864_v51 }
 0x212   :  { %2494 = vmatprep.subr.bf16.mxu1 %v5626_v3  ;;  %v5458_v3 = vcombine.high %v852_v59, %v856_v60 }
 0x288   :  { %v764_v40 = vpop.xlane.xlu0 %763 }
 0x289   :  { %6581 = vrcp.f32 %v764_v40  ;;  %v844_v40 = vld [vmem:[#allocation8 + $0x48] sm:$0xff] }
 0x296   :  { %v6582_v45 = vpop.eup %6581 }
 0x297   :  { %v766_v47 = vmul.f32 %v6582_v45, %v7123_v41  ;;  %v767_v53 = vmul.f32 %v6582_v45, %v7125_v43  ;;  %v768_v4 = vmul.f32 %v6582_v45, %v7129_v46  ;;  %v769_v5 = vmul.f32 %v6582_v45, %v7133_v49  ;;  %v884_v43 = vld [vmem:[#allocation8 + $0x188] sm:$0xff] }
 0x298   :  { %v5489_v25 = vcombine.low %v884_v43, %v888_v16  ;;  %v848_v45 = vld [vmem:[#allocation8 + $0x68] sm:$0xff] }
 0x299   :  { %v774_v6 = vcombine.low %v766_v47, %v767_v53  ;;  %v775_v7 = vcombine.low %v768_v4, %v769_v5  ;;  %v5586_v47 = vcombine.high %v980_v0, %v984_v2  ;;  %v5457_v53 = vcombine.low %v852_v59, %v856_v60  ;;  %v972_v4 = vld [vmem:[#allocation8 + $0x448] sm:$0xff] }
 0x29a   :  { %v976_v5 = vld [vmem:[#allocation8 + $0x468] sm:$0xff] }
 0x29b   :  { %v782_v8 = vrot.slane %v774_v6, %v7024_v44  ;;  %v789_v9 = vrot.slane %v775_v7, %v7024_v44  ;;  %v5450_v6 = vcombine.high %v844_v40, %v848_v45  ;;  %v5585_v7 = vcombine.low %v980_v0, %v984_v2 }
 0x29d   :  { %v790_v10 = vcombine.low %v782_v8, %v789_v9  ;;  %v836_v8 = vld [vmem:[#allocation8 + $0x8] sm:$0xff] }
 0x29e   :  { %v840_v9 = vld [vmem:[#allocation8 + $0x28] sm:$0xff] }
 0x29f   :  { %v792_v11 = vmul.f32 %v790_v10, %v7041_v61  ;;  %v5490_v61 = vcombine.high %v884_v43, %v888_v16  ;;  %v5578_v10 = vcombine.high %v972_v4, %v976_v5  ;;  %v956_v43 = vld [vmem:[#allocation8 + $0x3c8] sm:$0xff] }
 0x2a0   :  { %v960_v16 = vld [vmem:[#allocation8 + $0x3e8] sm:$0xff] }
 0x2a1   :  { %v801_v12 = vrot.slane %v792_v11, %v7024_v44  ;;  %v794_v13 = vcombine.high %v792_v11, %v792_v11  ;;  %v5449_v11 = vcombine.low %v844_v40, %v848_v45  ;;  %v5562_v22 = vcombine.high %v956_v43, %v960_v16 }
 0x2a2   :  { %v5561_v27 = vcombine.low %v956_v43, %v960_v16 }
 0x2a3   :  { %v809_v15 = vcombine.high %v801_v12, %v801_v12  ;;  %v808_v41 = vrot.slane %v794_v13, %v7024_v44  ;;  %v7150_v20 = vpack.c.bf16 %v801_v12, %v801_v12  ;;  %v5618_v44 = vcombine.high %v1012_v18, %v1016_v19  ;;  %v964_v12 = vld [vmem:[#allocation8 + $0x408] sm:$0xff] }
 0x2a4   :  { %v968_v13 = vld [vmem:[#allocation8 + $0x428] sm:$0xff]  ;;  %v5441_v18 = vcombine.low %v836_v8, %v840_v9 }
 0x2a5   :  { %v7148_v46 = vpack.c.bf16 %v809_v15, %v809_v15  ;;  %v810_v49 = vcombine.high %v808_v41, %v808_v41  ;;  %v7156_v24 = vpack.c.bf16 %v808_v41, %v808_v41  ;;  %v5442_v15 = vcombine.high %v836_v8, %v840_v9  ;;  %v1084_v19 = vld [vmem:[#allocation8 + $0x7c8] sm:$0xff] }
 0x2a6   :  { %v5577_v41 = vcombine.low %v972_v4, %v976_v5  ;;  %v5569_v23 = vcombine.low %v964_v12, %v968_v13 }
 0x2a7   :  { %2403 = vmatprep.mubr.bf16.mxu0 %v7148_v46  ;;  %v7153_v21 = vpack.c.bf16 %v810_v49, %v810_v49  ;;  %v5570_v49 = vcombine.high %v964_v12, %v968_v13 }
 0x2a8   :  { %2404 = vmatmul.mubr.bf16.vlgmr.msra.gmra.mxu0 %v7150_v20 }
 0x2a9   :  { %2454 = vmatpush1.bf16.msra.mxu0 %v5497_v62  ;;  %2444 = vmatprep.mubr.bf16.mxu1 %v7153_v21  ;;  %v5594_v62 = vcombine.high %v988_v55, %v992_v56 }
 0x2aa   :  { %2485 = vmatprep.mubr.bf16.mxu0 %v7148_v46  ;;  %2445 = vmatmul.mubr.bf16.vlgmr.msra.gmra.mxu1 %v7156_v24 }
 0x2ab   :  { %2495 = vmatpush1.bf16.msra.mxu1 %v5625_v37  ;;  %2455 = vmatprep.subr.bf16.mxu0 %v5490_v61  ;;  %v5593_v37 = vcombine.low %v988_v55, %v992_v56  ;;  %v1088_v61 = vld [vmem:[#allocation8 + $0x7e8] sm:$0xff] }
 0x2ac   :  { %2526 = vmatprep.mubr.bf16.mxu1 %v7153_v21  ;;  %2496 = vmatprep.subr.bf16.mxu1 %v5618_v44  ;;  %v948_v44 = vld [vmem:[#allocation8 + $0x388] sm:$0xff]  ;;  %v5690_v26 = vcombine.high %v1084_v19, %v1088_v61  ;;  %v5689_v31 = vcombine.low %v1084_v19, %v1088_v61 }
 0x2ad   :  { %2456 = vmatpush1.bf16.msra.mxu0 %v5489_v25  ;;  %v952_v25 = vld [vmem:[#allocation8 + $0x3a8] sm:$0xff] }
 0x2ae   :  { %2457 = vmatprep.subr.bf16.mxu0 %v5482_v28  ;;  %v1076_v28 = vld [vmem:[#allocation8 + $0x788] sm:$0xff]  ;;  %v5554_v30 = vcombine.high %v948_v44, %v952_v25  ;;  %v5553_v36 = vcombine.low %v948_v44, %v952_v25 }
 0x2af   :  { %2497 = vmatpush1.bf16.msra.mxu1 %v5617_v29  ;;  %v1080_v29 = vld [vmem:[#allocation8 + $0x7a8] sm:$0xff] }
 0x2b0   :  { %2498 = vmatprep.subr.bf16.mxu1 %v5610_v33  ;;  %v940_v33 = vld [vmem:[#allocation8 + $0x348] sm:$0xff]  ;;  %v5682_v35 = vcombine.high %v1076_v28, %v1080_v29  ;;  %v5681_v51 = vcombine.low %v1076_v28, %v1080_v29 }
 0x2b1   :  { %2458 = vmatpush1.bf16.msra.mxu0 %v5481_v34  ;;  %v944_v34 = vld [vmem:[#allocation8 + $0x368] sm:$0xff] }
 0x2b2   :  { %2459 = vmatprep.subr.bf16.mxu0 %v5474_v39  ;;  %v1068_v39 = vld [vmem:[#allocation8 + $0x748] sm:$0xff]  ;;  %v5546_v50 = vcombine.high %v940_v33, %v944_v34  ;;  %v5545_v56 = vcombine.low %v940_v33, %v944_v34 }
 0x2b3   :  { %2499 = vmatpush1.bf16.msra.mxu1 %v5609_v48  ;;  %v1072_v48 = vld [vmem:[#allocation8 + $0x768] sm:$0xff] }
 0x2b4   :  { %2500 = vmatprep.subr.bf16.mxu1 %v5602_v52  ;;  %v932_v52 = vld [vmem:[#allocation8 + $0x308] sm:$0xff]  ;;  %v5674_v55 = vcombine.high %v1068_v39, %v1072_v48  ;;  %v5673_v60 = vcombine.low %v1068_v39, %v1072_v48 }
 0x2b5   :  { %2460 = vmatpush1.bf16.msra.mxu0 %v5473_v54  ;;  %v936_v54 = vld [vmem:[#allocation8 + $0x328] sm:$0xff] }
 0x2b6   :  { %2461 = vmatprep.subr.bf16.mxu0 %v5466_v57  ;;  %v1060_v57 = vld [vmem:[#allocation8 + $0x708] sm:$0xff]  ;;  %v5538_v59 = vcombine.high %v932_v52, %v936_v54  ;;  %v5537_v2 = vcombine.low %v932_v52, %v936_v54 }
 0x2b7   :  { %2501 = vmatpush1.bf16.msra.mxu1 %v5601_v58  ;;  %v1064_v58 = vld [vmem:[#allocation8 + $0x728] sm:$0xff] }
 0x2b8   :  { %2502 = vmatprep.subr.bf16.mxu1 %v5594_v62  ;;  %v924_v62 = vld [vmem:[#allocation8 + $0x2c8] sm:$0xff]  ;;  %v5666_v0 = vcombine.high %v1060_v57, %v1064_v58  ;;  %v5665_v45 = vcombine.low %v1060_v57, %v1064_v58 }
 0x2b9   :  { %2462 = vmatpush1.bf16.msra.mxu0 %v5465_v63  ;;  %v928_v63 = vld [vmem:[#allocation8 + $0x2e8] sm:$0xff] }
 0x2ba   :  { %2463 = vmatprep.subr.bf16.mxu0 %v5458_v3  ;;  %v1052_v3 = vld [vmem:[#allocation8 + $0x6c8] sm:$0xff]  ;;  %v5530_v40 = vcombine.high %v924_v62, %v928_v63  ;;  %v5529_v5 = vcombine.low %v924_v62, %v928_v63 }
 0x2bb   :  { %2503 = vmatpush1.bf16.msra.mxu1 %v5593_v37  ;;  %v1056_v37 = vld [vmem:[#allocation8 + $0x6e8] sm:$0xff] }
 0x2bc   :  { %2504 = vmatprep.subr.bf16.mxu1 %v5586_v47  ;;  %v916_v47 = vld [vmem:[#allocation8 + $0x288] sm:$0xff]  ;;  %v5658_v4 = vcombine.high %v1052_v3, %v1056_v37  ;;  %v5657_v9 = vcombine.low %v1052_v3, %v1056_v37 }
 0x2bd   :  { %2464 = vmatpush1.bf16.msra.mxu0 %v5457_v53  ;;  %v920_v53 = vld [vmem:[#allocation8 + $0x2a8] sm:$0xff] }
 0x2be   :  { %2465 = vmatprep.subr.bf16.mxu0 %v5450_v6  ;;  %v1044_v6 = vld [vmem:[#allocation8 + $0x688] sm:$0xff]  ;;  %v5522_v8 = vcombine.high %v916_v47, %v920_v53  ;;  %v5521_v13 = vcombine.low %v916_v47, %v920_v53 }
 0x2bf   :  { %2505 = vmatpush1.bf16.msra.mxu1 %v5585_v7  ;;  %v1048_v7 = vld [vmem:[#allocation8 + $0x6a8] sm:$0xff] }
 0x2c0   :  { %2506 = vmatprep.subr.bf16.mxu1 %v5578_v10  ;;  %v908_v10 = vld [vmem:[#allocation8 + $0x248] sm:$0xff]  ;;  %v5650_v12 = vcombine.high %v1044_v6, %v1048_v7  ;;  %v5649_v16 = vcombine.low %v1044_v6, %v1048_v7 }
 0x2c1   :  { %2466 = vmatpush1.bf16.msra.mxu0 %v5449_v11  ;;  %v912_v11 = vld [vmem:[#allocation8 + $0x268] sm:$0xff] }
 0x2c2   :  { %2467 = vmatprep.subr.bf16.mxu0 %v5442_v15  ;;  %v1036_v15 = vld [vmem:[#allocation8 + $0x648] sm:$0xff]  ;;  %v5514_v43 = vcombine.high %v908_v10, %v912_v11  ;;  %v5513_v61 = vcombine.low %v908_v10, %v912_v11 }
 0x2c3   :  { %2507 = vmatpush1.bf16.msra.mxu1 %v5577_v41  ;;  %v1040_v41 = vld [vmem:[#allocation8 + $0x668] sm:$0xff] }
 0x2c4   :  { %2508 = vmatprep.subr.bf16.mxu1 %v5570_v49  ;;  %v900_v49 = vld [vmem:[#allocation8 + $0x208] sm:$0xff]  ;;  %v5642_v19 = vcombine.high %v1036_v15, %v1040_v41  ;;  %v5641_v25 = vcombine.low %v1036_v15, %v1040_v41 }
 0x2c5   :  { %2468 = vmatpush1.bf16.msra.mxu0 %v5441_v18  ;;  %v904_v18 = vld [vmem:[#allocation8 + $0x228] sm:$0xff] }
 0x2c6   :  { %2469 = vmatprep.subr.bf16.mxu0 %v5562_v22  ;;  %v1028_v22 = vld [vmem:[#allocation8 + $0x608] sm:$0xff]  ;;  %v5506_v44 = vcombine.high %v900_v49, %v904_v18  ;;  %v5505_v29 = vcombine.low %v900_v49, %v904_v18 }
 0x2c7   :  { %2509 = vmatpush1.bf16.msra.mxu1 %v5569_v23  ;;  %v1032_v23 = vld [vmem:[#allocation8 + $0x628] sm:$0xff] }
 0x2c8   :  { %2510 = vmatprep.subr.bf16.mxu1 %v5690_v26  ;;  %v893_v26 = vld [vmem:[#allocation8 + $0x1d0] sm:$0xff]  ;;  %v5634_v28 = vcombine.high %v1028_v22, %v1032_v23  ;;  %v5633_v34 = vcombine.low %v1028_v22, %v1032_v23 }
 0x2c9   :  { %2470 = vmatpush2.bf16.msra.mxu0 %v5561_v27  ;;  %v897_v27 = vld [vmem:[#allocation8 + $0x1f0] sm:$0xff] }
 0x2ca   :  { %2471 = vmatprep.subr.bf16.mxu0 %v5554_v30  ;;  %v1021_v30 = vld [vmem:[#allocation8 + $0x5d0] sm:$0xff]  ;;  %v5500_v33 = vcombine.high %v893_v26, %v897_v27  ;;  %v5499_v48 = vcombine.low %v893_v26, %v897_v27 }
 0x2cb   :  { %2511 = vmatpush2.bf16.msra.mxu1 %v5689_v31  ;;  %v1025_v31 = vld [vmem:[#allocation8 + $0x5f0] sm:$0xff] }
 0x2cc   :  { %2512 = vmatprep.subr.bf16.mxu1 %v5682_v35  ;;  %v885_v35 = vld [vmem:[#allocation8 + $0x190] sm:$0xff]  ;;  %v5628_v39 = vcombine.high %v1021_v30, %v1025_v31  ;;  %v5627_v54 = vcombine.low %v1021_v30, %v1025_v31 }
 0x2cd   :  { %2472 = vmatpush2.bf16.msra.mxu0 %v5553_v36  ;;  %v889_v36 = vld [vmem:[#allocation8 + $0x1b0] sm:$0xff] }
 0x2ce   :  { %2473 = vmatprep.subr.bf16.mxu0 %v5546_v50  ;;  %v1013_v50 = vld [vmem:[#allocation8 + $0x590] sm:$0xff]  ;;  %v5492_v52 = vcombine.high %v885_v35, %v889_v36  ;;  %v5491_v58 = vcombine.low %v885_v35, %v889_v36 }
 0x2cf   :  { %2513 = vmatpush2.bf16.msra.mxu1 %v5681_v51  ;;  %v1017_v51 = vld [vmem:[#allocation8 + $0x5b0] sm:$0xff] }
 0x2d0   :  { %2514 = vmatprep.subr.bf16.mxu1 %v5674_v55  ;;  %v877_v55 = vld [vmem:[#allocation8 + $0x150] sm:$0xff]  ;;  %v5620_v57 = vcombine.high %v1013_v50, %v1017_v51  ;;  %v5619_v63 = vcombine.low %v1013_v50, %v1017_v51 }
 0x2d1   :  { %2474 = vmatpush2.bf16.msra.mxu0 %v5545_v56  ;;  %v881_v56 = vld [vmem:[#allocation8 + $0x170] sm:$0xff] }
 0x2d2   :  { %2475 = vmatprep.subr.bf16.mxu0 %v5538_v59  ;;  %v1005_v59 = vld [vmem:[#allocation8 + $0x550] sm:$0xff]  ;;  %v5484_v62 = vcombine.high %v877_v55, %v881_v56  ;;  %v5483_v37 = vcombine.low %v877_v55, %v881_v56 }
 0x2d3   :  { %2515 = vmatpush2.bf16.msra.mxu1 %v5673_v60  ;;  %v1009_v60 = vld [vmem:[#allocation8 + $0x570] sm:$0xff] }
 0x2d4   :  { %2516 = vmatprep.subr.bf16.mxu1 %v5666_v0  ;;  %v869_v0 = vld [vmem:[#allocation8 + $0x110] sm:$0xff]  ;;  %v5612_v3 = vcombine.high %v1005_v59, %v1009_v60  ;;  %v5611_v53 = vcombine.low %v1005_v59, %v1009_v60 }
 0x2d5   :  { %2476 = vmatpush2.bf16.msra.mxu0 %v5537_v2  ;;  %v873_v2 = vld [vmem:[#allocation8 + $0x130] sm:$0xff] }
 0x2d6   :  { %2477 = vmatprep.subr.bf16.mxu0 %v5530_v40  ;;  %v997_v40 = vld [vmem:[#allocation8 + $0x510] sm:$0xff]  ;;  %v5476_v47 = vcombine.high %v869_v0, %v873_v2  ;;  %v5475_v7 = vcombine.low %v869_v0, %v873_v2 }
 0x2d7   :  { %2517 = vmatpush2.bf16.msra.mxu1 %v5665_v45  ;;  %v1001_v45 = vld [vmem:[#allocation8 + $0x530] sm:$0xff] }
 0x2d8   :  { %2518 = vmatprep.subr.bf16.mxu1 %v5658_v4  ;;  %v861_v4 = vld [vmem:[#allocation8 + $0xd0] sm:$0xff]  ;;  %v5604_v6 = vcombine.high %v997_v40, %v1001_v45  ;;  %v5603_v11 = vcombine.low %v997_v40, %v1001_v45 }
 0x2d9   :  { %2478 = vmatpush2.bf16.msra.mxu0 %v5529_v5  ;;  %v865_v5 = vld [vmem:[#allocation8 + $0xf0] sm:$0xff] }
 0x2da   :  { %2479 = vmatprep.subr.bf16.mxu0 %v5522_v8  ;;  %v989_v8 = vld [vmem:[#allocation8 + $0x4d0] sm:$0xff]  ;;  %v5468_v10 = vcombine.high %v861_v4, %v865_v5  ;;  %v5467_v41 = vcombine.low %v861_v4, %v865_v5 }
 0x2db   :  { %2519 = vmatpush2.bf16.msra.mxu1 %v5657_v9  ;;  %v993_v9 = vld [vmem:[#allocation8 + $0x4f0] sm:$0xff] }
 0x2dc   :  { %2520 = vmatprep.subr.bf16.mxu1 %v5650_v12  ;;  %v853_v12 = vld [vmem:[#allocation8 + $0x90] sm:$0xff]  ;;  %v5596_v15 = vcombine.high %v989_v8, %v993_v9  ;;  %v5595_v18 = vcombine.low %v989_v8, %v993_v9 }
 0x2dd   :  { %2480 = vmatpush2.bf16.msra.mxu0 %v5521_v13  ;;  %v857_v13 = vld [vmem:[#allocation8 + $0xb0] sm:$0xff] }
 0x2de   :  { %2481 = vmatprep.subr.bf16.mxu0 %v5514_v43  ;;  %v981_v43 = vld [vmem:[#allocation8 + $0x490] sm:$0xff]  ;;  %v5460_v49 = vcombine.high %v853_v12, %v857_v13  ;;  %v5459_v23 = vcombine.low %v853_v12, %v857_v13 }
 0x2df   :  { %2521 = vmatpush2.bf16.msra.mxu1 %v5649_v16  ;;  %v985_v16 = vld [vmem:[#allocation8 + $0x4b0] sm:$0xff] }
 0x2e0   :  { %2522 = vmatprep.subr.bf16.mxu1 %v5642_v19  ;;  %v845_v19 = vld [vmem:[#allocation8 + $0x50] sm:$0xff]  ;;  %v5588_v22 = vcombine.high %v981_v43, %v985_v16  ;;  %v5587_v27 = vcombine.low %v981_v43, %v985_v16 }
 0x2e1   :  { %2482 = vmatpush2.bf16.msra.mxu0 %v5513_v61  ;;  %v849_v61 = vld [vmem:[#allocation8 + $0x70] sm:$0xff] }
 0x2e2   :  { %2483 = vmatprep.subr.bf16.mxu0 %v5506_v44  ;;  %v973_v44 = vld [vmem:[#allocation8 + $0x450] sm:$0xff]  ;;  %v5452_v26 = vcombine.high %v845_v19, %v849_v61  ;;  %v5451_v31 = vcombine.low %v845_v19, %v849_v61 }
 0x2e3   :  { %2523 = vmatpush2.bf16.msra.mxu1 %v5641_v25  ;;  %v977_v25 = vld [vmem:[#allocation8 + $0x470] sm:$0xff] }
 0x2e4   :  { %2524 = vmatprep.subr.bf16.mxu1 %v5634_v28  ;;  %v837_v28 = vld [vmem:[#allocation8 + $0x10] sm:$0xff]  ;;  %v5580_v30 = vcombine.high %v973_v44, %v977_v25  ;;  %v5579_v36 = vcombine.low %v973_v44, %v977_v25 }
 0x2e5   :  { %2484 = vmatpush2.bf16.msra.mxu0 %v5505_v29  ;;  %v841_v29 = vld [vmem:[#allocation8 + $0x30] sm:$0xff] }
 0x2e6   :  { %2535 = vmatprep.subr.bf16.mxu0 %v5500_v33  ;;  %v965_v33 = vld [vmem:[#allocation8 + $0x410] sm:$0xff]  ;;  %v5444_v35 = vcombine.high %v837_v28, %v841_v29  ;;  %v5443_v51 = vcombine.low %v837_v28, %v841_v29 }
 0x2e7   :  { %2525 = vmatpush2.bf16.msra.mxu1 %v5633_v34  ;;  %v969_v34 = vld [vmem:[#allocation8 + $0x430] sm:$0xff] }
 0x2e8   :  { %2486 = vmatmul.mubr.bf16.vlgmr.msra.gmra.mxu0 %v7150_v20  ;;  %2576 = vmatprep.subr.bf16.mxu1 %v5628_v39  ;;  %v957_v39 = vld [vmem:[#allocation8 + $0x3d0] sm:$0xff]  ;;  %v5572_v50 = vcombine.high %v965_v33, %v969_v34  ;;  %v5571_v56 = vcombine.low %v965_v33, %v969_v34 }
 0x2e9   :  { %2536 = vmatpush1.bf16.msra.mxu0 %v5499_v48  ;;  %2567 = vmatprep.mubr.bf16.mxu0 %v7148_v46  ;;  %v961_v48 = vld [vmem:[#allocation8 + $0x3f0] sm:$0xff] }
 0x2ea   :  { %2527 = vmatmul.mubr.bf16.vlgmr.msra.gmra.mxu1 %v7156_v24  ;;  %2537 = vmatprep.subr.bf16.mxu0 %v5492_v52  ;;  %v1085_v52 = vld [vmem:[#allocation8 + $0x7d0] sm:$0xff]  ;;  %v5564_v55 = vcombine.high %v957_v39, %v961_v48  ;;  %v5563_v60 = vcombine.low %v957_v39, %v961_v48 }
 0x2eb   :  { %2577 = vmatpush1.bf16.msra.mxu1 %v5627_v54  ;;  %2608 = vmatprep.mubr.bf16.mxu1 %v7153_v21  ;;  %v1089_v54 = vld [vmem:[#allocation8 + $0x7f0] sm:$0xff] }
 0x2ec   :  { %2578 = vmatprep.subr.bf16.mxu1 %v5620_v57  ;;  %v949_v57 = vld [vmem:[#allocation8 + $0x390] sm:$0xff]  ;;  %v5692_v59 = vcombine.high %v1085_v52, %v1089_v54  ;;  %v5691_v2 = vcombine.low %v1085_v52, %v1089_v54 }
 0x2ed   :  { %2538 = vmatpush1.bf16.msra.mxu0 %v5491_v58  ;;  %v953_v58 = vld [vmem:[#allocation8 + $0x3b0] sm:$0xff] }
 0x2ee   :  { %2539 = vmatprep.subr.bf16.mxu0 %v5484_v62  ;;  %v1077_v62 = vld [vmem:[#allocation8 + $0x790] sm:$0xff]  ;;  %v5556_v0 = vcombine.high %v949_v57, %v953_v58  ;;  %v5555_v45 = vcombine.low %v949_v57, %v953_v58 }
 0x2ef   :  { %2579 = vmatpush1.bf16.msra.mxu1 %v5619_v63  ;;  %v1081_v63 = vld [vmem:[#allocation8 + $0x7b0] sm:$0xff] }
 0x2f0   :  { %2580 = vmatprep.subr.bf16.mxu1 %v5612_v3  ;;  %v941_v3 = vld [vmem:[#allocation8 + $0x350] sm:$0xff]  ;;  %v5684_v40 = vcombine.high %v1077_v62, %v1081_v63  ;;  %v5683_v5 = vcombine.low %v1077_v62, %v1081_v63 }
 0x2f1   :  { %2540 = vmatpush1.bf16.msra.mxu0 %v5483_v37  ;;  %v945_v37 = vld [vmem:[#allocation8 + $0x370] sm:$0xff] }
 0x2f2   :  { %2541 = vmatprep.subr.bf16.mxu0 %v5476_v47  ;;  %v1069_v47 = vld [vmem:[#allocation8 + $0x750] sm:$0xff]  ;;  %v5548_v4 = vcombine.high %v941_v3, %v945_v37  ;;  %v5547_v9 = vcombine.low %v941_v3, %v945_v37 }
 0x2f3   :  { %2581 = vmatpush1.bf16.msra.mxu1 %v5611_v53  ;;  %v1073_v53 = vld [vmem:[#allocation8 + $0x770] sm:$0xff] }
 0x2f4   :  { %2582 = vmatprep.subr.bf16.mxu1 %v5604_v6  ;;  %v933_v6 = vld [vmem:[#allocation8 + $0x310] sm:$0xff]  ;;  %v5676_v8 = vcombine.high %v1069_v47, %v1073_v53  ;;  %v5675_v13 = vcombine.low %v1069_v47, %v1073_v53 }
 0x2f5   :  { %2542 = vmatpush1.bf16.msra.mxu0 %v5475_v7  ;;  %v937_v7 = vld [vmem:[#allocation8 + $0x330] sm:$0xff] }
 0x2f6   :  { %2543 = vmatprep.subr.bf16.mxu0 %v5468_v10  ;;  %v1061_v10 = vld [vmem:[#allocation8 + $0x710] sm:$0xff]  ;;  %v5540_v12 = vcombine.high %v933_v6, %v937_v7  ;;  %v5539_v16 = vcombine.low %v933_v6, %v937_v7 }
 0x2f7   :  { %2583 = vmatpush1.bf16.msra.mxu1 %v5603_v11  ;;  %v1065_v11 = vld [vmem:[#allocation8 + $0x730] sm:$0xff] }
 0x2f8   :  { %2584 = vmatprep.subr.bf16.mxu1 %v5596_v15  ;;  %v925_v15 = vld [vmem:[#allocation8 + $0x2d0] sm:$0xff]  ;;  %v5668_v43 = vcombine.high %v1061_v10, %v1065_v11  ;;  %v5667_v61 = vcombine.low %v1061_v10, %v1065_v11 }
 0x2f9   :  { %2544 = vmatpush1.bf16.msra.mxu0 %v5467_v41  ;;  %v929_v41 = vld [vmem:[#allocation8 + $0x2f0] sm:$0xff] }
 0x2fa   :  { %2545 = vmatprep.subr.bf16.mxu0 %v5460_v49  ;;  %v1053_v49 = vld [vmem:[#allocation8 + $0x6d0] sm:$0xff]  ;;  %v5532_v19 = vcombine.high %v925_v15, %v929_v41  ;;  %v5531_v25 = vcombine.low %v925_v15, %v929_v41 }
 0x2fb   :  { %2585 = vmatpush1.bf16.msra.mxu1 %v5595_v18  ;;  %v1057_v18 = vld [vmem:[#allocation8 + $0x6f0] sm:$0xff] }
 0x2fc   :  { %2586 = vmatprep.subr.bf16.mxu1 %v5588_v22  ;;  %v917_v22 = vld [vmem:[#allocation8 + $0x290] sm:$0xff]  ;;  %v5660_v44 = vcombine.high %v1053_v49, %v1057_v18  ;;  %v5659_v29 = vcombine.low %v1053_v49, %v1057_v18 }
 0x2fd   :  { %2546 = vmatpush1.bf16.msra.mxu0 %v5459_v23  ;;  %v921_v23 = vld [vmem:[#allocation8 + $0x2b0] sm:$0xff] }
 0x2fe   :  { %2547 = vmatprep.subr.bf16.mxu0 %v5452_v26  ;;  %v1045_v26 = vld [vmem:[#allocation8 + $0x690] sm:$0xff]  ;;  %v5524_v28 = vcombine.high %v917_v22, %v921_v23  ;;  %v5523_v34 = vcombine.low %v917_v22, %v921_v23  ;;  %v862_v23 = vld [vmem:[#allocation8 + $0xd8] sm:$0xff] }
 0x2ff   :  { %2587 = vmatpush1.bf16.msra.mxu1 %v5587_v27  ;;  %v1049_v27 = vld [vmem:[#allocation8 + $0x6b0] sm:$0xff] }
 0x300   :  { %2588 = vmatprep.subr.bf16.mxu1 %v5580_v30  ;;  %v909_v30 = vld [vmem:[#allocation8 + $0x250] sm:$0xff]  ;;  %v5652_v33 = vcombine.high %v1045_v26, %v1049_v27  ;;  %v5651_v48 = vcombine.low %v1045_v26, %v1049_v27  ;;  %v994_v27 = vld [vmem:[#allocation8 + $0x4f8] sm:$0xff] }
 0x301   :  { %2548 = vmatpush1.bf16.msra.mxu0 %v5451_v31  ;;  %v913_v31 = vld [vmem:[#allocation8 + $0x270] sm:$0xff] }
 0x302   :  { %2549 = vmatprep.subr.bf16.mxu0 %v5444_v35  ;;  %v1037_v35 = vld [vmem:[#allocation8 + $0x650] sm:$0xff]  ;;  %v5516_v39 = vcombine.high %v909_v30, %v913_v31  ;;  %v5515_v54 = vcombine.low %v909_v30, %v913_v31  ;;  %v854_v30 = vld [vmem:[#allocation8 + $0x98] sm:$0xff] }
 0x303   :  { %2589 = vmatpush1.bf16.msra.mxu1 %v5579_v36  ;;  %v1041_v36 = vld [vmem:[#allocation8 + $0x670] sm:$0xff]  ;;  %v858_v31 = vld [vmem:[#allocation8 + $0xb8] sm:$0xff] }
 0x304   :  { %2590 = vmatprep.subr.bf16.mxu1 %v5572_v50  ;;  %v901_v50 = vld [vmem:[#allocation8 + $0x210] sm:$0xff]  ;;  %v5644_v52 = vcombine.high %v1037_v35, %v1041_v36  ;;  %v5643_v58 = vcombine.low %v1037_v35, %v1041_v36  ;;  %v982_v35 = vld [vmem:[#allocation8 + $0x498] sm:$0xff] }
 0x305   :  { %2550 = vmatpush1.bf16.msra.mxu0 %v5443_v51  ;;  %v905_v51 = vld [vmem:[#allocation8 + $0x230] sm:$0xff]  ;;  %v986_v36 = vld [vmem:[#allocation8 + $0x4b8] sm:$0xff] }
 0x306   :  { %2551 = vmatprep.subr.bf16.mxu0 %v5564_v55  ;;  %v1029_v55 = vld [vmem:[#allocation8 + $0x610] sm:$0xff]  ;;  %v5508_v57 = vcombine.high %v901_v50, %v905_v51  ;;  %v5507_v63 = vcombine.low %v901_v50, %v905_v51  ;;  %v846_v50 = vld [vmem:[#allocation8 + $0x58] sm:$0xff] }
 0x307   :  { %2591 = vmatpush1.bf16.msra.mxu1 %v5571_v56  ;;  %v1033_v56 = vld [vmem:[#allocation8 + $0x630] sm:$0xff]  ;;  %v850_v51 = vld [vmem:[#allocation8 + $0x78] sm:$0xff] }
 0x308   :  { %2592 = vmatprep.subr.bf16.mxu1 %v5692_v59  ;;  %v894_v59 = vld [vmem:[#allocation8 + $0x1d8] sm:$0xff]  ;;  %v5636_v62 = vcombine.high %v1029_v55, %v1033_v56  ;;  %v5635_v37 = vcombine.low %v1029_v55, %v1033_v56 }
 0x309   :  { %2552 = vmatpush2.bf16.msra.mxu0 %v5563_v60  ;;  %v898_v60 = vld [vmem:[#allocation8 + $0x1f8] sm:$0xff] }
 0x30a   :  { %2553 = vmatprep.subr.bf16.mxu0 %v5556_v0  ;;  %v1022_v0 = vld [vmem:[#allocation8 + $0x5d8] sm:$0xff]  ;;  %v5502_v3 = vcombine.high %v894_v59, %v898_v60  ;;  %v5501_v53 = vcombine.low %v894_v59, %v898_v60 }
 0x30b   :  { %2593 = vmatpush2.bf16.msra.mxu1 %v5691_v2  ;;  %v1026_v2 = vld [vmem:[#allocation8 + $0x5f8] sm:$0xff] }
 0x30c   :  { %2594 = vmatprep.subr.bf16.mxu1 %v5684_v40  ;;  %v886_v40 = vld [vmem:[#allocation8 + $0x198] sm:$0xff]  ;;  %v5630_v47 = vcombine.high %v1022_v0, %v1026_v2  ;;  %v5629_v7 = vcombine.low %v1022_v0, %v1026_v2 }
 0x30d   :  { %2554 = vmatpush2.bf16.msra.mxu0 %v5555_v45  ;;  %v890_v45 = vld [vmem:[#allocation8 + $0x1b8] sm:$0xff] }
 0x30e   :  { %2555 = vmatprep.subr.bf16.mxu0 %v5548_v4  ;;  %v1014_v4 = vld [vmem:[#allocation8 + $0x598] sm:$0xff]  ;;  %v5494_v6 = vcombine.high %v886_v40, %v890_v45  ;;  %v5493_v11 = vcombine.low %v886_v40, %v890_v45 }
 0x30f   :  { %2595 = vmatpush2.bf16.msra.mxu1 %v5683_v5  ;;  %v1018_v5 = vld [vmem:[#allocation8 + $0x5b8] sm:$0xff] }
 0x310   :  { %2596 = vmatprep.subr.bf16.mxu1 %v5676_v8  ;;  %v878_v8 = vld [vmem:[#allocation8 + $0x158] sm:$0xff]  ;;  %v5622_v10 = vcombine.high %v1014_v4, %v1018_v5  ;;  %v5621_v41 = vcombine.low %v1014_v4, %v1018_v5 }
 0x311   :  { %2556 = vmatpush2.bf16.msra.mxu0 %v5547_v9  ;;  %v882_v9 = vld [vmem:[#allocation8 + $0x178] sm:$0xff] }
 0x312   :  { %2557 = vmatprep.subr.bf16.mxu0 %v5540_v12  ;;  %v1006_v12 = vld [vmem:[#allocation8 + $0x558] sm:$0xff]  ;;  %v5486_v15 = vcombine.high %v878_v8, %v882_v9  ;;  %v5485_v18 = vcombine.low %v878_v8, %v882_v9 }
 0x313   :  { %2597 = vmatpush2.bf16.msra.mxu1 %v5675_v13  ;;  %v1010_v13 = vld [vmem:[#allocation8 + $0x578] sm:$0xff] }
 0x314   :  { %2598 = vmatprep.subr.bf16.mxu1 %v5668_v43  ;;  %v870_v43 = vld [vmem:[#allocation8 + $0x118] sm:$0xff]  ;;  %v5614_v49 = vcombine.high %v1006_v12, %v1010_v13  ;;  %v5613_v22 = vcombine.low %v1006_v12, %v1010_v13 }
 0x315   :  { %2558 = vmatpush2.bf16.msra.mxu0 %v5539_v16  ;;  %v874_v16 = vld [vmem:[#allocation8 + $0x138] sm:$0xff] }
 0x316   :  { %2559 = vmatprep.subr.bf16.mxu0 %v5532_v19  ;;  %v998_v19 = vld [vmem:[#allocation8 + $0x518] sm:$0xff]  ;;  %v5477_v26 = vcombine.low %v870_v43, %v874_v16 }
 0x317   :  { %2599 = vmatpush2.bf16.msra.mxu1 %v5667_v61  ;;  %v1002_v61 = vld [vmem:[#allocation8 + $0x538] sm:$0xff] }
 0x318   :  { %2600 = vmatprep.subr.bf16.mxu1 %v5660_v44  ;;  %v866_v44 = vld [vmem:[#allocation8 + $0xf8] sm:$0xff] }
 0x319   :  { %2560 = vmatpush2.bf16.msra.mxu0 %v5531_v25  ;;  %v5606_v25 = vcombine.high %v998_v19, %v1002_v61  ;;  %v974_v55 = vld [vmem:[#allocation8 + $0x458] sm:$0xff] }
 0x31a   :  { %2561 = vmatprep.subr.bf16.mxu0 %v5524_v28  ;;  %v5470_v28 = vcombine.high %v862_v23, %v866_v44  ;;  %v978_v56 = vld [vmem:[#allocation8 + $0x478] sm:$0xff] }
 0x31b   :  { %2601 = vmatpush2.bf16.msra.mxu1 %v5659_v29  ;;  %v5605_v29 = vcombine.low %v998_v19, %v1002_v61  ;;  %v838_v59 = vld [vmem:[#allocation8 + $0x18] sm:$0xff] }
 0x31c   :  { %2602 = vmatprep.subr.bf16.mxu1 %v5652_v33  ;;  %v842_v60 = vld [vmem:[#allocation8 + $0x38] sm:$0xff] }
 0x31d   :  { %2562 = vmatpush2.bf16.msra.mxu0 %v5523_v34  ;;  %v5469_v34 = vcombine.low %v862_v23, %v866_v44  ;;  %v966_v0 = vld [vmem:[#allocation8 + $0x418] sm:$0xff]  ;;  %v5445_v4 = vcombine.low %v838_v59, %v842_v60 }
 0x31e   :  { %2563 = vmatprep.subr.bf16.mxu0 %v5516_v39  ;;  %v5462_v39 = vcombine.high %v854_v30, %v858_v31  ;;  %v970_v2 = vld [vmem:[#allocation8 + $0x438] sm:$0xff] }
 0x31f   :  { %2603 = vmatpush2.bf16.msra.mxu1 %v5651_v48  ;;  %v958_v40 = vld [vmem:[#allocation8 + $0x3d8] sm:$0xff]  ;;  %v5573_v8 = vcombine.low %v966_v0, %v970_v2 }
 0x320   :  { %2604 = vmatprep.subr.bf16.mxu1 %v5644_v52  ;;  %v5590_v52 = vcombine.high %v982_v35, %v986_v36  ;;  %v962_v45 = vld [vmem:[#allocation8 + $0x3f8] sm:$0xff] }
 0x321   :  { %2564 = vmatpush2.bf16.msra.mxu0 %v5515_v54  ;;  %v5461_v54 = vcombine.low %v854_v30, %v858_v31  ;;  %v1086_v5 = vld [vmem:[#allocation8 + $0x7d8] sm:$0xff]  ;;  %v5565_v12 = vcombine.low %v958_v40, %v962_v45 }
 0x322   :  { %2565 = vmatprep.subr.bf16.mxu0 %v5508_v57  ;;  %v5454_v57 = vcombine.high %v846_v50, %v850_v51  ;;  %v950_v9 = vld [vmem:[#allocation8 + $0x398] sm:$0xff] }
 0x323   :  { %2605 = vmatpush2.bf16.msra.mxu1 %v5643_v58  ;;  %v5589_v58 = vcombine.low %v982_v35, %v986_v36  ;;  %v1078_v13 = vld [vmem:[#allocation8 + $0x798] sm:$0xff] }
 0x324   :  { %2606 = vmatprep.subr.bf16.mxu1 %v5636_v62  ;;  %v5582_v62 = vcombine.high %v974_v55, %v978_v56  ;;  %v1070_v61 = vld [vmem:[#allocation8 + $0x758] sm:$0xff] }
 0x325   :  { %2566 = vmatpush2.bf16.msra.mxu0 %v5507_v63  ;;  %v5453_v63 = vcombine.low %v846_v50, %v850_v51  ;;  %v934_v44 = vld [vmem:[#allocation8 + $0x318] sm:$0xff] }
 0x326   :  { %2617 = vmatprep.subr.bf16.mxu0 %v5502_v3  ;;  %v5446_v3 = vcombine.high %v838_v59, %v842_v60  ;;  %v926_v31 = vld [vmem:[#allocation8 + $0x2d8] sm:$0xff] }
 0x327   :  { %2607 = vmatpush2.bf16.msra.mxu1 %v5635_v37  ;;  %v5581_v37 = vcombine.low %v974_v55, %v978_v56  ;;  %v922_v55 = vld [vmem:[#allocation8 + $0x2b8] sm:$0xff] }
 0x328   :  { %2568 = vmatmul.mubr.bf16.vlgmr.msra.gmra.mxu0 %v7150_v20  ;;  %2658 = vmatprep.subr.bf16.mxu1 %v5630_v47  ;;  %v723_v47 = vpop.xlane.xlu1 %722  ;;  %v1050_v59 = vld [vmem:[#allocation8 + $0x6b8] sm:$0xff] }
 0x329   :  { %2618 = vmatpush1.bf16.msra.mxu0 %v5501_v53  ;;  %2649 = vmatprep.mubr.bf16.mxu0 %v7148_v46  ;;  %v5478_v46 = vcombine.high %v870_v43, %v874_v16  ;;  %v5574_v53 = vcombine.high %v966_v0, %v970_v2  ;;  %6583 = vrcp.f32 %v723_v47  ;;  %v942_v16 = vld [vmem:[#allocation8 + $0x358] sm:$0xff] }
 0x32a   :  { %2609 = vmatmul.mubr.bf16.vlgmr.msra.gmra.mxu1 %v7156_v24  ;;  %2619 = vmatprep.subr.bf16.mxu0 %v5494_v6  ;;  %v1090_v6 = vld [vmem:[#allocation8 + $0x7f8] sm:$0xff] }
 0x32b   :  { %2659 = vmatpush1.bf16.msra.mxu1 %v5629_v7  ;;  %2690 = vmatprep.mubr.bf16.mxu1 %v7153_v21  ;;  %v990_v21 = vld [vmem:[#allocation8 + $0x4d8] sm:$0xff]  ;;  %v5566_v7 = vcombine.high %v958_v40, %v962_v45  ;;  %v5693_v43 = vcombine.low %v1086_v5, %v1090_v6 }
 0x32c   :  { %2660 = vmatprep.subr.bf16.mxu1 %v5622_v10  ;;  %v5598_v33 = vcombine.high %v990_v21, %v994_v27  ;;  %v5597_v48 = vcombine.low %v990_v21, %v994_v27  ;;  %v954_v10 = vld [vmem:[#allocation8 + $0x3b8] sm:$0xff] }
 0x32d   :  { %2620 = vmatpush1.bf16.msra.mxu0 %v5493_v11  ;;  %v5694_v11 = vcombine.high %v1086_v5, %v1090_v6  ;;  %v5557_v19 = vcombine.low %v950_v9, %v954_v10  ;;  %v1062_v27 = vld [vmem:[#allocation8 + $0x718] sm:$0xff] }
 0x32e   :  { %2621 = vmatprep.subr.bf16.mxu0 %v5486_v15  ;;  %v1082_v15 = vld [vmem:[#allocation8 + $0x7b8] sm:$0xff] }
 0x32f   :  { %2661 = vmatpush1.bf16.msra.mxu1 %v5621_v41  ;;  %v5558_v41 = vcombine.high %v950_v9, %v954_v10  ;;  %v5685_v23 = vcombine.low %v1078_v13, %v1082_v15  ;;  %v910_v0 = vld [vmem:[#allocation8 + $0x258] sm:$0xff] }
 0x330   :  { %2662 = vmatprep.subr.bf16.mxu1 %v5614_v49  ;;  %v946_v49 = vld [vmem:[#allocation8 + $0x378] sm:$0xff] }
 0x331   :  { %2622 = vmatpush1.bf16.msra.mxu0 %v5485_v18  ;;  %v5686_v18 = vcombine.high %v1078_v13, %v1082_v15  ;;  %v5549_v21 = vcombine.low %v942_v16, %v946_v49  ;;  %v914_v2 = vld [vmem:[#allocation8 + $0x278] sm:$0xff]  ;;  %v831_v13 = vld [vmem:[#allocation6 + $0x60] sm:$0xff] }
 0x332   :  { %2623 = vmatprep.subr.bf16.mxu0 %v5478_v46  ;;  %v1074_v46 = vld [vmem:[#allocation8 + $0x778] sm:$0xff]  ;;  %v5518_v45 = vcombine.high %v910_v0, %v914_v2 }
 0x333   :  { %2663 = vmatpush1.bf16.msra.mxu1 %v5613_v22  ;;  %v5550_v22 = vcombine.high %v942_v16, %v946_v49  ;;  %v5677_v30 = vcombine.low %v1070_v61, %v1074_v46  ;;  %v1042_v40 = vld [vmem:[#allocation8 + $0x678] sm:$0xff]  ;;  %v832_v49 = vld [vmem:[#allocation6 + $0x68] sm:$0xff] }
 0x334   :  { %2664 = vmatprep.subr.bf16.mxu1 %v5606_v25  ;;  %v938_v25 = vld [vmem:[#allocation8 + $0x338] sm:$0xff] }
 0x335   :  { %2624 = vmatpush1.bf16.msra.mxu0 %v5477_v26  ;;  %v5678_v26 = vcombine.high %v1070_v61, %v1074_v46  ;;  %v5541_v36 = vcombine.low %v934_v44, %v938_v25  ;;  %v1034_v9 = vld [vmem:[#allocation8 + $0x638] sm:$0xff]  ;;  %v819_v61 = vld [vmem:[#allocation6] sm:$0xff] }
 0x336   :  { %2625 = vmatprep.subr.bf16.mxu0 %v5470_v28  ;;  %v1066_v28 = vld [vmem:[#allocation8 + $0x738] sm:$0xff]  ;;  %v823_v46 = vld [vmem:[#allocation6 + $0x20] sm:$0xff] }
 0x337   :  { %2665 = vmatpush1.bf16.msra.mxu1 %v5605_v29  ;;  %v5542_v29 = vcombine.high %v934_v44, %v938_v25  ;;  %v5670_v35 = vcombine.high %v1062_v27, %v1066_v28 }
 0x338   :  { %2666 = vmatprep.subr.bf16.mxu1 %v5598_v33  ;;  %v930_v33 = vld [vmem:[#allocation8 + $0x2f8] sm:$0xff] }
 0x339   :  { %2626 = vmatpush1.bf16.msra.mxu0 %v5469_v34  ;;  %v6584_v34 = vpop.eup %6583  ;;  %v5534_v50 = vcombine.high %v926_v31, %v930_v33 }
 0x33a   :  { %2627 = vmatprep.subr.bf16.mxu0 %v5462_v39  ;;  %v1054_v39 = vld [vmem:[#allocation8 + $0x6d8] sm:$0xff]  ;;  %v725_v51 = vmul.f32 %v6584_v34, %v7119_v42  ;;  %v5695_v34 = vcombine.low %v819_v61, %v823_v46 }
 0x33b   :  { %2667 = vmatpush1.bf16.msra.mxu1 %v5597_v48  ;;  %v1058_v48 = vld [vmem:[#allocation8 + $0x6f8] sm:$0xff] }
 0x33c   :  { %2668 = vmatprep.subr.bf16.mxu1 %v5590_v52  ;;  %v5669_v52 = vcombine.low %v1062_v27, %v1066_v28  ;;  %v5662_v56 = vcombine.high %v1054_v39, %v1058_v48 }
 0x33d   :  { %2628 = vmatpush1.bf16.msra.mxu0 %v5461_v54  ;;  %v918_v54 = vld [vmem:[#allocation8 + $0x298] sm:$0xff] }
 0x33e   :  { %2629 = vmatprep.subr.bf16.mxu0 %v5454_v57  ;;  %v5533_v57 = vcombine.low %v926_v31, %v930_v33  ;;  %v5526_v60 = vcombine.high %v918_v54, %v922_v55  ;;  %v5525_v42 = vcombine.low %v918_v54, %v922_v55  ;;  %v821_v55 = vld [vmem:[#allocation6 + $0x10] sm:$0xff] }
 0x33f   :  { %2669 = vmatpush1.bf16.msra.mxu1 %v5589_v58  ;;  %v1046_v58 = vld [vmem:[#allocation8 + $0x698] sm:$0xff] }
 0x340   :  { %2670 = vmatprep.subr.bf16.mxu1 %v5582_v62  ;;  %v727_v62 = vrot.slane %v725_v51, 1  ;;  %v5653_v47 = vcombine.low %v1046_v58, %v1050_v59 }
 0x341   :  { %2630 = vmatpush1.bf16.msra.mxu0 %v5453_v63  ;;  %v5661_v63 = vcombine.low %v1054_v39, %v1058_v48  ;;  %v834_v39 = vld [vmem:[#allocation6 + $0x78] sm:$0xff] }
 0x342   :  { %2631 = vmatprep.subr.bf16.mxu0 %v5446_v3  ;;  %v5654_v3 = vcombine.high %v1046_v58, %v1050_v59  ;;  %v731_v5 = vmul.f32 %v727_v62, %v7062_v17  ;;  %v828_v17 = vld [vmem:[#allocation6 + $0x48] sm:$0xff]  ;;  %v822_v62 = vld [vmem:[#allocation6 + $0x18] sm:$0xff] }
 0x343   :  { %2671 = vmatpush1.bf16.msra.mxu1 %v5581_v37  ;;  %v1038_v37 = vld [vmem:[#allocation8 + $0x658] sm:$0xff]  ;;  %v5705_v27 = vcombine.low %v828_v17, %v832_v49 }
 0x344   :  { %2672 = vmatprep.subr.bf16.mxu1 %v5574_v53  ;;  %v902_v53 = vld [vmem:[#allocation8 + $0x218] sm:$0xff]  ;;  %v5646_v6 = vcombine.high %v1038_v37, %v1042_v40  ;;  %v733_v15 = vpack.c.bf16 %v731_v5, %v731_v5  ;;  %v6160_v5 = vld [vmem:[#allocation12 + $0x2e4] ss:$16 sps:$4 sm:$0xff]  }
 0x345   :  { %2632 = vmatpush1.bf16.msra.mxu0 %v5445_v4  ;;  %v906_v4 = vld [vmem:[#allocation8 + $0x238] sm:$0xff] }
 0x346   :  { %2633 = vmatprep.subr.bf16.mxu0 %v5566_v7  ;;  %v5517_v7 = vcombine.low %v910_v0, %v914_v2  ;;  %v5510_v10 = vcombine.high %v902_v53, %v906_v4  ;;  %v5509_v16 = vcombine.low %v902_v53, %v906_v4  ;;  %v6157_v53 = vld [vmem:[#allocation12 + $0xe4] ss:$16 sps:$4 sm:$0xff]  }
 0x347   :  { %2673 = vmatpush1.bf16.msra.mxu1 %v5573_v8  ;;  %v1030_v8 = vld [vmem:[#allocation8 + $0x618] sm:$0xff] }
 0x348   :  { %2674 = vmatprep.subr.bf16.mxu1 %v5694_v11  ;;  %v5645_v11 = vcombine.low %v1038_v37, %v1042_v40 }
 0x349   :  { %2634 = vmatpush2.bf16.msra.mxu0 %v5565_v12  ;;  %v827_v12 = vld [vmem:[#allocation6 + $0x40] sm:$0xff] }
 0x34a   :  { %2635 = vmatprep.subr.bf16.mxu0 %v5558_v41  ;;  %v5638_v41 = vcombine.high %v1030_v8, %v1034_v9  ;;  %v5703_v25 = vcombine.low %v827_v12, %v831_v13 }
 0x34b   :  { %2675 = vmatpush2.bf16.msra.mxu1 %v5693_v43  ;;  %v730_v43 = vmul.f32 %v725_v51, %v7057_v14  ;;  %v5696_v14 = vcombine.high %v819_v61, %v823_v46  ;;  %v6187_v61 = vld [vmem:[#allocation12 + $0x44] ss:$16 sps:$4 sm:$0xff]   ;;  %v6182_v46 = vld [vmem:[#allocation12 + $0x260] ss:$16 sps:$4 sm:$0xff]  }
 0x34c   :  { %2676 = vmatprep.subr.bf16.mxu1 %v5686_v18  ;;  %v5704_v18 = vcombine.high %v827_v12, %v831_v13  ;;  %v6172_v12 = vld [vmem:[#allocation12 + $0x2a4] ss:$16 sps:$4 sm:$0xff]   ;;  %v6167_v13 = vld [vmem:[#allocation12 + $0xa0] ss:$16 sps:$4 sm:$0xff]  }
 0x34d   :  { %2636 = vmatpush2.bf16.msra.mxu0 %v5557_v19  ;;  %v5637_v19 = vcombine.low %v1030_v8, %v1034_v9  ;;  %v732_v44 = vpack.c.bf16 %v730_v43, %v730_v43  ;;  %v6158_v8 = vld [vmem:[#allocation12 + $0x2e0] ss:$16 sps:$4 sm:$0xff]   ;;  %v6166_v9 = vld [vmem:[#allocation12 + $0x2c4] ss:$16 sps:$4 sm:$0xff]  }
 0x34e   :  { %2637 = vmatprep.subr.bf16.mxu0 %v5550_v22  ;;  %v2702_v22 = vunpack.c.l.b16 %v733_v15  ;;  %v6175_v15 = vld [vmem:[#allocation12 + $0x84] ss:$16 sps:$4 sm:$0xff]  }
 0x34f   :  { %2677 = vmatpush2.bf16.msra.mxu1 %v5685_v23  ;;  %v5706_v23 = vcombine.high %v828_v17, %v832_v49  ;;  %v6178_v43 = vld [vmem:[#allocation12 + $0x284] ss:$16 sps:$4 sm:$0xff]   ;;  %v6176_v49 = vld [vmem:[#allocation12 + $0x280] ss:$16 sps:$4 sm:$0xff]  }
 0x350   :  { %2678 = vmatprep.subr.bf16.mxu1 %v5678_v26  ;;  %v820_v26 = vld [vmem:[#allocation6 + $0x8] sm:$0xff]  ;;  %v2703_v28 = vrot.slane %v2702_v22, 7  ;;  %v6181_v17 = vld [vmem:[#allocation12 + $0x64] ss:$16 sps:$4 sm:$0xff]  }
 0x351   :  { %2638 = vmatpush2.bf16.msra.mxu0 %v5549_v21  ;;  %v824_v21 = vld [vmem:[#allocation6 + $0x28] sm:$0xff]  ;;  %v6190_v22 = vld [vmem:[#allocation12 + $0x244] ss:$16 sps:$4 sm:$0xff]  }
 0x352   :  { %2639 = vmatprep.subr.bf16.mxu0 %v5542_v29  ;;  %v829_v29 = vld [vmem:[#allocation6 + $0x50] sm:$0xff]  ;;  %v5698_v33 = vcombine.high %v820_v26, %v824_v21 }
 0x353   :  { %2679 = vmatpush2.bf16.msra.mxu1 %v5677_v30  ;;  %v833_v30 = vld [vmem:[#allocation6 + $0x70] sm:$0xff] }
 0x354   :  { %2680 = vmatprep.subr.bf16.mxu1 %v5670_v35  ;;  %v2701_v35 = vunpack.c.l.b16 %v732_v44  ;;  %v5708_v51 = vcombine.high %v829_v29, %v833_v30  ;;  %v6193_v44 = vld [vmem:[#allocation12 + $0x24] ss:$16 sps:$4 sm:$0xff]  }
 0x355   :  { %2640 = vmatpush2.bf16.msra.mxu0 %v5541_v36  ;;  %v830_v36 = vld [vmem:[#allocation6 + $0x58] sm:$0xff] }
 0x356   :  { %2641 = vmatprep.subr.bf16.mxu0 %v5534_v50  ;;  %v2704_v54 = vsel %vm582_vm5, %v2703_v28, %v2701_v35  ;;  %v5710_v59 = vcombine.high %v830_v36, %v834_v39  ;;  %v5709_v37 = vcombine.low %v830_v36, %v834_v39  ;;  %v6202_v28 = vld [vmem:[#allocation12 + $0x204] ss:$16 sps:$4 sm:$0xff]   ;;  %v6206_v36 = vld [vmem:[#allocation12 + $0x3e0] ss:$16 sps:$4 sm:$0xff]  }
 0x357   :  { %2681 = vmatpush2.bf16.msra.mxu1 %v5669_v52  ;;  %v6211_v35 = vld [vmem:[#allocation12 + $0x1c4] ss:$16 sps:$4 sm:$0xff]  }
 0x358   :  { %2682 = vmatprep.subr.bf16.mxu1 %v5662_v56  ;;  %v825_v56 = vld [vmem:[#allocation6 + $0x30] sm:$0xff] }
 0x359   :  { %2642 = vmatpush2.bf16.msra.mxu0 %v5533_v57  ;;  %v6214_v39 = vld [vmem:[#allocation12 + $0x3c4] ss:$16 sps:$4 sm:$0xff]  }
 0x35a   :  { %2643 = vmatprep.subr.bf16.mxu0 %v5526_v60 }
 0x35b   :  { %2683 = vmatpush2.bf16.msra.mxu1 %v5661_v63  ;;  %v826_v63 = vld [vmem:[#allocation6 + $0x38] sm:$0xff] }
 0x35c   :  { %2684 = vmatprep.subr.bf16.mxu1 %v5654_v3  ;;  %v2705_v3 = vpack.c.b16 %v2704_v54, %v2704_v54  ;;  %v5701_v4 = vcombine.low %v822_v62, %v826_v63  ;;  %v6215_v54 = vld [vmem:[#allocation12 + $0x1a0] ss:$16 sps:$4 sm:$0xff]  }
 0x35d   :  { %2644 = vmatpush2.bf16.msra.mxu0 %v5525_v42  ;;  %v5700_v42 = vcombine.high %v821_v55, %v825_v56 }
 0x35e   :  { %2645 = vmatprep.subr.bf16.mxu0 %v5518_v45  ;;  %v5702_v45 = vcombine.high %v822_v62, %v826_v63  ;;  %v6226_v62 = vld [vmem:[#allocation12 + $0x384] ss:$16 sps:$4 sm:$0xff]  }
 0x35f   :  { %2685 = vmatpush2.bf16.msra.mxu1 %v5653_v47  ;;  %v5699_v47 = vcombine.low %v821_v55, %v825_v56  ;;  %v6218_v55 = vld [vmem:[#allocation12 + $0x3a0] ss:$16 sps:$4 sm:$0xff]  }
 0x360   :  { %2686 = vmatprep.subr.bf16.mxu1 %v5646_v6  ;;  %v6155_v6 = vld [vmem:[#allocation12 + $0xe0] ss:$16 sps:$4 sm:$0xff]  }
 0x361   :  { %2646 = vmatpush2.bf16.msra.mxu0 %v5517_v7  ;;  %v6163_v7 = vld [vmem:[#allocation12 + $0xc4] ss:$16 sps:$4 sm:$0xff]  }
 0x362   :  { %2647 = vmatprep.subr.bf16.mxu0 %v5510_v10  ;;  %v6161_v10 = vld [vmem:[#allocation12 + $0xc0] ss:$16 sps:$4 sm:$0xff]  }
 0x363   :  { %2687 = vmatpush2.bf16.msra.mxu1 %v5645_v11  ;;  %v6169_v11 = vld [vmem:[#allocation12 + $0xa4] ss:$16 sps:$4 sm:$0xff]  }
 0x364   :  { %2688 = vmatprep.subr.bf16.mxu1 %v5638_v41  ;;  %v6170_v41 = vld [vmem:[#allocation12 + $0x2a0] ss:$16 sps:$4 sm:$0xff]  }
 0x365   :  { %2648 = vmatpush2.bf16.msra.mxu0 %v5509_v16  ;;  %v6173_v16 = vld [vmem:[#allocation12 + $0x80] ss:$16 sps:$4 sm:$0xff]  }
 0x366   :  { %2801 = vmatprep.subr.bf16.mxu0 %v5704_v18  ;;  %v6184_v18 = vld [vmem:[#allocation12 + $0x264] ss:$16 sps:$4 sm:$0xff]  }
 0x367   :  { %2689 = vmatpush2.bf16.msra.mxu1 %v5637_v19  ;;  %v6179_v19 = vld [vmem:[#allocation12 + $0x60] ss:$16 sps:$4 sm:$0xff]  }
 0x368   :  { %2650 = vmatmul.mubr.bf16.vlgmr.msra.gmra.mxu0 %v7150_v20  ;;  %v2405_v31 = vpop.f32.mrf.mxu0  ;;  %2842 = vmatprep.subr.bf16.mxu1 %v5706_v23  ;;  %v5697_v20 = vcombine.low %v820_v26, %v824_v21  ;;  %v6185_v23 = vld [vmem:[#allocation12 + $0x40] ss:$16 sps:$4 sm:$0xff]   ;;  %v6196_v26 = vld [vmem:[#allocation12 + $0x224] ss:$16 sps:$4 sm:$0xff]  }
 0x369   :  { %2802 = vmatpush1.bf16.msra.mxu0 %v5703_v25  ;;  %2821 = vmatprep.mubr.bf16.mxu0 %v6789_v1  ;;  %v6188_v25 = vld [vmem:[#allocation12 + $0x240] ss:$16 sps:$4 sm:$0xff]  }
 0x36a   :  { %2691 = vmatmul.mubr.bf16.vlgmr.msra.gmra.mxu1 %v7156_v24  ;;  %v2407_v48 = vpop.f32.mrf.mxu0  ;;  %v2446_v50 = vpop.f32.mrf.mxu1  ;;  %2803 = vmatprep.subr.bf16.mxu0 %v5696_v14  ;;  %v5707_v24 = vcombine.low %v829_v29, %v833_v30  ;;  %v6191_v21 = vld [vmem:[#allocation12 + $0x20] ss:$16 sps:$4 sm:$0xff]   ;;  %v6199_v14 = vld [vmem:[#allocation12 + $0x4] ss:$16 sps:$4 sm:$0xff]  }
 0x36b   :  { %v7176_v52 = vadd.f32 %v2446_v50, %v2405_v31  ;;  %2843 = vmatpush1.bf16.msra.mxu1 %v5705_v27  ;;  %2862 = vmatprep.mubr.bf16.mxu1 %v6789_v1  ;;  %v6194_v27 = vld [vmem:[#allocation12 + $0x220] ss:$16 sps:$4 sm:$0xff]   ;;  %v6205_v30 = vld [vmem:[#allocation12 + $0x1e4] ss:$16 sps:$4 sm:$0xff]  }
 0x36c   :  { %v2409_v57 = vpop.f32.mrf.mxu0  ;;  %v2448_v58 = vpop.f32.mrf.mxu1  ;;  %2844 = vmatprep.subr.bf16.mxu1 %v5698_v33  ;;  %v6197_v29 = vld [vmem:[#allocation12] ss:$16 sps:$4 sm:$0xff]   ;;  %v6208_v33 = vld [vmem:[#allocation12 + $0x3e4] ss:$16 sps:$4 sm:$0xff]  }
 0x36d   :  { %v7180_v60 = vadd.f32 %v2448_v58, %v2407_v48  ;;  %2804 = vmatpush1.bf16.msra.mxu0 %v5695_v34  ;;  %v6200_v31 = vld [vmem:[#allocation12 + $0x200] ss:$16 sps:$4 sm:$0xff]   ;;  %v6217_v50 = vld [vmem:[#allocation12 + $0x1a4] ss:$16 sps:$4 sm:$0xff]  }
 0x36e   :  { %v2410_v0 = vpop.f32.mrf.mxu0  ;;  %v2450_v2 = vpop.f32.mrf.mxu1  ;;  %2883 = vmatprep.subr.bf16.mxu0 %v5708_v51  ;;  %v6203_v34 = vld [vmem:[#allocation12 + $0x1e0] ss:$16 sps:$4 sm:$0xff]   ;;  %v6223_v58 = vld [vmem:[#allocation12 + $0x184] ss:$16 sps:$4 sm:$0xff]  }
 0x36f   :  { %2845 = vmatpush1.bf16.msra.mxu1 %v5697_v20  ;;  %v6209_v48 = vld [vmem:[#allocation12 + $0x1c0] ss:$16 sps:$4 sm:$0xff]   ;;  %v6220_v20 = vld [vmem:[#allocation12 + $0x3a4] ss:$16 sps:$4 sm:$0xff]  }
 0x370   :  { %5711 = vmatmul.mubr.msk.bf16.vlgmr.msra.gmra.mxu0 %vm190_vm1, %v2705_v3  ;;  %v2451_v40 = vpop.f32.mrf.mxu1  ;;  %2924 = vmatprep.subr.bf16.mxu1 %v5710_v59  ;;  %v6212_v51 = vld [vmem:[#allocation12 + $0x3c0] ss:$16 sps:$4 sm:$0xff]  }
 0x371   :  { %2884 = vmatpush1.bf16.msra.mxu0 %v5707_v24  ;;  %2903 = vmatprep.mubr.bf16.mxu0 %v6789_v1  ;;  %v6221_v57 = vld [vmem:[#allocation12 + $0x180] ss:$16 sps:$4 sm:$0xff]  }
 0x372   :  { %5712 = vmatmul.mubr.msk.bf16.vlgmr.msra.gmra.mxu1 %vm190_vm1, %v2705_v3  ;;  %2885 = vmatprep.subr.bf16.mxu0 %v5700_v42  ;;  %v6224_v0 = vld [vmem:[#allocation12 + $0x380] ss:$16 sps:$4 sm:$0xff]   ;;  %v6229_v42 = vld [vmem:[#allocation12 + $0x164] ss:$16 sps:$4 sm:$0xff]  }
 0x373   :  { %2925 = vmatpush1.bf16.msra.mxu1 %v5709_v37  ;;  %2944 = vmatprep.mubr.bf16.mxu1 %v6789_v1  ;;  %v6164_v1 = vld [vmem:[#allocation12 + $0x2c0] ss:$16 sps:$4 sm:$0xff]  }
 0x374   :  { %2926 = vmatprep.subr.bf16.mxu1 %v5702_v45  ;;  %v6227_v40 = vld [vmem:[#allocation12 + $0x160] ss:$16 sps:$4 sm:$0xff]  }
 0x375   :  { %2886 = vmatpush1.bf16.msra.mxu0 %v5699_v47 }
 0x376   :  { %4605 = vmatprep.subr.bf16.mxu0 %v6157_v53  ;;  %v6230_v53 = vld [vmem:[#allocation12 + $0x360] ss:$16 sps:$4 sm:$0xff]  }
 0x377   :  { %2927 = vmatpush1.bf16.msra.mxu1 %v5701_v4  ;;  %v6232_v4 = vld [vmem:[#allocation12 + $0x364] ss:$16 sps:$4 sm:$0xff]  }
 0x378   :  { %5713 = vmatmul.mubr.msk.bf16.vlgmr.msra.gmra.mxu0 %vm190_vm1, %v2705_v3  ;;  %4646 = vmatprep.subr.bf16.mxu1 %v6160_v5 }
 0x379   :  { %4606 = vmatpush1.bf16.msra.mxu0 %v6155_v6  ;;  %v6235_v6 = vld [vmem:[#allocation12 + $0x144] ss:$16 sps:$4 sm:$0xff]  }
 0x37a   :  { %5714 = vmatmul.mubr.msk.bf16.vlgmr.msra.gmra.mxu1 %vm190_vm1, %v2705_v3  ;;  %4607 = vmatprep.subr.bf16.mxu0 %v6163_v7  ;;  %v6233_v7 = vld [vmem:[#allocation12 + $0x140] ss:$16 sps:$4 sm:$0xff]  }
 0x37b   :  { %4647 = vmatpush1.bf16.msra.mxu1 %v6158_v8  ;;  %v6238_v8 = vld [vmem:[#allocation12 + $0x344] ss:$16 sps:$4 sm:$0xff]  }
 0x37c   :  { %4648 = vmatprep.subr.bf16.mxu1 %v6166_v9  ;;  %v6236_v9 = vld [vmem:[#allocation12 + $0x340] ss:$16 sps:$4 sm:$0xff]  }
 0x37d   :  { %4608 = vmatpush1.bf16.msra.mxu0 %v6161_v10  ;;  %v6241_v10 = vld [vmem:[#allocation12 + $0x124] ss:$16 sps:$4 sm:$0xff]  }
 0x37e   :  { %4609 = vmatprep.subr.bf16.mxu0 %v6169_v11  ;;  %v6239_v11 = vld [vmem:[#allocation12 + $0x120] ss:$16 sps:$4 sm:$0xff]  }
 0x37f   :  { %4649 = vmatpush1.bf16.msra.mxu1 %v6164_v1  ;;  %v6244_v1 = vld [vmem:[#allocation12 + $0x324] ss:$16 sps:$4 sm:$0xff]  }
 0x380   :  { %4650 = vmatprep.subr.bf16.mxu1 %v6172_v12  ;;  %v6242_v12 = vld [vmem:[#allocation12 + $0x320] ss:$16 sps:$4 sm:$0xff]  }
 0x381   :  { %4610 = vmatpush1.bf16.msra.mxu0 %v6167_v13  ;;  %v6247_v13 = vld [vmem:[#allocation12 + $0x104] ss:$16 sps:$4 sm:$0xff]  }
 0x382   :  { %4611 = vmatprep.subr.bf16.mxu0 %v6175_v15  ;;  %v6245_v15 = vld [vmem:[#allocation12 + $0x100] ss:$16 sps:$4 sm:$0xff]  }
 0x383   :  { %4651 = vmatpush1.bf16.msra.mxu1 %v6170_v41  ;;  %v6250_v41 = vld [vmem:[#allocation12 + $0x304] ss:$16 sps:$4 sm:$0xff]  }
 0x384   :  { %4652 = vmatprep.subr.bf16.mxu1 %v6178_v43  ;;  %v6248_v43 = vld [vmem:[#allocation12 + $0x300] ss:$16 sps:$4 sm:$0xff]  }
 0x385   :  { %4612 = vmatpush1.bf16.msra.mxu0 %v6173_v16  ;;  %v6253_v16 = vld [vmem:[#allocation12 + $0x4e4] ss:$16 sps:$4 sm:$0xff]  }
 0x386   :  { %4613 = vmatprep.subr.bf16.mxu0 %v6181_v17  ;;  %v6256_v17 = vld [vmem:[#allocation12 + $0x6e4] ss:$16 sps:$4 sm:$0xff]  }
 0x387   :  { %4653 = vmatpush1.bf16.msra.mxu1 %v6176_v49 }
 0x388   :  { %4654 = vmatprep.subr.bf16.mxu1 %v6184_v18 }
 0x389   :  { %4614 = vmatpush1.bf16.msra.mxu0 %v6179_v19 }
 0x38a   :  { %4615 = vmatprep.subr.bf16.mxu0 %v6187_v61 }
 0x38b   :  { %4655 = vmatpush1.bf16.msra.mxu1 %v6182_v46 }
 0x38c   :  { %4656 = vmatprep.subr.bf16.mxu1 %v6190_v22 }
 0x38d   :  { %4616 = vmatpush1.bf16.msra.mxu0 %v6185_v23 }
 0x38e   :  { %4617 = vmatprep.subr.bf16.mxu0 %v6193_v44 }
 0x38f   :  { %4657 = vmatpush1.bf16.msra.mxu1 %v6188_v25 }
 0x390   :  { %4658 = vmatprep.subr.bf16.mxu1 %v6196_v26 }
 0x391   :  { %4618 = vmatpush1.bf16.msra.mxu0 %v6191_v21 }
 0x392   :  { %4619 = vmatprep.subr.bf16.mxu0 %v6199_v14 }
 0x393   :  { %4659 = vmatpush1.bf16.msra.mxu1 %v6194_v27 }
 0x394   :  { %4660 = vmatprep.subr.bf16.mxu1 %v6202_v28 }
 0x395   :  { %4620 = vmatpush1.bf16.msra.mxu0 %v6197_v29  ;;  %v7195_v29 = vsub.s32 0, %v7014_v38 }
 0x396   :  { %4621 = vmatprep.subr.bf16.mxu0 %v6205_v30 }
 0x397   :  { %4661 = vmatpush1.bf16.msra.mxu1 %v6200_v31 }
 0x398   :  { %4662 = vmatprep.subr.bf16.mxu1 %v6208_v33  ;;  %v2953_v33 = vld [vmem:[#allocation9] sm:$0xff] }
 0x399   :  { %4622 = vmatpush2.bf16.msra.mxu0 %v6203_v34  ;;  %v7198_v34 = vsub.s32 1, %v7014_v38 }
 0x39a   :  { %4623 = vmatprep.subr.bf16.mxu0 %v6211_v35  ;;  %v7201_v35 = vsub.s32 2, %v7014_v38 }
 0x39b   :  { %4663 = vmatpush2.bf16.msra.mxu1 %v6206_v36 }
 0x39c   :  { %4664 = vmatprep.subr.bf16.mxu1 %v6214_v39 }
 0x39d   :  { %4624 = vmatpush2.bf16.msra.mxu0 %v6209_v48  ;;  %v3003_v48 = vld [vmem:[#allocation11] sm:$0xff] }
 0x39e   :  { %4625 = vmatprep.subr.bf16.mxu0 %v6217_v50  ;;  %v7204_v50 = vsub.s32 3, %v7014_v38 }
 0x39f   :  { %4665 = vmatpush2.bf16.msra.mxu1 %v6212_v51  ;;  %v2958_v51 = vrot.slane %v2953_v33, %v7195_v29 }
 0x3a0   :  { %4666 = vmatprep.subr.bf16.mxu1 %v6220_v20 }
 0x3a1   :  { %4626 = vmatpush2.bf16.msra.mxu0 %v6215_v54 }
 0x3a2   :  { %4627 = vmatprep.subr.bf16.mxu0 %v6223_v58  ;;  %v2966_v58 = vrot.slane %v2953_v33, %v7201_v35 }
 0x3a3   :  { %4667 = vmatpush2.bf16.msra.mxu1 %v6218_v55 }
 0x3a4   :  { %4668 = vmatprep.subr.bf16.mxu1 %v6226_v62 }
 0x3a5   :  { %4628 = vmatpush2.bf16.msra.mxu0 %v6221_v57  ;;  %v2962_v57 = vrot.slane %v2953_v33, %v7198_v34 }
 0x3a6   :  { %4629 = vmatprep.subr.bf16.mxu0 %v6229_v42 }
 0x3a7   :  { %4669 = vmatpush2.bf16.msra.mxu1 %v6224_v0  ;;  %v3016_v0 = vrot.slane %v3003_v48, %v7201_v35 }
 0x3a8   :  { %v2487_v56 = vpop.f32.mrf.mxu0  ;;  %4670 = vmatprep.subr.bf16.mxu1 %v6232_v4  ;;  %v2977_v4 = vsub.s32 5, %v7014_v38 }
 0x3a9   :  { %4630 = vmatpush2.bf16.msra.mxu0 %v6227_v40 }
 0x3aa   :  { %v2489_v59 = vpop.f32.mrf.mxu0  ;;  %v2528_v24 = vpop.f32.mrf.mxu1  ;;  %4631 = vmatprep.subr.bf16.mxu0 %v6235_v6 }
 0x3ab   :  { %v7188_v63 = vadd.f32 %v2528_v24, %v2487_v56  ;;  %4671 = vmatpush2.bf16.msra.mxu1 %v6230_v53  ;;  %v3008_v56 = vrot.slane %v3003_v48, %v7195_v29  ;;  %v3012_v24 = vrot.slane %v3003_v48, %v7198_v34  ;;  %v3020_v53 = vrot.slane %v3003_v48, %v7204_v50 }
 0x3ac   :  { %v2491_v2 = vpop.f32.mrf.mxu0  ;;  %v2530_v3 = vpop.f32.mrf.mxu1  ;;  %4672 = vmatprep.subr.bf16.mxu1 %v6238_v8 }
 0x3ad   :  { %v7190_v37 = vadd.f32 %v2530_v3, %v2489_v59  ;;  %4632 = vmatpush2.bf16.msra.mxu0 %v6233_v7  ;;  %v2970_v2 = vrot.slane %v2953_v33, %v7204_v50 }
 0x3ae   :  { %v2492_v45 = vpop.f32.mrf.mxu0  ;;  %v2532_v47 = vpop.f32.mrf.mxu1  ;;  %4633 = vmatprep.subr.bf16.mxu0 %v6241_v10 }
 0x3af   :  { %4673 = vmatpush2.bf16.msra.mxu1 %v6236_v9 }
 0x3b0   :  { %v2533_v5 = vpop.f32.mrf.mxu1  ;;  %4674 = vmatprep.subr.bf16.mxu1 %v6244_v1 }
 0x3b1   :  { %4634 = vmatpush2.bf16.msra.mxu0 %v6239_v11  ;;  %v2981_v5 = vsub.s32 6, %v7014_v38 }
 0x3b2   :  { %4635 = vmatprep.subr.bf16.mxu0 %v6247_v13 }
 0x3b3   :  { %4675 = vmatpush2.bf16.msra.mxu1 %v6242_v12 }
 0x3b4   :  { %4676 = vmatprep.subr.bf16.mxu1 %v6250_v41 }
 0x3b5   :  { %4636 = vmatpush2.bf16.msra.mxu0 %v6245_v15 }
 0x3b6   :  { %4687 = vmatprep.subr.bf16.mxu0 %v6253_v16 }
 0x3b7   :  { %4677 = vmatpush2.bf16.msra.mxu1 %v6248_v43 }
 0x3b8   :  { %4728 = vmatprep.subr.bf16.mxu1 %v6256_v17  ;;  %v2978_v17 = vrot.slane %v2953_v33, %v2977_v4 }
 0x3e8   :  { %v2569_v49 = vpop.f32.mrf.mxu0 }
 0x3ea   :  { %v2571_v18 = vpop.f32.mrf.mxu0  ;;  %v2610_v19 = vpop.f32.mrf.mxu1 }
 0x3eb   :  { %v2611_v61 = vadd.f32 %v2610_v19, %v2569_v49  ;;  %v3028_v19 = vrot.slane %v3003_v48, %v2977_v4  ;;  %v6260_v4 = vld [vmem:[#allocation12 + $0x6c0] ss:$16 sps:$4 sm:$0xff]  }
 0x3ec   :  { %v2573_v46 = vpop.f32.mrf.mxu0  ;;  %v2612_v22 = vpop.f32.mrf.mxu1 }
 0x3ed   :  { %v7192_v23 = vadd.f32 %v2612_v22, %v2571_v18  ;;  %v2982_v46 = vrot.slane %v2953_v33, %v2981_v5 }
 0x3ee   :  { %v2574_v44 = vpop.f32.mrf.mxu0  ;;  %v2614_v25 = vpop.f32.mrf.mxu1 }
 0x3ef   :  { %v3032_v25 = vrot.slane %v3003_v48, %v2981_v5 }
 0x3f0   :  { %v2615_v26 = vpop.f32.mrf.mxu1 }
 0x428   :  { %v2651_v21 = vpop.f32.mrf.mxu0 }
 0x42a   :  { %v2653_v14 = vpop.f32.mrf.mxu0  ;;  %v2692_v27 = vpop.f32.mrf.mxu1 }
 0x42b   :  { %v2693_v28 = vadd.f32 %v2692_v27, %v2651_v21 }
 0x42c   :  { %v2655_v30 = vpop.f32.mrf.mxu0  ;;  %v2694_v31 = vpop.f32.mrf.mxu1 }
 0x42d   :  { %v2695_v22 = vadd.f32 %v2694_v31, %v2653_v14 }
 0x42e   :  { %v2656_v36 = vpop.f32.mrf.mxu0  ;;  %v2696_v39 = vpop.f32.mrf.mxu1 }
 0x430   :  { %v2697_v20 = vpop.f32.mrf.mxu1  ;;  %v2823_v54 = vpop.f32.mrf.mxu0 }
 0x431   :  { %v2824_v55 = vadd.f32 %v2823_v54, %v7176_v52  ;;  %v2973_v52 = vsub.s32 4, %v7014_v38 }
 0x432   :  { %v2825_v59 = vpop.f32.mrf.mxu0  ;;  %v2864_v62 = vpop.f32.mrf.mxu1 }
 0x433   :  { %v2995_v3 = vmul.f32 %v2958_v51, %v2824_v55  ;;  %v2826_v42 = vadd.f32 %v2825_v59, %v7180_v60  ;;  %v2865_v40 = vadd.f32 %v2864_v62, %v7188_v63  ;;  %v2985_v60 = vsub.s32 7, %v7014_v38  ;;  %v6259_v59 = vld [vmem:[#allocation12 + $0x4c4] ss:$16 sps:$4 sm:$0xff]   ;;  %v6254_v62 = vld [vmem:[#allocation12 + $0x6e0] ss:$16 sps:$4 sm:$0xff]  }
 0x434   :  { %v2827_v45 = vpop.f32.mrf.mxu0  ;;  %v2866_v47 = vpop.f32.mrf.mxu1  ;;  %v2974_v13 = vrot.slane %v2953_v33, %v2973_v52  ;;  %v3024_v16 = vrot.slane %v3003_v48, %v2973_v52  ;;  %v6257_v52 = vld [vmem:[#allocation12 + $0x4c0] ss:$16 sps:$4 sm:$0xff]  }
 0x435   :  { %v3045_v6 = vadd.f32 %v3008_v56, %v2995_v3  ;;  %v2996_v7 = vmul.f32 %v2962_v57, %v2826_v42  ;;  %v2997_v8 = vmul.f32 %v2966_v58, %v2865_v40  ;;  %v2867_v9 = vadd.f32 %v2866_v47, %v7190_v37  ;;  %v6262_v42 = vld [vmem:[#allocation12 + $0x6c4] ss:$16 sps:$4 sm:$0xff]  }
 0x436   :  { %v2828_v10 = vpop.f32.mrf.mxu0  ;;  %v2868_v11 = vpop.f32.mrf.mxu1  ;;  %v2986_v26 = vrot.slane %v2953_v33, %v2985_v60  ;;  %v3036_v55 = vrot.slane %v3003_v48, %v2985_v60  ;;  %v6265_v47 = vld [vmem:[#allocation12 + $0x4a4] ss:$16 sps:$4 sm:$0xff]  }
 0x437   :  { %v3046_v63 = vadd.f32 %v3012_v24, %v2996_v7  ;;  %v3047_v1 = vadd.f32 %v3016_v0, %v2997_v8  ;;  %v2998_v12 = vmul.f32 %v2970_v2, %v2867_v9  ;;  %v3053_v15 = vmax.f32 %v3045_v6, 0.0  ;;  %v6268_v6 = vld [vmem:[#allocation12 + $0x6a4] ss:$16 sps:$4 sm:$0xff]   ;;  %v6263_v8 = vld [vmem:[#allocation12 + $0x4a0] ss:$16 sps:$4 sm:$0xff]  }
 0x438   :  { %v2869_v41 = vpop.f32.mrf.mxu1  ;;  %v2905_v43 = vpop.f32.mrf.mxu0  ;;  %v6271_v10 = vld [vmem:[#allocation12 + $0x484] ss:$16 sps:$4 sm:$0xff]   ;;  %v6266_v11 = vld [vmem:[#allocation12 + $0x6a0] ss:$16 sps:$4 sm:$0xff]  }
 0x439   :  { %v3048_v49 = vadd.f32 %v3020_v53, %v2998_v12  ;;  %v2906_v18 = vadd.f32 %v2905_v43, %v2611_v61  ;;  %v3054_v21 = vmax.f32 %v3046_v63, 0.0  ;;  %v3055_v27 = vmax.f32 %v3047_v1, 0.0  ;;  %v6251_v61 = vld [vmem:[#allocation12 + $0x4e0] ss:$16 sps:$4 sm:$0xff]   ;;  %v6274_v60 = vld [vmem:[#allocation12 + $0x684] ss:$16 sps:$4 sm:$0xff]  }
 0x43a   :  { %v2907_v44 = vpop.f32.mrf.mxu0  ;;  %v2946_v37 = vpop.f32.mrf.mxu1  ;;  %v7223_v51 = vpack.c.bf16 %v3053_v15, %v3053_v15  ;;  %v6269_v63 = vld [vmem:[#allocation12 + $0x480] ss:$16 sps:$4 sm:$0xff]   ;;  %v6277_v1 = vld [vmem:[#allocation12 + $0x464] ss:$16 sps:$4 sm:$0xff]  }
 0x43b   :  { %v2999_v30 = vmul.f32 %v2974_v13, %v2906_v18  ;;  %v2908_v36 = vadd.f32 %v2907_v44, %v7192_v23  ;;  %v2947_v39 = vadd.f32 %v2946_v37, %v2693_v28  ;;  %v7225_v56 = vpack.c.bf16 %v3054_v21, %v3054_v21  ;;  %v6272_v12 = vld [vmem:[#allocation12 + $0x680] ss:$16 sps:$4 sm:$0xff]   ;;  %v6280_v13 = vld [vmem:[#allocation12 + $0x664] ss:$16 sps:$4 sm:$0xff]  }
 0x43c   :  { %v2909_v20 = vpop.f32.mrf.mxu0  ;;  %v2948_v54 = vpop.f32.mrf.mxu1  ;;  %v3056_v57 = vmax.f32 %v3048_v49, 0.0  ;;  %v7232_v0 = vpack.c.bf16 %v3055_v27, %v3055_v27  ;;  %v6275_v15 = vld [vmem:[#allocation12 + $0x460] ss:$16 sps:$4 sm:$0xff]   ;;  %v6283_v41 = vld [vmem:[#allocation12 + $0x444] ss:$16 sps:$4 sm:$0xff]  }
 0x43d   :  { %v7227_v14 = vadd.f32 %v3024_v16, %v2999_v30  ;;  %v3000_v31 = vmul.f32 %v2978_v17, %v2908_v36  ;;  %v3001_v58 = vmul.f32 %v2982_v46, %v2947_v39  ;;  %v2949_v33 = vadd.f32 %v2948_v54, %v2695_v22  ;;  %4637 = vmatprep.mubr.bf16.mxu0 %v7225_v56  ;;  %v6278_v43 = vld [vmem:[#allocation12 + $0x660] ss:$16 sps:$4 sm:$0xff]   ;;  %v6286_v16 = vld [vmem:[#allocation12 + $0x644] ss:$16 sps:$4 sm:$0xff]  }
 0x43e   :  { %v2910_v24 = vpop.f32.mrf.mxu0  ;;  %v2950_v23 = vpop.f32.mrf.mxu1  ;;  %v7230_v28 = vpack.c.bf16 %v3056_v57, %v3056_v57  ;;  %4638 = vmatmul.mubr.bf16.vlgmr.msra.gmra.mxu0 %v7223_v51  ;;  %v6281_v17 = vld [vmem:[#allocation12 + $0x440] ss:$16 sps:$4 sm:$0xff]   ;;  %v6289_v49 = vld [vmem:[#allocation12 + $0x424] ss:$16 sps:$4 sm:$0xff]  }
 0x43f   :  { %v3050_v48 = vadd.f32 %v3028_v19, %v3000_v31  ;;  %v7234_v2 = vadd.f32 %v3032_v25, %v3001_v58  ;;  %v3002_v3 = vmul.f32 %v2986_v26, %v2949_v33  ;;  %4688 = vmatpush1.bf16.msra.mxu0 %v6251_v61  ;;  %v6284_v18 = vld [vmem:[#allocation12 + $0x640] ss:$16 sps:$4 sm:$0xff]   ;;  %v6292_v19 = vld [vmem:[#allocation12 + $0x624] ss:$16 sps:$4 sm:$0xff]  }
 0x440   :  { %4678 = vmatprep.mubr.bf16.mxu1 %v7230_v28  ;;  %v2951_v40 = vpop.f32.mrf.mxu1  ;;  %4689 = vmatprep.subr.bf16.mxu0 %v6259_v59  ;;  %v6287_v46 = vld [vmem:[#allocation12 + $0x420] ss:$16 sps:$4 sm:$0xff]   ;;  %v6295_v22 = vld [vmem:[#allocation12 + $0x404] ss:$16 sps:$4 sm:$0xff]  }
 0x441   :  { %v3052_v45 = vadd.f32 %v3036_v55, %v3002_v3  ;;  %4679 = vmatmul.mubr.bf16.vlgmr.msra.gmra.mxu1 %v7232_v0  ;;  %v3058_v53 = vmax.f32 %v3050_v48, 0.0  ;;  %v6290_v44 = vld [vmem:[#allocation12 + $0x620] ss:$16 sps:$4 sm:$0xff]   ;;  %v6298_v37 = vld [vmem:[#allocation12 + $0x604] ss:$16 sps:$4 sm:$0xff]  }
 0x442   :  { %4729 = vmatpush1.bf16.msra.mxu1 %v6254_v62  ;;  %v6293_v25 = vld [vmem:[#allocation12 + $0x400] ss:$16 sps:$4 sm:$0xff]   ;;  %v6301_v26 = vld [vmem:[#allocation12 + $0x5e4] ss:$16 sps:$4 sm:$0xff]  }
 0x443   :  { %4730 = vmatprep.subr.bf16.mxu1 %v6262_v42  ;;  %v7239_v5 = vpack.c.bf16 %v3058_v53, %v3058_v53  ;;  %v3060_v7 = vmax.f32 %v3052_v45, 0.0  ;;  %4690 = vmatpush1.bf16.msra.mxu0 %v6257_v52  ;;  %v6296_v21 = vld [vmem:[#allocation12 + $0x600] ss:$16 sps:$4 sm:$0xff]   ;;  %v6304_v27 = vld [vmem:[#allocation12 + $0x7e4] ss:$16 sps:$4 sm:$0xff]  }
 0x444   :  { %4691 = vmatprep.subr.bf16.mxu0 %v6265_v47  ;;  %v6299_v30 = vld [vmem:[#allocation12 + $0x5e0] ss:$16 sps:$4 sm:$0xff]   ;;  %v6307_v36 = vld [vmem:[#allocation12 + $0x5c4] ss:$16 sps:$4 sm:$0xff]  }
 0x445   :  { %4719 = vmatprep.mubr.bf16.mxu0 %v7239_v5  ;;  %v7242_v9 = vpack.c.bf16 %v3060_v7, %v3060_v7  ;;  %v6302_v39 = vld [vmem:[#allocation12 + $0x7e0] ss:$16 sps:$4 sm:$0xff]   ;;  %v6310_v20 = vld [vmem:[#allocation12 + $0x7c4] ss:$16 sps:$4 sm:$0xff]  }
 0x446   :  { %4731 = vmatpush1.bf16.msra.mxu1 %v6260_v4  ;;  %v6305_v54 = vld [vmem:[#allocation12 + $0x5c0] ss:$16 sps:$4 sm:$0xff]   ;;  %v6313_v55 = vld [vmem:[#allocation12 + $0x5a4] ss:$16 sps:$4 sm:$0xff]  }
 0x447   :  { %4732 = vmatprep.subr.bf16.mxu1 %v6268_v6  ;;  %4760 = vmatprep.mubr.bf16.mxu1 %v7242_v9  ;;  %v6308_v61 = vld [vmem:[#allocation12 + $0x7c0] ss:$16 sps:$4 sm:$0xff]   ;;  %v6316_v57 = vld [vmem:[#allocation12 + $0x7a4] ss:$16 sps:$4 sm:$0xff]  }
 0x448   :  { %4692 = vmatpush1.bf16.msra.mxu0 %v6263_v8  ;;  %v6311_v31 = vld [vmem:[#allocation12 + $0x5a0] ss:$16 sps:$4 sm:$0xff]   ;;  %v6319_v58 = vld [vmem:[#allocation12 + $0x584] ss:$16 sps:$4 sm:$0xff]  }
 0x449   :  { %4693 = vmatprep.subr.bf16.mxu0 %v6271_v10  ;;  %v6314_v33 = vld [vmem:[#allocation12 + $0x7a0] ss:$16 sps:$4 sm:$0xff]   ;;  %v6322_v59 = vld [vmem:[#allocation12 + $0x784] ss:$16 sps:$4 sm:$0xff]  }
 0x44a   :  { %4733 = vmatpush1.bf16.msra.mxu1 %v6266_v11  ;;  %v6317_v24 = vld [vmem:[#allocation12 + $0x580] ss:$16 sps:$4 sm:$0xff]   ;;  %v6325_v23 = vld [vmem:[#allocation12 + $0x564] ss:$16 sps:$4 sm:$0xff]  }
 0x44b   :  { %4734 = vmatprep.subr.bf16.mxu1 %v6274_v60  ;;  %v6320_v62 = vld [vmem:[#allocation12 + $0x780] ss:$16 sps:$4 sm:$0xff]   ;;  %v6328_v48 = vld [vmem:[#allocation12 + $0x764] ss:$16 sps:$4 sm:$0xff]   ;;  %v3057_v60 = vmax.f32 %v7227_v14, 0.0 }
 0x44c   :  { %4694 = vmatpush1.bf16.msra.mxu0 %v6269_v63  ;;  %v6323_v3 = vld [vmem:[#allocation12 + $0x560] ss:$16 sps:$4 sm:$0xff]   ;;  %v6331_v42 = vld [vmem:[#allocation12 + $0x544] ss:$16 sps:$4 sm:$0xff]   ;;  %v6349_v63 = vld [vmem:[#allocation12 + $0xec] ss:$16 sps:$4 sm:$0xff]  }
 0x44d   :  { %4695 = vmatprep.subr.bf16.mxu0 %v6277_v1  ;;  %v6326_v40 = vld [vmem:[#allocation12 + $0x760] ss:$16 sps:$4 sm:$0xff]   ;;  %v6334_v52 = vld [vmem:[#allocation12 + $0x744] ss:$16 sps:$4 sm:$0xff]   ;;  %v6358_v14 = vld [vmem:[#allocation12 + $0x2cc] ss:$16 sps:$4 sm:$0xff]  }
 0x44e   :  { %4735 = vmatpush1.bf16.msra.mxu1 %v6272_v12  ;;  %v6329_v45 = vld [vmem:[#allocation12 + $0x540] ss:$16 sps:$4 sm:$0xff]   ;;  %v6337_v47 = vld [vmem:[#allocation12 + $0x524] ss:$16 sps:$4 sm:$0xff]   ;;  %v3059_v12 = vmax.f32 %v7234_v2, 0.0 }
 0x44f   :  { %4736 = vmatprep.subr.bf16.mxu1 %v6280_v13  ;;  %v6332_v53 = vld [vmem:[#allocation12 + $0x740] ss:$16 sps:$4 sm:$0xff]   ;;  %v6340_v4 = vld [vmem:[#allocation12 + $0x724] ss:$16 sps:$4 sm:$0xff]   ;;  %v6352_v13 = vld [vmem:[#allocation12 + $0x2ec] ss:$16 sps:$4 sm:$0xff]  }
 0x450   :  { %4696 = vmatpush1.bf16.msra.mxu0 %v6275_v15  ;;  %v6335_v6 = vld [vmem:[#allocation12 + $0x520] ss:$16 sps:$4 sm:$0xff]   ;;  %v6343_v7 = vld [vmem:[#allocation12 + $0x504] ss:$16 sps:$4 sm:$0xff]   ;;  %v6347_v15 = vld [vmem:[#allocation12 + $0xe8] ss:$16 sps:$4 sm:$0xff]  }
 0x451   :  { %4697 = vmatprep.subr.bf16.mxu0 %v6283_v41  ;;  %v6338_v8 = vld [vmem:[#allocation12 + $0x720] ss:$16 sps:$4 sm:$0xff]   ;;  %v6346_v10 = vld [vmem:[#allocation12 + $0x704] ss:$16 sps:$4 sm:$0xff]   ;;  %v7247_v41 = vpack.c.bf16 %v3057_v60, %v3057_v60  ;;  %v6353_v2 = vld [vmem:[#allocation12 + $0xc8] ss:$16 sps:$4 sm:$0xff]  }
 0x452   :  { %4737 = vmatpush1.bf16.msra.mxu1 %v6278_v43  ;;  %v6341_v11 = vld [vmem:[#allocation12 + $0x500] ss:$16 sps:$4 sm:$0xff]   ;;  %v6355_v43 = vld [vmem:[#allocation12 + $0xcc] ss:$16 sps:$4 sm:$0xff]  }
 0x453   :  { %4738 = vmatprep.subr.bf16.mxu1 %v6286_v16  ;;  %v6344_v1 = vld [vmem:[#allocation12 + $0x700] ss:$16 sps:$4 sm:$0xff]   ;;  %v6350_v16 = vld [vmem:[#allocation12 + $0x2e8] ss:$16 sps:$4 sm:$0xff]   ;;  %v6424_v60 = vld [vmem:[#allocation12 + $0x36c] ss:$16 sps:$4 sm:$0xff]  }
 0x454   :  { %4698 = vmatpush1.bf16.msra.mxu0 %v6281_v17  ;;  %v7249_v17 = vpack.c.bf16 %v3059_v12, %v3059_v12  ;;  %v6422_v12 = vld [vmem:[#allocation12 + $0x368] ss:$16 sps:$4 sm:$0xff]  }
 0x455   :  { %4699 = vmatprep.subr.bf16.mxu0 %v6289_v49  ;;  %v6361_v49 = vld [vmem:[#allocation12 + $0xac] ss:$16 sps:$4 sm:$0xff]  }
 0x456   :  { %4739 = vmatpush1.bf16.msra.mxu1 %v6284_v18  ;;  %v6356_v18 = vld [vmem:[#allocation12 + $0x2c8] ss:$16 sps:$4 sm:$0xff]  }
 0x457   :  { %4740 = vmatprep.subr.bf16.mxu1 %v6292_v19  ;;  %v6364_v19 = vld [vmem:[#allocation12 + $0x2ac] ss:$16 sps:$4 sm:$0xff]  }
 0x458   :  { %4700 = vmatpush1.bf16.msra.mxu0 %v6287_v46  ;;  %v6359_v46 = vld [vmem:[#allocation12 + $0xa8] ss:$16 sps:$4 sm:$0xff]  }
 0x459   :  { %4701 = vmatprep.subr.bf16.mxu0 %v6295_v22  ;;  %v6367_v22 = vld [vmem:[#allocation12 + $0x8c] ss:$16 sps:$4 sm:$0xff]  }
 0x45a   :  { %4741 = vmatpush1.bf16.msra.mxu1 %v6290_v44  ;;  %v6362_v44 = vld [vmem:[#allocation12 + $0x2a8] ss:$16 sps:$4 sm:$0xff]  }
 0x45b   :  { %4742 = vmatprep.subr.bf16.mxu1 %v6298_v37  ;;  %v6370_v37 = vld [vmem:[#allocation12 + $0x28c] ss:$16 sps:$4 sm:$0xff]  }
 0x45c   :  { %4702 = vmatpush1.bf16.msra.mxu0 %v6293_v25  ;;  %v6373_v25 = vld [vmem:[#allocation12 + $0x6c] ss:$16 sps:$4 sm:$0xff]  }
 0x45d   :  { %4703 = vmatprep.subr.bf16.mxu0 %v6301_v26  ;;  %v6368_v26 = vld [vmem:[#allocation12 + $0x288] ss:$16 sps:$4 sm:$0xff]  }
 0x45e   :  { %4743 = vmatpush1.bf16.msra.mxu1 %v6296_v21  ;;  %v6376_v21 = vld [vmem:[#allocation12 + $0x26c] ss:$16 sps:$4 sm:$0xff]  }
 0x45f   :  { %4744 = vmatprep.subr.bf16.mxu1 %v6304_v27  ;;  %v6379_v27 = vld [vmem:[#allocation12 + $0x4c] ss:$16 sps:$4 sm:$0xff]  }
 0x460   :  { %4704 = vmatpush2.bf16.msra.mxu0 %v6299_v30  ;;  %v6374_v30 = vld [vmem:[#allocation12 + $0x268] ss:$16 sps:$4 sm:$0xff]  }
 0x461   :  { %4705 = vmatprep.subr.bf16.mxu0 %v6307_v36  ;;  %v6382_v36 = vld [vmem:[#allocation12 + $0x24c] ss:$16 sps:$4 sm:$0xff]  }
 0x462   :  { %4745 = vmatpush2.bf16.msra.mxu1 %v6302_v39  ;;  %v6377_v39 = vld [vmem:[#allocation12 + $0x48] ss:$16 sps:$4 sm:$0xff]  }
 0x463   :  { %4746 = vmatprep.subr.bf16.mxu1 %v6310_v20  ;;  %v6385_v20 = vld [vmem:[#allocation12 + $0x2c] ss:$16 sps:$4 sm:$0xff]  }
 0x464   :  { %4706 = vmatpush2.bf16.msra.mxu0 %v6305_v54  ;;  %v6380_v54 = vld [vmem:[#allocation12 + $0x248] ss:$16 sps:$4 sm:$0xff]  }
 0x465   :  { %4707 = vmatprep.subr.bf16.mxu0 %v6313_v55  ;;  %v6388_v55 = vld [vmem:[#allocation12 + $0x22c] ss:$16 sps:$4 sm:$0xff]  }
 0x466   :  { %4747 = vmatpush2.bf16.msra.mxu1 %v6308_v61  ;;  %v6383_v61 = vld [vmem:[#allocation12 + $0x28] ss:$16 sps:$4 sm:$0xff]  }
 0x467   :  { %4748 = vmatprep.subr.bf16.mxu1 %v6316_v57  ;;  %v6391_v57 = vld [vmem:[#allocation12 + $0xc] ss:$16 sps:$4 sm:$0xff]  }
 0x468   :  { %4708 = vmatpush2.bf16.msra.mxu0 %v6311_v31  ;;  %v6386_v31 = vld [vmem:[#allocation12 + $0x228] ss:$16 sps:$4 sm:$0xff]  }
 0x469   :  { %4709 = vmatprep.subr.bf16.mxu0 %v6319_v58  ;;  %v6394_v58 = vld [vmem:[#allocation12 + $0x20c] ss:$16 sps:$4 sm:$0xff]  }
 0x46a   :  { %4749 = vmatpush2.bf16.msra.mxu1 %v6314_v33  ;;  %v6389_v33 = vld [vmem:[#allocation12 + $0x8] ss:$16 sps:$4 sm:$0xff]  }
 0x46b   :  { %4750 = vmatprep.subr.bf16.mxu1 %v6322_v59  ;;  %v6397_v59 = vld [vmem:[#allocation12 + $0x1ec] ss:$16 sps:$4 sm:$0xff]  }
 0x46c   :  { %4710 = vmatpush2.bf16.msra.mxu0 %v6317_v24  ;;  %v6392_v24 = vld [vmem:[#allocation12 + $0x208] ss:$16 sps:$4 sm:$0xff]  }
 0x46d   :  { %4711 = vmatprep.subr.bf16.mxu0 %v6325_v23  ;;  %v6400_v23 = vld [vmem:[#allocation12 + $0x3ec] ss:$16 sps:$4 sm:$0xff]  }
 0x46e   :  { %4751 = vmatpush2.bf16.msra.mxu1 %v6320_v62  ;;  %v6395_v62 = vld [vmem:[#allocation12 + $0x1e8] ss:$16 sps:$4 sm:$0xff]  }
 0x46f   :  { %4752 = vmatprep.subr.bf16.mxu1 %v6328_v48  ;;  %v6403_v48 = vld [vmem:[#allocation12 + $0x1cc] ss:$16 sps:$4 sm:$0xff]  }
 0x470   :  { %4712 = vmatpush2.bf16.msra.mxu0 %v6323_v3  ;;  %v6398_v3 = vld [vmem:[#allocation12 + $0x3e8] ss:$16 sps:$4 sm:$0xff]  }
 0x471   :  { %4713 = vmatprep.subr.bf16.mxu0 %v6331_v42  ;;  %v6406_v42 = vld [vmem:[#allocation12 + $0x3cc] ss:$16 sps:$4 sm:$0xff]  }
 0x472   :  { %4753 = vmatpush2.bf16.msra.mxu1 %v6326_v40  ;;  %v6401_v40 = vld [vmem:[#allocation12 + $0x1c8] ss:$16 sps:$4 sm:$0xff]  }
 0x473   :  { %4754 = vmatprep.subr.bf16.mxu1 %v6334_v52  ;;  %v6409_v52 = vld [vmem:[#allocation12 + $0x1ac] ss:$16 sps:$4 sm:$0xff]  }
 0x474   :  { %4714 = vmatpush2.bf16.msra.mxu0 %v6329_v45  ;;  %v6404_v45 = vld [vmem:[#allocation12 + $0x3c8] ss:$16 sps:$4 sm:$0xff]  }
 0x475   :  { %4715 = vmatprep.subr.bf16.mxu0 %v6337_v47  ;;  %v6412_v47 = vld [vmem:[#allocation12 + $0x3ac] ss:$16 sps:$4 sm:$0xff]  }
 0x476   :  { %4755 = vmatpush2.bf16.msra.mxu1 %v6332_v53  ;;  %v6407_v53 = vld [vmem:[#allocation12 + $0x1a8] ss:$16 sps:$4 sm:$0xff]  }
 0x477   :  { %4756 = vmatprep.subr.bf16.mxu1 %v6340_v4  ;;  %v6415_v4 = vld [vmem:[#allocation12 + $0x18c] ss:$16 sps:$4 sm:$0xff]  }
 0x478   :  { %4716 = vmatpush2.bf16.msra.mxu0 %v6335_v6  ;;  %v6410_v6 = vld [vmem:[#allocation12 + $0x3a8] ss:$16 sps:$4 sm:$0xff]  }
 0x479   :  { %4717 = vmatprep.subr.bf16.mxu0 %v6343_v7  ;;  %v6418_v7 = vld [vmem:[#allocation12 + $0x38c] ss:$16 sps:$4 sm:$0xff]  }
 0x47a   :  { %4757 = vmatpush2.bf16.msra.mxu1 %v6338_v8  ;;  %v6413_v8 = vld [vmem:[#allocation12 + $0x188] ss:$16 sps:$4 sm:$0xff]  }
 0x47b   :  { %4758 = vmatprep.subr.bf16.mxu1 %v6346_v10  ;;  %v6421_v10 = vld [vmem:[#allocation12 + $0x16c] ss:$16 sps:$4 sm:$0xff]  }
 0x47c   :  { %4718 = vmatpush2.bf16.msra.mxu0 %v6341_v11  ;;  %v6416_v11 = vld [vmem:[#allocation12 + $0x388] ss:$16 sps:$4 sm:$0xff]  }
 0x47d   :  { %4769 = vmatprep.subr.bf16.mxu0 %v6349_v63  ;;  %v6419_v63 = vld [vmem:[#allocation12 + $0x168] ss:$16 sps:$4 sm:$0xff]  }
 0x47e   :  { %4759 = vmatpush2.bf16.msra.mxu1 %v6344_v1  ;;  %v6427_v1 = vld [vmem:[#allocation12 + $0x14c] ss:$16 sps:$4 sm:$0xff]  }
 0x47f   :  { %4720 = vmatmul.mubr.bf16.vlgmr.msra.gmra.mxu0 %v7247_v41  ;;  %4810 = vmatprep.subr.bf16.mxu1 %v6352_v13  ;;  %v6430_v13 = vld [vmem:[#allocation12 + $0x34c] ss:$16 sps:$4 sm:$0xff]  }
 0x480   :  { %4770 = vmatpush1.bf16.msra.mxu0 %v6347_v15  ;;  %4801 = vmatprep.mubr.bf16.mxu0 %v7225_v56  ;;  %v6365_v56 = vld [vmem:[#allocation12 + $0x88] ss:$16 sps:$4 sm:$0xff]  }
 0x481   :  { %4761 = vmatmul.mubr.bf16.vlgmr.msra.gmra.mxu1 %v7249_v17  ;;  %4771 = vmatprep.subr.bf16.mxu0 %v6355_v43  ;;  %v6425_v15 = vld [vmem:[#allocation12 + $0x148] ss:$16 sps:$4 sm:$0xff]   ;;  %v6433_v43 = vld [vmem:[#allocation12 + $0x12c] ss:$16 sps:$4 sm:$0xff]  }
 0x482   :  { %4811 = vmatpush1.bf16.msra.mxu1 %v6350_v16  ;;  %4842 = vmatprep.mubr.bf16.mxu1 %v7230_v28  ;;  %v6371_v28 = vld [vmem:[#allocation12 + $0x68] ss:$16 sps:$4 sm:$0xff]  }
 0x483   :  { %4812 = vmatprep.subr.bf16.mxu1 %v6358_v14  ;;  %v6428_v16 = vld [vmem:[#allocation12 + $0x348] ss:$16 sps:$4 sm:$0xff]   ;;  %v6436_v14 = vld [vmem:[#allocation12 + $0x32c] ss:$16 sps:$4 sm:$0xff]  }
 0x484   :  { %4772 = vmatpush1.bf16.msra.mxu0 %v6353_v2  ;;  %v6431_v2 = vld [vmem:[#allocation12 + $0x128] ss:$16 sps:$4 sm:$0xff]  }
 0x485   :  { %4773 = vmatprep.subr.bf16.mxu0 %v6361_v49  ;;  %v6439_v49 = vld [vmem:[#allocation12 + $0x10c] ss:$16 sps:$4 sm:$0xff]  }
 0x486   :  { %4813 = vmatpush1.bf16.msra.mxu1 %v6356_v18  ;;  %v6434_v18 = vld [vmem:[#allocation12 + $0x328] ss:$16 sps:$4 sm:$0xff]  }
 0x487   :  { %4814 = vmatprep.subr.bf16.mxu1 %v6364_v19  ;;  %v6442_v19 = vld [vmem:[#allocation12 + $0x30c] ss:$16 sps:$4 sm:$0xff]  }
 0x488   :  { %4774 = vmatpush1.bf16.msra.mxu0 %v6359_v46  ;;  %v6437_v46 = vld [vmem:[#allocation12 + $0x108] ss:$16 sps:$4 sm:$0xff]  }
 0x489   :  { %4775 = vmatprep.subr.bf16.mxu0 %v6367_v22  ;;  %v6445_v22 = vld [vmem:[#allocation12 + $0x4ec] ss:$16 sps:$4 sm:$0xff]  }
 0x48a   :  { %4815 = vmatpush1.bf16.msra.mxu1 %v6362_v44  ;;  %v6440_v44 = vld [vmem:[#allocation12 + $0x308] ss:$16 sps:$4 sm:$0xff]  }
 0x48b   :  { %4816 = vmatprep.subr.bf16.mxu1 %v6370_v37  ;;  %v6448_v37 = vld [vmem:[#allocation12 + $0x6ec] ss:$16 sps:$4 sm:$0xff]  }
 0x48c   :  { %4776 = vmatpush1.bf16.msra.mxu0 %v6365_v56  ;;  %v6443_v56 = vld [vmem:[#allocation12 + $0x4e8] ss:$16 sps:$4 sm:$0xff]  }
 0x48d   :  { %4777 = vmatprep.subr.bf16.mxu0 %v6373_v25  ;;  %v6451_v25 = vld [vmem:[#allocation12 + $0x4cc] ss:$16 sps:$4 sm:$0xff]  }
 0x48e   :  { %4817 = vmatpush1.bf16.msra.mxu1 %v6368_v26  ;;  %v6446_v26 = vld [vmem:[#allocation12 + $0x6e8] ss:$16 sps:$4 sm:$0xff]  }
 0x48f   :  { %4818 = vmatprep.subr.bf16.mxu1 %v6376_v21  ;;  %v6454_v21 = vld [vmem:[#allocation12 + $0x6cc] ss:$16 sps:$4 sm:$0xff]  }
 0x490   :  { %4778 = vmatpush1.bf16.msra.mxu0 %v6371_v28  ;;  %v6449_v28 = vld [vmem:[#allocation12 + $0x4c8] ss:$16 sps:$4 sm:$0xff]  }
 0x491   :  { %4779 = vmatprep.subr.bf16.mxu0 %v6379_v27  ;;  %v6457_v27 = vld [vmem:[#allocation12 + $0x4ac] ss:$16 sps:$4 sm:$0xff]  }
 0x492   :  { %4819 = vmatpush1.bf16.msra.mxu1 %v6374_v30  ;;  %v6452_v30 = vld [vmem:[#allocation12 + $0x6c8] ss:$16 sps:$4 sm:$0xff]  }
 0x493   :  { %4820 = vmatprep.subr.bf16.mxu1 %v6382_v36  ;;  %v6460_v36 = vld [vmem:[#allocation12 + $0x6ac] ss:$16 sps:$4 sm:$0xff]  }
 0x494   :  { %4780 = vmatpush1.bf16.msra.mxu0 %v6377_v39  ;;  %v6455_v39 = vld [vmem:[#allocation12 + $0x4a8] ss:$16 sps:$4 sm:$0xff]  }
 0x495   :  { %4781 = vmatprep.subr.bf16.mxu0 %v6385_v20  ;;  %v6458_v20 = vld [vmem:[#allocation12 + $0x6a8] ss:$16 sps:$4 sm:$0xff]  }
 0x496   :  { %4821 = vmatpush1.bf16.msra.mxu1 %v6380_v54  ;;  %v6466_v54 = vld [vmem:[#allocation12 + $0x68c] ss:$16 sps:$4 sm:$0xff]  }
 0x497   :  { %4822 = vmatprep.subr.bf16.mxu1 %v6388_v55  ;;  %v6464_v55 = vld [vmem:[#allocation12 + $0x688] ss:$16 sps:$4 sm:$0xff]  }
 0x498   :  { %4782 = vmatpush1.bf16.msra.mxu0 %v6383_v61  ;;  %v6472_v61 = vld [vmem:[#allocation12 + $0x66c] ss:$16 sps:$4 sm:$0xff]  }
 0x499   :  { %4783 = vmatprep.subr.bf16.mxu0 %v6391_v57  ;;  %v6475_v57 = vld [vmem:[#allocation12 + $0x44c] ss:$16 sps:$4 sm:$0xff]  }
 0x49a   :  { %4823 = vmatpush1.bf16.msra.mxu1 %v6386_v31  ;;  %v6470_v31 = vld [vmem:[#allocation12 + $0x668] ss:$16 sps:$4 sm:$0xff]  }
 0x49b   :  { %4824 = vmatprep.subr.bf16.mxu1 %v6394_v58  ;;  %v6478_v58 = vld [vmem:[#allocation12 + $0x64c] ss:$16 sps:$4 sm:$0xff]  }
 0x49c   :  { %4784 = vmatpush1.bf16.msra.mxu0 %v6389_v33  ;;  %v6473_v33 = vld [vmem:[#allocation12 + $0x448] ss:$16 sps:$4 sm:$0xff]  }
 0x49d   :  { %4785 = vmatprep.subr.bf16.mxu0 %v6397_v59  ;;  %v6481_v59 = vld [vmem:[#allocation12 + $0x42c] ss:$16 sps:$4 sm:$0xff]  }
 0x49e   :  { %4825 = vmatpush1.bf16.msra.mxu1 %v6392_v24  ;;  %v6476_v24 = vld [vmem:[#allocation12 + $0x648] ss:$16 sps:$4 sm:$0xff]  }
 0x49f   :  { %4826 = vmatprep.subr.bf16.mxu1 %v6400_v23  ;;  %v6484_v23 = vld [vmem:[#allocation12 + $0x62c] ss:$16 sps:$4 sm:$0xff]  }
 0x4a0   :  { %4786 = vmatpush2.bf16.msra.mxu0 %v6395_v62  ;;  %v6479_v62 = vld [vmem:[#allocation12 + $0x428] ss:$16 sps:$4 sm:$0xff]  }
 0x4a1   :  { %4787 = vmatprep.subr.bf16.mxu0 %v6403_v48  ;;  %v6487_v48 = vld [vmem:[#allocation12 + $0x40c] ss:$16 sps:$4 sm:$0xff]  }
 0x4a2   :  { %4827 = vmatpush2.bf16.msra.mxu1 %v6398_v3  ;;  %v6482_v3 = vld [vmem:[#allocation12 + $0x628] ss:$16 sps:$4 sm:$0xff]  }
 0x4a3   :  { %4828 = vmatprep.subr.bf16.mxu1 %v6406_v42  ;;  %v6490_v42 = vld [vmem:[#allocation12 + $0x60c] ss:$16 sps:$4 sm:$0xff]  }
 0x4a4   :  { %4788 = vmatpush2.bf16.msra.mxu0 %v6401_v40  ;;  %v6485_v40 = vld [vmem:[#allocation12 + $0x408] ss:$16 sps:$4 sm:$0xff]  }
 0x4a5   :  { %4789 = vmatprep.subr.bf16.mxu0 %v6409_v52  ;;  %v6493_v52 = vld [vmem:[#allocation12 + $0x5ec] ss:$16 sps:$4 sm:$0xff]  }
 0x4a6   :  { %4829 = vmatpush2.bf16.msra.mxu1 %v6404_v45  ;;  %v6488_v45 = vld [vmem:[#allocation12 + $0x608] ss:$16 sps:$4 sm:$0xff]  }
 0x4a7   :  { %4830 = vmatprep.subr.bf16.mxu1 %v6412_v47  ;;  %v6496_v47 = vld [vmem:[#allocation12 + $0x7ec] ss:$16 sps:$4 sm:$0xff]  }
 0x4a8   :  { %4790 = vmatpush2.bf16.msra.mxu0 %v6407_v53  ;;  %v6491_v53 = vld [vmem:[#allocation12 + $0x5e8] ss:$16 sps:$4 sm:$0xff]  }
 0x4a9   :  { %4791 = vmatprep.subr.bf16.mxu0 %v6415_v4  ;;  %v6499_v4 = vld [vmem:[#allocation12 + $0x5cc] ss:$16 sps:$4 sm:$0xff]  }
 0x4aa   :  { %4831 = vmatpush2.bf16.msra.mxu1 %v6410_v6  ;;  %v6494_v6 = vld [vmem:[#allocation12 + $0x7e8] ss:$16 sps:$4 sm:$0xff]  }
 0x4ab   :  { %4832 = vmatprep.subr.bf16.mxu1 %v6418_v7  ;;  %v6502_v7 = vld [vmem:[#allocation12 + $0x7cc] ss:$16 sps:$4 sm:$0xff]  }
 0x4ac   :  { %4792 = vmatpush2.bf16.msra.mxu0 %v6413_v8  ;;  %v6497_v8 = vld [vmem:[#allocation12 + $0x5c8] ss:$16 sps:$4 sm:$0xff]  }
 0x4ad   :  { %4793 = vmatprep.subr.bf16.mxu0 %v6421_v10  ;;  %v6505_v10 = vld [vmem:[#allocation12 + $0x5ac] ss:$16 sps:$4 sm:$0xff]  }
 0x4ae   :  { %4833 = vmatpush2.bf16.msra.mxu1 %v6416_v11  ;;  %v6500_v11 = vld [vmem:[#allocation12 + $0x7c8] ss:$16 sps:$4 sm:$0xff]  }
 0x4af   :  { %4834 = vmatprep.subr.bf16.mxu1 %v6424_v60  ;;  %v6508_v60 = vld [vmem:[#allocation12 + $0x7ac] ss:$16 sps:$4 sm:$0xff]  }
 0x4b0   :  { %4794 = vmatpush2.bf16.msra.mxu0 %v6419_v63  ;;  %v6503_v63 = vld [vmem:[#allocation12 + $0x5a8] ss:$16 sps:$4 sm:$0xff]  }
 0x4b1   :  { %4795 = vmatprep.subr.bf16.mxu0 %v6427_v1  ;;  %v6511_v1 = vld [vmem:[#allocation12 + $0x58c] ss:$16 sps:$4 sm:$0xff]  }
 0x4b2   :  { %4835 = vmatpush2.bf16.msra.mxu1 %v6422_v12  ;;  %v6506_v12 = vld [vmem:[#allocation12 + $0x7a8] ss:$16 sps:$4 sm:$0xff]  }
 0x4b3   :  { %4836 = vmatprep.subr.bf16.mxu1 %v6430_v13  ;;  %v6514_v13 = vld [vmem:[#allocation12 + $0x78c] ss:$16 sps:$4 sm:$0xff]  }
 0x4b4   :  { %4796 = vmatpush2.bf16.msra.mxu0 %v6425_v15  ;;  %v6509_v15 = vld [vmem:[#allocation12 + $0x588] ss:$16 sps:$4 sm:$0xff]  }
 0x4b5   :  { %4797 = vmatprep.subr.bf16.mxu0 %v6433_v43  ;;  %v6517_v43 = vld [vmem:[#allocation12 + $0x56c] ss:$16 sps:$4 sm:$0xff]  }
 0x4b6   :  { %4837 = vmatpush2.bf16.msra.mxu1 %v6428_v16  ;;  %v6512_v16 = vld [vmem:[#allocation12 + $0x788] ss:$16 sps:$4 sm:$0xff]  }
 0x4b7   :  { %4838 = vmatprep.subr.bf16.mxu1 %v6436_v14  ;;  %v6520_v14 = vld [vmem:[#allocation12 + $0x76c] ss:$16 sps:$4 sm:$0xff]  }
 0x4b8   :  { %4798 = vmatpush2.bf16.msra.mxu0 %v6431_v2  ;;  %v6515_v2 = vld [vmem:[#allocation12 + $0x568] ss:$16 sps:$4 sm:$0xff]  }
 0x4b9   :  { %4799 = vmatprep.subr.bf16.mxu0 %v6439_v49  ;;  %v6523_v49 = vld [vmem:[#allocation12 + $0x54c] ss:$16 sps:$4 sm:$0xff]  }
 0x4ba   :  { %4839 = vmatpush2.bf16.msra.mxu1 %v6434_v18  ;;  %v6518_v18 = vld [vmem:[#allocation12 + $0x768] ss:$16 sps:$4 sm:$0xff]  }
 0x4bb   :  { %4840 = vmatprep.subr.bf16.mxu1 %v6442_v19  ;;  %v6526_v19 = vld [vmem:[#allocation12 + $0x74c] ss:$16 sps:$4 sm:$0xff]  }
 0x4bc   :  { %4800 = vmatpush2.bf16.msra.mxu0 %v6437_v46  ;;  %v6521_v46 = vld [vmem:[#allocation12 + $0x548] ss:$16 sps:$4 sm:$0xff]  }
 0x4bd   :  { %4851 = vmatprep.subr.bf16.mxu0 %v6445_v22  ;;  %v6529_v22 = vld [vmem:[#allocation12 + $0x52c] ss:$16 sps:$4 sm:$0xff]  }
 0x4be   :  { %4841 = vmatpush2.bf16.msra.mxu1 %v6440_v44  ;;  %v6524_v44 = vld [vmem:[#allocation12 + $0x748] ss:$16 sps:$4 sm:$0xff]  }
 0x4bf   :  { %4802 = vmatmul.mubr.bf16.vlgmr.msra.gmra.mxu0 %v7223_v51  ;;  %4892 = vmatprep.subr.bf16.mxu1 %v6448_v37  ;;  %v6463_v51 = vld [vmem:[#allocation12 + $0x48c] ss:$16 sps:$4 sm:$0xff]  }
 0x4c0   :  { %4852 = vmatpush1.bf16.msra.mxu0 %v6443_v56  ;;  %4883 = vmatprep.mubr.bf16.mxu0 %v7239_v5  ;;  %v6461_v5 = vld [vmem:[#allocation12 + $0x488] ss:$16 sps:$4 sm:$0xff]   ;;  %v6532_v37 = vld [vmem:[#allocation12 + $0x72c] ss:$16 sps:$4 sm:$0xff]  }
 0x4c1   :  { %4843 = vmatmul.mubr.bf16.vlgmr.msra.gmra.mxu1 %v7232_v0  ;;  %4853 = vmatprep.subr.bf16.mxu0 %v6451_v25  ;;  %v6469_v0 = vld [vmem:[#allocation12 + $0x46c] ss:$16 sps:$4 sm:$0xff]   ;;  %v6527_v56 = vld [vmem:[#allocation12 + $0x528] ss:$16 sps:$4 sm:$0xff]  }
 0x4c2   :  { %4893 = vmatpush1.bf16.msra.mxu1 %v6446_v26  ;;  %4924 = vmatprep.mubr.bf16.mxu1 %v7242_v9  ;;  %v6467_v9 = vld [vmem:[#allocation12 + $0x468] ss:$16 sps:$4 sm:$0xff]   ;;  %v6535_v25 = vld [vmem:[#allocation12 + $0x50c] ss:$16 sps:$4 sm:$0xff]  }
 0x4c3   :  { %4894 = vmatprep.subr.bf16.mxu1 %v6454_v21  ;;  %v6530_v26 = vld [vmem:[#allocation12 + $0x728] ss:$16 sps:$4 sm:$0xff]   ;;  %v6538_v21 = vld [vmem:[#allocation12 + $0x70c] ss:$16 sps:$4 sm:$0xff]  }
 0x4c4   :  { %4854 = vmatpush1.bf16.msra.mxu0 %v6449_v28  ;;  %v6533_v28 = vld [vmem:[#allocation12 + $0x508] ss:$16 sps:$4 sm:$0xff]  }
 0x4c5   :  { %4855 = vmatprep.subr.bf16.mxu0 %v6457_v27  ;;  %v6539_v27 = vld [vmem:[%s7405_s12 + $0x78] sm:$0xff]  }
 0x4c6   :  { %4895 = vmatpush1.bf16.msra.mxu1 %v6452_v30  ;;  %v6536_v30 = vld [vmem:[#allocation12 + $0x708] ss:$16 sps:$4 sm:$0xff]  }
 0x4c7   :  { %4896 = vmatprep.subr.bf16.mxu1 %v6460_v36  ;;  %v6540_v36 = vld [vmem:[%s7405_s12 + $0x38] sm:$0xff]  }
 0x4c8   :  { %4856 = vmatpush1.bf16.msra.mxu0 %v6455_v39  ;;  %v6541_v39 = vld [vmem:[%s7405_s12 + $0x70] sm:$0xff]  }
 0x4c9   :  { %4857 = vmatprep.subr.bf16.mxu0 %v6463_v51 }
 0x4ca   :  { %4897 = vmatpush1.bf16.msra.mxu1 %v6458_v20  ;;  %v6542_v20 = vld [vmem:[%s7405_s12 + $0x30] sm:$0xff]  }
 0x4cb   :  { %4898 = vmatprep.subr.bf16.mxu1 %v6466_v54 }
 0x4cc   :  { %4858 = vmatpush1.bf16.msra.mxu0 %v6461_v5 }
 0x4cd   :  { %4859 = vmatprep.subr.bf16.mxu0 %v6469_v0  ;;  %v6543_v0 = vld [vmem:[%s7405_s12 + $0x68] sm:$0xff]  }
 0x4ce   :  { %4899 = vmatpush1.bf16.msra.mxu1 %v6464_v55 }
 0x4cf   :  { %4900 = vmatprep.subr.bf16.mxu1 %v6472_v61 }
 0x4d0   :  { %4860 = vmatpush1.bf16.msra.mxu0 %v6467_v9 }
 0x4d1   :  { %4861 = vmatprep.subr.bf16.mxu0 %v6475_v57 }
 0x4d2   :  { %4901 = vmatpush1.bf16.msra.mxu1 %v6470_v31 }
 0x4d3   :  { %4902 = vmatprep.subr.bf16.mxu1 %v6478_v58  ;;  %v6555_v58 = vld [vmem:[%s7405_s12 + $0xf8] sm:$0xff]  }
 0x4d4   :  { %4862 = vmatpush1.bf16.msra.mxu0 %v6473_v33  ;;  %v6556_v33 = vld [vmem:[%s7405_s12 + $0xb8] sm:$0xff]  }
 0x4d5   :  { %4863 = vmatprep.subr.bf16.mxu0 %v6481_v59  ;;  %v6557_v59 = vld [vmem:[%s7405_s12 + $0xf0] sm:$0xff]  }
 0x4d6   :  { %4903 = vmatpush1.bf16.msra.mxu1 %v6476_v24  ;;  %v6546_v24 = vld [vmem:[%s7405_s12 + $0x20] sm:$0xff]  }
 0x4d7   :  { %4904 = vmatprep.subr.bf16.mxu1 %v6484_v23  ;;  %v6547_v23 = vld [vmem:[%s7405_s12 + $0x58] sm:$0xff]  }
 0x4d8   :  { %4864 = vmatpush1.bf16.msra.mxu0 %v6479_v62  ;;  %v6558_v62 = vld [vmem:[%s7405_s12 + $0xb0] sm:$0xff]  }
 0x4d9   :  { %4865 = vmatprep.subr.bf16.mxu0 %v6487_v48  ;;  %v6559_v48 = vld [vmem:[%s7405_s12 + $0xe8] sm:$0xff]  }
 0x4da   :  { %4905 = vmatpush1.bf16.msra.mxu1 %v6482_v3  ;;  %v6548_v3 = vld [vmem:[%s7405_s12 + $0x18] sm:$0xff]  }
 0x4db   :  { %4906 = vmatprep.subr.bf16.mxu1 %v6490_v42  ;;  %v6549_v42 = vld [vmem:[%s7405_s12 + $0x50] sm:$0xff]  }
 0x4dc   :  { %4866 = vmatpush1.bf16.msra.mxu0 %v6485_v40  ;;  %v6560_v40 = vld [vmem:[%s7405_s12 + $0xa8] sm:$0xff]  }
 0x4dd   :  { %4867 = vmatprep.subr.bf16.mxu0 %v6493_v52  ;;  %v6561_v52 = vld [vmem:[%s7405_s12 + $0xe0] sm:$0xff]  }
 0x4de   :  { %4907 = vmatpush1.bf16.msra.mxu1 %v6488_v45  ;;  %v6550_v45 = vld [vmem:[%s7405_s12 + $0x10] sm:$0xff]  }
 0x4df   :  { %4908 = vmatprep.subr.bf16.mxu1 %v6496_v47  ;;  %v6551_v47 = vld [vmem:[%s7405_s12 + $0x48] sm:$0xff]  }
 0x4e0   :  { %4868 = vmatpush2.bf16.msra.mxu0 %v6491_v53  ;;  %v6562_v53 = vld [vmem:[%s7405_s12 + $0xa0] sm:$0xff]  }
 0x4e1   :  { %4869 = vmatprep.subr.bf16.mxu0 %v6499_v4  ;;  %v6552_v4 = vld [vmem:[%s7405_s12 + $0x8] sm:$0xff]  }
 0x4e2   :  { %4909 = vmatpush2.bf16.msra.mxu1 %v6494_v6  ;;  %v6553_v6 = vld [vmem:[%s7405_s12 + $0x40] sm:$0xff]  }
 0x4e3   :  { %4910 = vmatprep.subr.bf16.mxu1 %v6502_v7  ;;  %v6554_v7 = vld [vmem:[%s7405_s12] sm:$0xff]  }
 0x4e4   :  { %4870 = vmatpush2.bf16.msra.mxu0 %v6497_v8  ;;  %v7333_v8 = vld [vmem:[#allocation14] sm:$0xf] }
 0x4e5   :  { %4871 = vmatprep.subr.bf16.mxu0 %v6505_v10  ;;  %v6563_v10 = vld [vmem:[%s7405_s12 + $0xd8] sm:$0xff]  }
 0x4e6   :  { %4911 = vmatpush2.bf16.msra.mxu1 %v6500_v11 }
 0x4e7   :  { %4912 = vmatprep.subr.bf16.mxu1 %v6508_v60  ;;  %v6564_v60 = vld [vmem:[%s7405_s12 + $0x98] sm:$0xff]  }
 0x4e8   :  { %4872 = vmatpush2.bf16.msra.mxu0 %v6503_v63 }
 0x4e9   :  { %4873 = vmatprep.subr.bf16.mxu0 %v6511_v1  ;;  %v7341_v1 = vld [vmem:[#allocation15] sm:$0xf] }
 0x4ea   :  { %4913 = vmatpush2.bf16.msra.mxu1 %v6506_v12 }
 0x4eb   :  { %4914 = vmatprep.subr.bf16.mxu1 %v6514_v13 }
 0x4ec   :  { %4874 = vmatpush2.bf16.msra.mxu0 %v6509_v15  ;;  %v4938_v15 = vrot.slane %v7333_v8, %v7195_v29 }
 0x4ed   :  { %4875 = vmatprep.subr.bf16.mxu0 %v6517_v43 }
 0x4ee   :  { %4915 = vmatpush2.bf16.msra.mxu1 %v6512_v16 }
 0x4ef   :  { %4916 = vmatprep.subr.bf16.mxu1 %v6520_v14  ;;  %v6565_v14 = vld [vmem:[%s7405_s12 + $0xd0] sm:$0xff]  }
 0x4f0   :  { %4876 = vmatpush2.bf16.msra.mxu0 %v6515_v2 }
 0x4f1   :  { %4877 = vmatprep.subr.bf16.mxu0 %v6523_v49 }
 0x4f2   :  { %4917 = vmatpush2.bf16.msra.mxu1 %v6518_v18  ;;  %v4964_v18 = vrot.slane %v7341_v1, %v7195_v29 }
 0x4f3   :  { %4918 = vmatprep.subr.bf16.mxu1 %v6526_v19  ;;  %v4942_v19 = vrot.slane %v7333_v8, %v7198_v34 }
 0x4f4   :  { %4878 = vmatpush2.bf16.msra.mxu0 %v6521_v46  ;;  %v6566_v46 = vld [vmem:[%s7405_s12 + $0x90] sm:$0xff]  }
 0x4f5   :  { %4879 = vmatprep.subr.bf16.mxu0 %v6529_v22 }
 0x4f6   :  { %4919 = vmatpush2.bf16.msra.mxu1 %v6524_v44 }
 0x4f7   :  { %4920 = vmatprep.subr.bf16.mxu1 %v6532_v37 }
 0x4f8   :  { %4880 = vmatpush2.bf16.msra.mxu0 %v6527_v56 }
 0x4f9   :  { %4881 = vmatprep.subr.bf16.mxu0 %v6535_v25  ;;  %v4968_v25 = vrot.slane %v7341_v1, %v7198_v34  ;;  %v6569_v34 = vld [vmem:[%s7405_s12 + $0xc0] sm:$0xff]  }
 0x4fa   :  { %4921 = vmatpush2.bf16.msra.mxu1 %v6530_v26 }
 0x4fb   :  { %4922 = vmatprep.subr.bf16.mxu1 %v6538_v21 }
 0x4fc   :  { %4882 = vmatpush2.bf16.msra.mxu0 %v6533_v28  ;;  %v6567_v28 = vld [vmem:[%s7405_s12 + $0xc8] sm:$0xff]  }
 0x4fd   :  { %6050 = vmatprep.subr.bf16.mxu0 %v6539_v27 }
 0x4fe   :  { %4923 = vmatpush2.bf16.msra.mxu1 %v6536_v30  ;;  %v4639_v51 = vpop.f32.mrf.mxu0 }
 0x4ff   :  { %4884 = vmatmul.mubr.bf16.vlgmr.msra.gmra.mxu0 %v7247_v41  ;;  %v6544_v41 = vld [vmem:[%s7405_s12 + $0x28] sm:$0xff]   ;;  %6072 = vmatprep.subr.bf16.mxu1 %v6555_v58 }
 0x500   :  { %6051 = vmatpush3.bf16.msra.mxu0 %v6540_v36  ;;  %v4641_v54 = vpop.f32.mrf.mxu0  ;;  %v6568_v36 = vld [vmem:[%s7405_s12 + $0x88] sm:$0xff]  }
 0x501   :  { %4925 = vmatmul.mubr.bf16.vlgmr.msra.gmra.mxu1 %v7249_v17  ;;  %v4680_v5 = vpop.f32.mrf.mxu1  ;;  %6052 = vmatprep.subr.bf16.mxu0 %v6541_v39  ;;  %v6545_v17 = vld [vmem:[%s7405_s12 + $0x60] sm:$0xff]  }
 0x502   :  { %v4643_v55 = vpop.f32.mrf.mxu0  ;;  %6073 = vmatpush3.bf16.msra.mxu1 %v6556_v33  ;;  %v4681_v11 = vadd.f32 %v4680_v5, %v4639_v51  ;;  %v6570_v5 = vld [vmem:[%s7405_s12 + $0x80] sm:$0xff]  }
 0x503   :  { %v4682_v61 = vpop.f32.mrf.mxu1  ;;  %6074 = vmatprep.subr.bf16.mxu1 %v6557_v59 }
 0x504   :  { %6053 = vmatpush3.bf16.msra.mxu0 %v6542_v20  ;;  %v4644_v9 = vpop.f32.mrf.mxu0  ;;  %v4683_v12 = vadd.f32 %v4682_v61, %v4641_v54 }
 0x505   :  { %v4684_v57 = vpop.f32.mrf.mxu1  ;;  %6054 = vmatprep.subr.bf16.mxu0 %v6543_v0 }
 0x506   :  { %6075 = vmatpush3.bf16.msra.mxu1 %v6558_v62 }
 0x507   :  { %v4685_v31 = vpop.f32.mrf.mxu1  ;;  %6076 = vmatprep.subr.bf16.mxu1 %v6559_v48  ;;  %v4946_v48 = vrot.slane %v7333_v8, %v7201_v35 }
 0x508   :  { %6055 = vmatpush3.bf16.msra.mxu0 %v6544_v41 }
 0x509   :  { %6056 = vmatprep.subr.bf16.mxu0 %v6545_v17 }
 0x50a   :  { %6077 = vmatpush3.bf16.msra.mxu1 %v6560_v40 }
 0x50b   :  { %6078 = vmatprep.subr.bf16.mxu1 %v6561_v52 }
 0x50c   :  { %6057 = vmatpush3.bf16.msra.mxu0 %v6546_v24 }
 0x50d   :  { %6058 = vmatprep.subr.bf16.mxu0 %v6547_v23 }
 0x50e   :  { %6079 = vmatpush3.bf16.msra.mxu1 %v6562_v53 }
 0x50f   :  { %6080 = vmatprep.subr.bf16.mxu1 %v6563_v10  ;;  %v4976_v10 = vrot.slane %v7341_v1, %v7204_v50 }
 0x510   :  { %6059 = vmatpush3.bf16.msra.mxu0 %v6548_v3 }
 0x511   :  { %6060 = vmatprep.subr.bf16.mxu0 %v6549_v42 }
 0x512   :  { %6081 = vmatpush3.bf16.msra.mxu1 %v6564_v60 }
 0x513   :  { %6082 = vmatprep.subr.bf16.mxu1 %v6565_v14 }
 0x514   :  { %6061 = vmatpush3.bf16.msra.mxu0 %v6550_v45  ;;  %v4972_v45 = vrot.slane %v7341_v1, %v7201_v35 }
 0x515   :  { %6062 = vmatprep.subr.bf16.mxu0 %v6551_v47  ;;  %v4950_v47 = vrot.slane %v7333_v8, %v7204_v50 }
 0x516   :  { %6083 = vmatpush3.bf16.msra.mxu1 %v6566_v46  ;;  %v5357_v46 = vld [vmem:[#allocation2] sm:$0x1] }
 0x517   :  { %6084 = vmatprep.subr.bf16.mxu1 %v6567_v28  ;;  %5360 = vperm.xlu1 %6109, %v5357_v46  }
 0x518   :  { %6063 = vmatpush3.bf16.msra.mxu0 %v6552_v4 }
 0x519   :  { %6064 = vmatprep.subr.bf16.mxu0 %v6553_v6 }
 0x51a   :  { %6085 = vmatpush3.bf16.msra.mxu1 %v6568_v36 }
 0x51b   :  { %6086 = vmatprep.subr.bf16.mxu1 %v6569_v34 }
 0x51c   :  { %6065 = vmatpush3.bf16.msra.mxu0 %v6554_v7 }
 0x51e   :  { %6087 = vmatpush3.bf16.msra.mxu1 %v6570_v5 }
 0x53f   :  { %v4721_v63 = vpop.f32.mrf.mxu0 }
 0x540   :  { %v4722_v13 = vadd.f32 %v4721_v63, %v4681_v11 }
 0x541   :  { %v4723_v43 = vpop.f32.mrf.mxu0  ;;  %v4762_v16 = vpop.f32.mrf.mxu1 }
 0x542   :  { %v4724_v2 = vadd.f32 %v4723_v43, %v4683_v12  ;;  %v4763_v49 = vadd.f32 %v4762_v16, %v4722_v13 }
 0x543   :  { %v4725_v22 = vpop.f32.mrf.mxu0  ;;  %v4764_v44 = vpop.f32.mrf.mxu1 }
 0x544   :  { %v4955_v37 = vmul.f32 %v4938_v15, %v4763_v49  ;;  %v4765_v56 = vadd.f32 %v4764_v44, %v4724_v2  ;;  %v6003_v44 = vld [vmem:[%s7406_s13] ss:$0 sm:$0xff]  ;;  %s6791_s13 = smov [#allocation17]  }
 0x545   :  { %v4726_v26 = vpop.f32.mrf.mxu0  ;;  %v4766_v21 = vpop.f32.mrf.mxu1 }
 0x546   :  { %v4981_v27 = vadd.f32 %v4964_v18, %v4955_v37  ;;  %v4956_v30 = vmul.f32 %v4942_v19, %v4765_v56  ;;  %v6004_v26 = vld [vmem:[%s7407_s14] ss:$0 sm:$0xff]  ;;  %s5384_s14 = sshll.u32 %s6791_s13, 4  ;;  %s5385_s14 = int_to_ptr.vmem [resolvable:$true] %s5384_s14 }
 0x547   :  { %v4767_v39 = vpop.f32.mrf.mxu1  ;;  %s6749_s20 = scalar_lea.vmem %s5385_s14, 32  ;;  %p6750_p13 = scmp.lt.s32.totalorder %s5385_s14, %s5385_s14 }
 0x548   :  { %v4982_v51 = vadd.f32 %v4968_v25, %v4956_v30  ;;  %v4985_v20 = vmax.f32 %v4981_v27, 0.0  ;;  %v6005_v27 = vld [vmem:[%s7408_s15] ss:$0 sm:$0xff]  ;;  %s6745_s15 = scalar_lea.vmem %s5385_s14, 16 }
 0x549   :  { %p6746_p12 = scmp.ne.s32.totalorder %s5385_s14, %s6745_s15  ;;  %p6751_p0 = scmp.lt.s32.totalorder %s6749_s20, %s6745_s15 }
 0x54a   :  { %v4986_v54 = vmax.f32 %v4982_v51, 0.0  ;;  %v4989_v55 = vpack.c.bf16 %v4985_v20, %v4985_v20  ;;  %v5370_v20 = vand.u32 127, %v174_v32 }
 0x54b   :  { %p6752_p1 = por %p6751_p0, %p6750_p13 }
 0x54c   :  { %v4990_v0 = vpack.c.bf16 %v4986_v54, %v4986_v54  ;;  %v5373_v54 = vsub.s32 %v5370_v20, %v7014_v38 }
 0x54d   :  { %p6753_p2 = pnand %p6752_p1, %p6746_p12 }
 0x54e   :  { %5281 = vmatprep.mubr.bf16.mxu0 %v4990_v0 }
 0x54f   :  { %5282 = vmatmul.mubr.bf16.vlgmr.msra.gmra.mxu0 %v4989_v55 }
 0x57f   :  { %v4803_v61 = vpop.f32.mrf.mxu0 }
 0x581   :  { %v4805_v41 = vpop.f32.mrf.mxu0  ;;  %v4844_v9 = vpop.f32.mrf.mxu1 }
 0x582   :  { %v4845_v59 = vadd.f32 %v4844_v9, %v4803_v61 }
 0x583   :  { %v4807_v57 = vpop.f32.mrf.mxu0  ;;  %v4846_v17 = vpop.f32.mrf.mxu1 }
 0x584   :  { %v4847_v23 = vadd.f32 %v4846_v17, %v4805_v41 }
 0x585   :  { %v4808_v31 = vpop.f32.mrf.mxu0  ;;  %v4848_v58 = vpop.f32.mrf.mxu1 }
 0x587   :  { %v4849_v33 = vpop.f32.mrf.mxu1 }
 0x592   :  { %v5361_v51 = vpop.permute.xlu1 %5360 }
 0x593   :  { %v5366_v34 = vrot.slane %v5361_v51, %v7195_v29 }
 0x5bf   :  { %v4885_v24 = vpop.f32.mrf.mxu0 }
 0x5c0   :  { %v4886_v62 = vadd.f32 %v4885_v24, %v4845_v59 }
 0x5c1   :  { %v4887_v3 = vpop.f32.mrf.mxu0  ;;  %v4926_v42 = vpop.f32.mrf.mxu1 }
 0x5c2   :  { %v4888_v40 = vadd.f32 %v4887_v3, %v4847_v23  ;;  %v4927_v52 = vadd.f32 %v4926_v42, %v4886_v62 }
 0x5c3   :  { %v4889_v53 = vpop.f32.mrf.mxu0  ;;  %v4928_v4 = vpop.f32.mrf.mxu1 }
 0x5c4   :  { %v4957_v6 = vmul.f32 %v4946_v48, %v4927_v52  ;;  %v4929_v7 = vadd.f32 %v4928_v4, %v4888_v40 }
 0x5c5   :  { %v4890_v11 = vpop.f32.mrf.mxu0  ;;  %v4930_v60 = vpop.f32.mrf.mxu1 }
 0x5c6   :  { %v4983_v63 = vadd.f32 %v4972_v45, %v4957_v6  ;;  %v4958_v12 = vmul.f32 %v4950_v47, %v4929_v7 }
 0x5c7   :  { %v4931_v13 = vpop.f32.mrf.mxu1 }
 0x5c8   :  { %v4984_v15 = vadd.f32 %v4976_v10, %v4958_v12  ;;  %v4987_v43 = vmax.f32 %v4983_v63, 0.0 }
 0x5ca   :  { %v4988_v16 = vmax.f32 %v4984_v15, 0.0  ;;  %v4991_v35 = vpack.c.bf16 %v4987_v43, %v4987_v43 }
 0x5cc   :  { %v4992_v14 = vpack.c.bf16 %v4988_v16, %v4988_v16 }
 0x5ce   :  { %5321 = vmatprep.mubr.bf16.mxu1 %v4992_v14 }
 0x5cf   :  { %5322 = vmatmul.mubr.bf16.vlgmr.msra.gmra.mxu1 %v4991_v35 }
 0x60f   :  { %v6066_v8 = vpop.f32.mrf.mxu0 }
 0x611   :  { %v6067_v2 = vpop.f32.mrf.mxu0 }
 0x612   :  { %v6068_v49 = vadd.f32 %v6067_v2, %v6066_v8 }
 0x613   :  { %v6069_v18 = vpop.f32.mrf.mxu0 }
 0x615   :  { %v6070_v19 = vpop.f32.mrf.mxu0 }
 0x68f   :  { %v6088_v50 = vpop.f32.mrf.mxu1 }
 0x691   :  { %v6089_v1 = vpop.f32.mrf.mxu1 }
 0x692   :  { %v6090_v22 = vadd.f32 %v6089_v1, %v6088_v50 }
 0x693   :  { %v6091_v37 = vpop.f32.mrf.mxu1 }
 0x694   :  { %v5324_v56 = vadd.f32 %v6090_v22, %v6068_v49 }
 0x695   :  { %v6092_v25 = vpop.f32.mrf.mxu1 }
 0x696   :  { %v5336_v21 = vmul.f32 %v6003_v44, %v5324_v56 }
 0x698   :  { %v5344_v28 = vadd.f32 %v6004_v26, %v5336_v21 }
 0x69a   :  { %v5345_v30 = vmax.f32 %v5344_v28, 0.0 }
 0x69c   :  { %v5353_v36 = vmul.f32 %v6005_v27, %v5345_v30 }
 0x69e   :  { %v5354_v39 = vsel %vm734_vm7, %v5353_v36, 0.0 }
 0x69f   :  { %5355 = vadd.xlane.f32.xlu0 %v5354_v39 }
 0x728   :  { %v5356_v5 = vpop.xlane.xlu0 %5355 }
 0x729   :  { %v5367_v0 = vadd.f32 %v5366_v34, %v5356_v5 }
 0x72b   :  { %v5374_v55 = vrot.slane %v5367_v0, %v5373_v54 }
 0x72d   :  { %5377 = vst.msk [vmem:[#allocation17] sm:$0x1] %vm5376_vm8, %v5374_v55 }
 0x72e   :  { %6756 = shalt.err (!%p6753_p2)
}
 0x72f   :  { %5387 = dma.vmem_to_hbm [thread:$0]  %s5385_s14, 16, %s7410_s17, [#allocation5]  }
 0x730   :  { %6775 = dma.done.wait [#allocation5], 16  }
 0x731   :  { %6776 = vsyncadd [#allocation5], 4294967280 }
 0x732   :  { %5391 = vsyncpa [#allocation4], 1 }
 0x733   :  { %5392 = vsyncpa [#allocation7], 1 }
 0x734   :  { %5393 = vsyncpa [#allocation10], 1 }
 0x735   :  { %5394 = vsyncpa [#allocation13], 1 }
 0x736   :  { %5395 = vsyncpa [#allocation16], 1 }
 0x737   :  { %5396 = vsyncpa [#allocation5], 1 }

</bundles_post_ra>
